<compile_context>
chip_gen: v7x
topology: tpu7x:2x2x1
jax: 0.10.0
libtpu: 0.0.40
codegen_flags: <defaults>
</compile_context>

<pallas_src>
import functools

import jax
import jax.numpy as jnp
from jax.experimental import pallas as pl
from jax.experimental.pallas import tpu as pltpu

# ---------------- config (plays the role of `args`) ----------------
DIM = 32                 # args.dim
N_LAYER = 2              # args.n_layer
TRIPLET_SET_SIZE = 16    # args.triplet_set_size
AGG = "sum"              # args.agg  (exercises the `decay` MLP)
N_USER_ENTITY = 64
N_RELATION = 8
BATCH = 8                # args.cf_batch_size (small demo size)
TAB_PAD = 128            # merged (entity|relation) projected table, padded lane-dense


# ======================= fused kernel =======================

def _fused_cf_kernel(hr_ref, toh_ref, e0oh_ref, ue_ref, hrproj_ref, initproj_ref,
                     b1_ref, w2_ref, b2_ref, w3_ref, b3_ref, wd1_ref, wd2_ref,
                     o_ref, *, B, T, L, D):
    """One grid step = one entity path (g=0 users, g=1 items)."""
    n_half = L * B * T          # rows for this half, ordered (layer, batch, triplet)
    GBh = L * B                 # (layer, batch) groups in this half

    # ---- e0 gathers (raw + W1_init-projected) from the same tiny one-hot ----
    e0_oh = e0oh_ref[...].astype(jnp.float32)                                   # (B, n_ent)
    e0 = jnp.dot(e0_oh, ue_ref[...], preferred_element_type=jnp.float32)        # (B, D)
    e0w1 = jnp.dot(e0_oh, initproj_ref[...], preferred_element_type=jnp.float32)

    # broadcast e0@W1_init over (layer, triplet): rows are (l, b, t)
    init_bt = jnp.broadcast_to(e0w1[:, None, :], (B, T, D)).reshape(B * T, D)
    init_contrib = jnp.concatenate([init_bt] * L, axis=0)                        # (n_half, D)

    # ---- attention MLP; W1 already folded into the merged projected table ----
    hr = hr_ref[...].astype(jnp.float32)                                         # (n_half, 128)
    a1 = jnp.maximum(
        jnp.dot(hr, hrproj_ref[...], preferred_element_type=jnp.float32)
        + init_contrib + b1_ref[...], 0.0)
    a2 = jnp.maximum(
        jnp.dot(a1, w2_ref[...], preferred_element_type=jnp.float32) + b2_ref[...], 0.0)

    # Linear(D->1) + Sigmoid, softmax over the triplet-set axis
    logits = jnp.sum(a2.reshape(GBh, T, D) * w3_ref[...].reshape(1, 1, D),
                     axis=-1) + b3_ref[...]                                      # (GBh, T)
    att = jax.nn.softmax(jax.nn.sigmoid(logits), axis=-1)

    # ---- t gather + attention-weighted sum ----
    t_emb = jnp.dot(toh_ref[...].astype(jnp.float32), ue_ref[...],
                    preferred_element_type=jnp.float32)                          # (n_half, D)
    layer_emb = jnp.sum(att[:, :, None] * t_emb.reshape(GBh, T, D), axis=1)      # (GBh, D)

    # ---- predict() with agg='sum' (matches PyTorch in-place aliasing:
    # decay at layer i>0 sees the running accumulated embedding) ----
    e = e0                                                                       # (B, D)
    for l in range(L):                                                           # tiny static unroll
        ei = layer_emb[l * B:(l + 1) * B]                                        # (B, D)
        hd = jnp.maximum(
            jnp.dot(jnp.concatenate([e, ei], axis=-1), wd1_ref[...],
                    preferred_element_type=jnp.float32), 0.0)
        dec = jax.nn.sigmoid(jnp.sum(hd * wd2_ref[...], axis=-1, keepdims=True))
        e = e + ei * dec

    # lane-dense padded output slab (wrapper slices the first D lanes)
    pad = jnp.zeros((B, o_ref.shape[1] - D), jnp.float32)
    o_ref[...] = jnp.concatenate([e, pad], axis=-1).astype(o_ref.dtype)


# ======================= wrapper =======================

def calc_cf_score(params, users, items, users_triplet, items_triplet):
    """Equivalent of MODEL.forward('calc_cf_score', ...) in ONE pallas_call."""
    B = users.shape[0]
    L = N_LAYER
    T = users_triplet[0][0].shape[1]
    ue_tab = params["user_entity_emb"]
    re_tab = params["relation_emb"]
    n_ent, D = ue_tab.shape
    n_rel = re_tab.shape[0]
    assert B % 8 == 0 and (L * B * T) % 8 == 0, "block sublane dims must be multiples of 8"
    HI = jax.lax.Precision.HIGHEST

    # Row order (entity, layer, batch, triplet); user rows first, item rows second.
    def stack_idx(k):
        parts = ([users_triplet[k][l] for l in range(L)]
                 + [items_triplet[k][l] for l in range(L)])
        return jnp.stack(parts).reshape(-1).astype(jnp.int32)          # (2*L*B*T,)

    h_idx, r_idx, t_idx = stack_idx(0), stack_idx(1), stack_idx(2)

    # Lane-dense selection matrices (bf16 one-hots are exact 0/1).
    hr_twohot = (jax.nn.one_hot(h_idx, TAB_PAD, dtype=jnp.bfloat16)
                 + jax.nn.one_hot(r_idx + n_ent, TAB_PAD, dtype=jnp.bfloat16))  # (2LBT, 128)
    t_onehot = jax.nn.one_hot(t_idx, n_ent, dtype=jnp.bfloat16)                  # (2LBT, n_ent)
    ent = jnp.concatenate([users, items]).astype(jnp.int32)                      # (2B,)
    e0_onehot = jax.nn.one_hot(ent, n_ent, dtype=jnp.bfloat16)                   # (2B, n_ent)

    # Fold attention W1 into the gather stage (pre-projected, merged table).
    w1 = params["att_w1"]                                                        # (3D, D)
    hr_proj = jnp.concatenate([
        jnp.dot(ue_tab, w1[D:2 * D], precision=HI),
        jnp.dot(re_tab, w1[2 * D:], precision=HI),
        jnp.zeros((TAB_PAD - n_ent - n_rel, D), jnp.float32)], axis=0)           # (128, D)
    init_proj = jnp.dot(ue_tab, w1[:D], precision=HI)                            # (n_ent, D)

    b1 = params["att_b1"].reshape(1, D)
    w2 = params["att_w2"]
    b2 = params["att_b2"].reshape(1, D)
    w3 = params["att_w3"].reshape(1, D)
    b3 = params["att_b3"].reshape(1, 1)
    wd1 = params["decay_w1"]                                                     # (2D, D)
    wd2 = params["decay_w2"].reshape(1, D)

    resident = lambda a: pl.BlockSpec(a.shape, lambda g: (0, 0))
    halved = lambda a: pl.BlockSpec((a.shape[0] // 2, a.shape[1]), lambda g: (g, 0))

    emb = pl.pallas_call(
        functools.partial(_fused_cf_kernel, B=B, T=T, L=L, D=D),
        out_shape=jax.ShapeDtypeStruct((2 * B, 128), jnp.float32),
        grid=(2,),
        in_specs=[
            halved(hr_twohot), halved(t_onehot), halved(e0_onehot),
            resident(ue_tab), resident(hr_proj), resident(init_proj),
            resident(b1), resident(w2), resident(b2),
            resident(w3), resident(b3), resident(wd1), resident(wd2),
        ],
        out_specs=pl.BlockSpec((B, 128), lambda g: (g, 0)),
        compiler_params=pltpu.CompilerParams(dimension_semantics=("parallel",)),
    )(hr_twohot, t_onehot, e0_onehot, ue_tab, hr_proj, init_proj,
      b1, w2, b2, w3, b3, wd1, wd2)

    e_u = emb[:B, :D]
    e_v = emb[B:, :D]
    return jax.nn.sigmoid(jnp.sum(e_u * e_v, axis=-1))                           # (B,)


# ======================= pure-JAX reference =======================

def _ka_ref(emb_0, h, r, t, p):
    B, T, D = h.shape
    x = jnp.concatenate([jnp.broadcast_to(emb_0[:, None, :], (B, T, D)), h, r], axis=-1)
    a1 = jax.nn.relu(x @ p["att_w1"] + p["att_b1"])
    a2 = jax.nn.relu(a1 @ p["att_w2"] + p["att_b2"])
    logits = (a2 @ p["att_w3"])[..., 0] + p["att_b3"][0]
    att = jax.nn.softmax(jax.nn.sigmoid(logits), axis=-1)
    return jnp.sum(att[..., None] * t, axis=1)


def _ref_calc_cf_score(params, users, items, users_triplet, items_triplet):
    ue, re = params["user_entity_emb"], params["relation_emb"]

    def layers_of(entity_ids, triplet):
        e0 = ue[entity_ids]
        outs = [_ka_ref(e0, ue[triplet[0][i]], re[triplet[1][i]], ue[triplet[2][i]], params)
                for i in range(N_LAYER)]
        return e0, outs

    def agg(e0, layers):
        e = e0
        for ei in layers:
            hd = jax.nn.relu(jnp.concatenate([e, ei], axis=-1) @ params["decay_w1"])
            dec = jax.nn.sigmoid(hd @ params["decay_w2"])
            e = e + ei * dec
        return e

    u0, ul = layers_of(users, users_triplet)
    v0, vl = layers_of(items, items_triplet)
    return jax.nn.sigmoid(jnp.sum(agg(u0, ul) * agg(v0, vl), axis=-1))


# ======================= params / inputs =======================

def init_params(key):
    D = DIM
    ks = jax.random.split(key, 8)

    def xavier(k, shape):
        limit = (6.0 / (shape[0] + shape[1])) ** 0.5
        return jax.random.uniform(k, shape, jnp.float32, -limit, limit)

    return {
        "user_entity_emb": xavier(ks[0], (N_USER_ENTITY, D)),
        "relation_emb": xavier(ks[1], (N_RELATION, D)),
        "att_w1": xavier(ks[2], (3 * D, D)), "att_b1": jnp.zeros((D,), jnp.float32),
        "att_w2": xavier(ks[3], (D, D)),     "att_b2": jnp.zeros((D,), jnp.float32),
        "att_w3": xavier(ks[4], (D, 1)),     "att_b3": jnp.zeros((1,), jnp.float32),
        "decay_w1": xavier(ks[5], (2 * D, D)),
        "decay_w2": xavier(ks[6], (D, 1)),
    }


if __name__ == "__main__":
    key = jax.random.PRNGKey(0)
    kp, ku, ki, kt = jax.random.split(key, 4)

    params = init_params(kp)
    users = jax.random.randint(ku, (BATCH,), 0, N_USER_ENTITY, dtype=jnp.int32)
    items = jax.random.randint(ki, (BATCH,), 0, N_USER_ENTITY, dtype=jnp.int32)

    tkeys = jax.random.split(kt, 12)

    def mk_trip(keys):
        h = [jax.random.randint(keys[i], (BATCH, TRIPLET_SET_SIZE), 0, N_USER_ENTITY, dtype=jnp.int32)
             for i in range(N_LAYER)]
        r = [jax.random.randint(keys[2 + i], (BATCH, TRIPLET_SET_SIZE), 0, N_RELATION, dtype=jnp.int32)
             for i in range(N_LAYER)]
        t = [jax.random.randint(keys[4 + i], (BATCH, TRIPLET_SET_SIZE), 0, N_USER_ENTITY, dtype=jnp.int32)
             for i in range(N_LAYER)]
        return (h, r, t)

    users_triplet = mk_trip(tkeys[:6])
    items_triplet = mk_trip(tkeys[6:])

    scores = calc_cf_score(params, users, items, users_triplet, items_triplet)
    scores = jax.block_until_ready(scores)

    ref = _ref_calc_cf_score(params, users, items, users_triplet, items_triplet)
    assert scores.shape == (BATCH,)
    assert jnp.allclose(scores, ref, atol=1e-4, rtol=1e-4), (scores, ref)

    print("KERNEL_OK")
</pallas_src>

<mosaic_0001>
module attributes {stable_mosaic.version = 11 : i64} {
  func.func @_fused_cf_kernel(%arg0: i32, %arg1: memref<256x128xbf16, #tpu.memory_space<vmem>>, %arg2: memref<256x64xbf16, #tpu.memory_space<vmem>>, %arg3: memref<8x64xbf16, #tpu.memory_space<vmem>>, %arg4: memref<64x32xf32, #tpu.memory_space<vmem>>, %arg5: memref<128x32xf32, #tpu.memory_space<vmem>>, %arg6: memref<64x32xf32, #tpu.memory_space<vmem>>, %arg7: memref<1x32xf32, #tpu.memory_space<vmem>>, %arg8: memref<32x32xf32, #tpu.memory_space<vmem>>, %arg9: memref<1x32xf32, #tpu.memory_space<vmem>>, %arg10: memref<1x32xf32, #tpu.memory_space<vmem>>, %arg11: memref<1x1xf32, #tpu.memory_space<vmem>>, %arg12: memref<64x32xf32, #tpu.memory_space<vmem>>, %arg13: memref<1x32xf32, #tpu.memory_space<vmem>>, %arg14: memref<8x128xf32, #tpu.memory_space<vmem>>) attributes {dimension_semantics = [#tpu.dimension_semantics<parallel>], iteration_bounds = array<i64: 2>, scalar_prefetch = 0 : i64, scratch_operands = 0 : i64, tpu.core_type = #tpu.core_type<tc>, window_params = [{transform_indices = @transform_0, window_bounds = array<i64: 256, 128>}, {transform_indices = @transform_1, window_bounds = array<i64: 256, 64>}, {transform_indices = @transform_2, window_bounds = array<i64: 8, 64>}, {pipeline_mode = #tpu.pipeline_mode<synchronous>, transform_indices = @transform_3, window_bounds = array<i64: 64, 32>}, {pipeline_mode = #tpu.pipeline_mode<synchronous>, transform_indices = @transform_4, window_bounds = array<i64: 128, 32>}, {pipeline_mode = #tpu.pipeline_mode<synchronous>, transform_indices = @transform_5, window_bounds = array<i64: 64, 32>}, {pipeline_mode = #tpu.pipeline_mode<synchronous>, transform_indices = @transform_6, window_bounds = array<i64: 1, 32>}, {pipeline_mode = #tpu.pipeline_mode<synchronous>, transform_indices = @transform_7, window_bounds = array<i64: 32, 32>}, {pipeline_mode = #tpu.pipeline_mode<synchronous>, transform_indices = @transform_8, window_bounds = array<i64: 1, 32>}, {pipeline_mode = #tpu.pipeline_mode<synchronous>, transform_indices = @transform_9, window_bounds = array<i64: 1, 32>}, {pipeline_mode = #tpu.pipeline_mode<synchronous>, transform_indices = @transform_10, window_bounds = array<i64: 1, 1>}, {pipeline_mode = #tpu.pipeline_mode<synchronous>, transform_indices = @transform_11, window_bounds = array<i64: 64, 32>}, {pipeline_mode = #tpu.pipeline_mode<synchronous>, transform_indices = @transform_12, window_bounds = array<i64: 1, 32>}, {transform_indices = @transform_13, window_bounds = array<i64: 8, 128>}]} {
    %c0 = arith.constant 0 : index
    %c0_0 = arith.constant 0 : index
    %0 = vector.load %arg3[%c0, %c0_0] : memref<8x64xbf16, #tpu.memory_space<vmem>>, vector<8x64xbf16>
    %1 = arith.extf %0 : vector<8x64xbf16> to vector<8x64xf32>
    %c0_1 = arith.constant 0 : index
    %c0_2 = arith.constant 0 : index
    %2 = vector.load %arg4[%c0_1, %c0_2] : memref<64x32xf32, #tpu.memory_space<vmem>>, vector<64x32xf32>
    %cst = arith.constant dense<0.000000e+00> : vector<8x32xf32>
    %3 = tpu.matmul %1, %2, %cst {dimension_numbers = #tpu.dot_dimension_numbers<[1], [0], [0], [1], [0, 0, 1, 1], [], []>} : vector<8x64xf32>, vector<64x32xf32>, vector<8x32xf32> -> vector<8x32xf32>
    %c0_3 = arith.constant 0 : index
    %c0_4 = arith.constant 0 : index
    %4 = vector.load %arg6[%c0_3, %c0_4] : memref<64x32xf32, #tpu.memory_space<vmem>>, vector<64x32xf32>
    %cst_5 = arith.constant dense<0.000000e+00> : vector<8x32xf32>
    %5 = tpu.matmul %1, %4, %cst_5 {dimension_numbers = #tpu.dot_dimension_numbers<[1], [0], [0], [1], [0, 0, 1, 1], [], []>} : vector<8x64xf32>, vector<64x32xf32>, vector<8x32xf32> -> vector<8x32xf32>
    %6 = vector.shape_cast %5 : vector<8x32xf32> to vector<8x1x32xf32>
    %7 = vector.shape_cast %6 : vector<8x1x32xf32> to vector<8x1x32xf32>
    %8 = vector.broadcast %7 : vector<8x1x32xf32> to vector<8x16x32xf32>
    %9 = vector.shape_cast %8 : vector<8x16x32xf32> to vector<128x32xf32>
    %10 = tpu.concatenate %9, %9 in 0 : vector<128x32xf32>, vector<128x32xf32> -> vector<256x32xf32>
    %c0_6 = arith.constant 0 : index
    %c0_7 = arith.constant 0 : index
    %11 = vector.load %arg1[%c0_6, %c0_7] : memref<256x128xbf16, #tpu.memory_space<vmem>>, vector<256x128xbf16>
    %12 = arith.extf %11 : vector<256x128xbf16> to vector<256x128xf32>
    %c0_8 = arith.constant 0 : index
    %c0_9 = arith.constant 0 : index
    %13 = vector.load %arg5[%c0_8, %c0_9] : memref<128x32xf32, #tpu.memory_space<vmem>>, vector<128x32xf32>
    %cst_10 = arith.constant dense<0.000000e+00> : vector<256x32xf32>
    %14 = tpu.matmul %12, %13, %cst_10 {dimension_numbers = #tpu.dot_dimension_numbers<[1], [0], [0], [1], [0, 0, 1, 1], [], []>} : vector<256x128xf32>, vector<128x32xf32>, vector<256x32xf32> -> vector<256x32xf32>
    %15 = arith.addf %14, %10 : vector<256x32xf32>
    %c0_11 = arith.constant 0 : index
    %c0_12 = arith.constant 0 : index
    %16 = vector.load %arg7[%c0_11, %c0_12] : memref<1x32xf32, #tpu.memory_space<vmem>>, vector<1x32xf32>
    %17 = vector.broadcast %16 : vector<1x32xf32> to vector<256x32xf32>
    %18 = arith.addf %15, %17 : vector<256x32xf32>
    %cst_13 = arith.constant 0.000000e+00 : f32
    %19 = vector.broadcast %cst_13 : f32 to vector<256x32xf32>
    %20 = arith.maximumf %18, %19 : vector<256x32xf32>
    %c0_14 = arith.constant 0 : index
    %c0_15 = arith.constant 0 : index
    %21 = vector.load %arg8[%c0_14, %c0_15] : memref<32x32xf32, #tpu.memory_space<vmem>>, vector<32x32xf32>
    %cst_16 = arith.constant dense<0.000000e+00> : vector<256x32xf32>
    %22 = tpu.matmul %20, %21, %cst_16 {dimension_numbers = #tpu.dot_dimension_numbers<[1], [0], [0], [1], [0, 0, 1, 1], [], []>} : vector<256x32xf32>, vector<32x32xf32>, vector<256x32xf32> -> vector<256x32xf32>
    %c0_17 = arith.constant 0 : index
    %c0_18 = arith.constant 0 : index
    %23 = vector.load %arg9[%c0_17, %c0_18] : memref<1x32xf32, #tpu.memory_space<vmem>>, vector<1x32xf32>
    %24 = vector.broadcast %23 : vector<1x32xf32> to vector<256x32xf32>
    %25 = arith.addf %22, %24 : vector<256x32xf32>
    %cst_19 = arith.constant 0.000000e+00 : f32
    %26 = vector.broadcast %cst_19 : f32 to vector<256x32xf32>
    %27 = arith.maximumf %25, %26 : vector<256x32xf32>
    %28 = vector.shape_cast %27 : vector<256x32xf32> to vector<16x16x32xf32>
    %c0_20 = arith.constant 0 : index
    %c0_21 = arith.constant 0 : index
    %29 = vector.load %arg10[%c0_20, %c0_21] : memref<1x32xf32, #tpu.memory_space<vmem>>, vector<1x32xf32>
    %30 = vector.shape_cast %29 : vector<1x32xf32> to vector<1x1x32xf32>
    %31 = vector.broadcast %30 : vector<1x1x32xf32> to vector<16x16x32xf32>
    %32 = arith.mulf %28, %31 : vector<16x16x32xf32>
    %cst_22 = arith.constant dense<0.000000e+00> : vector<16x16xf32>
    %33 = vector.multi_reduction <add>, %32, %cst_22 [2] : vector<16x16x32xf32> to vector<16x16xf32>
    %c0_23 = arith.constant 0 : index
    %c0_24 = arith.constant 0 : index
    %34 = vector.load %arg11[%c0_23, %c0_24] : memref<1x1xf32, #tpu.memory_space<vmem>>, vector<1x1xf32>
    %35 = vector.broadcast %34 : vector<1x1xf32> to vector<16x16xf32>
    %36 = arith.addf %33, %35 : vector<16x16xf32>
    %37 = arith.negf %36 : vector<16x16xf32>
    %38 = math.exp %37 : vector<16x16xf32>
    %cst_25 = arith.constant 1.000000e+00 : f32
    %39 = vector.broadcast %cst_25 : f32 to vector<16x16xf32>
    %40 = arith.addf %39, %38 : vector<16x16xf32>
    %41 = arith.divf %39, %40 : vector<16x16xf32>
    %cst_26 = arith.constant dense<0xFF800000> : vector<16xf32>
    %42 = vector.multi_reduction <maximumf>, %41, %cst_26 [1] : vector<16x16xf32> to vector<16xf32>
    %cst_27 = arith.constant 0xFF800000 : f32
    %43 = vector.broadcast %cst_27 : f32 to vector<16xf32>
    %44 = arith.maximumf %43, %42 : vector<16xf32>
    %45 = vector.shape_cast %44 : vector<16xf32> to vector<16x1xf32>
    %46 = vector.broadcast %45 : vector<16x1xf32> to vector<16x16xf32>
    %47 = arith.subf %41, %46 : vector<16x16xf32>
    %48 = math.exp %47 : vector<16x16xf32>
    %cst_28 = arith.constant dense<0.000000e+00> : vector<16xf32>
    %49 = vector.multi_reduction <add>, %48, %cst_28 [1] : vector<16x16xf32> to vector<16xf32>
    %50 = vector.shape_cast %49 : vector<16xf32> to vector<16x1xf32>
    %51 = vector.broadcast %50 : vector<16x1xf32> to vector<16x16xf32>
    %52 = arith.divf %48, %51 : vector<16x16xf32>
    %c0_29 = arith.constant 0 : index
    %c0_30 = arith.constant 0 : index
    %53 = vector.load %arg2[%c0_29, %c0_30] : memref<256x64xbf16, #tpu.memory_space<vmem>>, vector<256x64xbf16>
    %54 = arith.extf %53 : vector<256x64xbf16> to vector<256x64xf32>
    %c0_31 = arith.constant 0 : index
    %c0_32 = arith.constant 0 : index
    %55 = vector.load %arg4[%c0_31, %c0_32] : memref<64x32xf32, #tpu.memory_space<vmem>>, vector<64x32xf32>
    %cst_33 = arith.constant dense<0.000000e+00> : vector<256x32xf32>
    %56 = tpu.matmul %54, %55, %cst_33 {dimension_numbers = #tpu.dot_dimension_numbers<[1], [0], [0], [1], [0, 0, 1, 1], [], []>} : vector<256x64xf32>, vector<64x32xf32>, vector<256x32xf32> -> vector<256x32xf32>
    %57 = vector.shape_cast %52 : vector<16x16xf32> to vector<16x16x1xf32>
    %58 = vector.shape_cast %56 : vector<256x32xf32> to vector<16x16x32xf32>
    %59 = vector.broadcast %57 : vector<16x16x1xf32> to vector<16x16x32xf32>
    %60 = arith.mulf %59, %58 : vector<16x16x32xf32>
    %cst_34 = arith.constant dense<0.000000e+00> : vector<16x32xf32>
    %61 = vector.multi_reduction <add>, %60, %cst_34 [1] : vector<16x16x32xf32> to vector<16x32xf32>
    %62 = vector.extract_strided_slice %61 {offsets = [0, 0], sizes = [8, 32], strides = [1, 1]} : vector<16x32xf32> to vector<8x32xf32>
    %63 = tpu.concatenate %3, %62 in 1 : vector<8x32xf32>, vector<8x32xf32> -> vector<8x64xf32>
    %c0_35 = arith.constant 0 : index
    %c0_36 = arith.constant 0 : index
    %64 = vector.load %arg12[%c0_35, %c0_36] : memref<64x32xf32, #tpu.memory_space<vmem>>, vector<64x32xf32>
    %cst_37 = arith.constant dense<0.000000e+00> : vector<8x32xf32>
    %65 = tpu.matmul %63, %64, %cst_37 {dimension_numbers = #tpu.dot_dimension_numbers<[1], [0], [0], [1], [0, 0, 1, 1], [], []>} : vector<8x64xf32>, vector<64x32xf32>, vector<8x32xf32> -> vector<8x32xf32>
    %cst_38 = arith.constant 0.000000e+00 : f32
    %66 = vector.broadcast %cst_38 : f32 to vector<8x32xf32>
    %67 = arith.maximumf %65, %66 : vector<8x32xf32>
    %c0_39 = arith.constant 0 : index
    %c0_40 = arith.constant 0 : index
    %68 = vector.load %arg13[%c0_39, %c0_40] : memref<1x32xf32, #tpu.memory_space<vmem>>, vector<1x32xf32>
    %69 = vector.broadcast %68 : vector<1x32xf32> to vector<8x32xf32>
    %70 = arith.mulf %67, %69 : vector<8x32xf32>
    %cst_41 = arith.constant dense<0.000000e+00> : vector<8xf32>
    %71 = vector.multi_reduction <add>, %70, %cst_41 [1] : vector<8x32xf32> to vector<8xf32>
    %72 = vector.shape_cast %71 : vector<8xf32> to vector<8x1xf32>
    %73 = arith.negf %72 : vector<8x1xf32>
    %74 = math.exp %73 : vector<8x1xf32>
    %cst_42 = arith.constant 1.000000e+00 : f32
    %75 = vector.broadcast %cst_42 : f32 to vector<8x1xf32>
    %76 = arith.addf %75, %74 : vector<8x1xf32>
    %77 = arith.divf %75, %76 : vector<8x1xf32>
    %78 = vector.broadcast %77 : vector<8x1xf32> to vector<8x32xf32>
    %79 = arith.mulf %62, %78 : vector<8x32xf32>
    %80 = arith.addf %3, %79 : vector<8x32xf32>
    %81 = vector.extract_strided_slice %61 {offsets = [8, 0], sizes = [8, 32], strides = [1, 1]} : vector<16x32xf32> to vector<8x32xf32>
    %82 = tpu.concatenate %80, %81 in 1 : vector<8x32xf32>, vector<8x32xf32> -> vector<8x64xf32>
    %c0_43 = arith.constant 0 : index
    %c0_44 = arith.constant 0 : index
    %83 = vector.load %arg12[%c0_43, %c0_44] : memref<64x32xf32, #tpu.memory_space<vmem>>, vector<64x32xf32>
    %cst_45 = arith.constant dense<0.000000e+00> : vector<8x32xf32>
    %84 = tpu.matmul %82, %83, %cst_45 {dimension_numbers = #tpu.dot_dimension_numbers<[1], [0], [0], [1], [0, 0, 1, 1], [], []>} : vector<8x64xf32>, vector<64x32xf32>, vector<8x32xf32> -> vector<8x32xf32>
    %cst_46 = arith.constant 0.000000e+00 : f32
    %85 = vector.broadcast %cst_46 : f32 to vector<8x32xf32>
    %86 = arith.maximumf %84, %85 : vector<8x32xf32>
    %c0_47 = arith.constant 0 : index
    %c0_48 = arith.constant 0 : index
    %87 = vector.load %arg13[%c0_47, %c0_48] : memref<1x32xf32, #tpu.memory_space<vmem>>, vector<1x32xf32>
    %88 = vector.broadcast %87 : vector<1x32xf32> to vector<8x32xf32>
    %89 = arith.mulf %86, %88 : vector<8x32xf32>
    %cst_49 = arith.constant dense<0.000000e+00> : vector<8xf32>
    %90 = vector.multi_reduction <add>, %89, %cst_49 [1] : vector<8x32xf32> to vector<8xf32>
    %91 = vector.shape_cast %90 : vector<8xf32> to vector<8x1xf32>
    %92 = arith.negf %91 : vector<8x1xf32>
    %93 = math.exp %92 : vector<8x1xf32>
    %cst_50 = arith.constant 1.000000e+00 : f32
    %94 = vector.broadcast %cst_50 : f32 to vector<8x1xf32>
    %95 = arith.addf %94, %93 : vector<8x1xf32>
    %96 = arith.divf %94, %95 : vector<8x1xf32>
    %97 = vector.broadcast %96 : vector<8x1xf32> to vector<8x32xf32>
    %98 = arith.mulf %81, %97 : vector<8x32xf32>
    %99 = arith.addf %80, %98 : vector<8x32xf32>
    %cst_51 = arith.constant 0.000000e+00 : f32
    %100 = vector.broadcast %cst_51 : f32 to vector<8x96xf32>
    %101 = tpu.concatenate %99, %100 in 1 : vector<8x32xf32>, vector<8x96xf32> -> vector<8x128xf32>
    %c0_52 = arith.constant 0 : index
    %c0_53 = arith.constant 0 : index
    %102 = vector.load %arg14[%c0_52, %c0_53] : memref<8x128xf32, #tpu.memory_space<vmem>>, vector<8x128xf32>
    tpu.vector_store %arg14[%c0_52, %c0_53], %101 {strides = array<i32>} : memref<8x128xf32, #tpu.memory_space<vmem>>, vector<8x128xf32>,
    return
  }
  func.func @transform_0(%arg0: i32) -> (i32, i32) {
    %c0_i32 = arith.constant 0 : i32
    %c0_i32_0 = arith.constant 0 : i32
    return %arg0, %c0_i32 : i32, i32
  }
  func.func @transform_1(%arg0: i32) -> (i32, i32) {
    %c0_i32 = arith.constant 0 : i32
    %c0_i32_0 = arith.constant 0 : i32
    return %arg0, %c0_i32 : i32, i32
  }
  func.func @transform_2(%arg0: i32) -> (i32, i32) {
    %c0_i32 = arith.constant 0 : i32
    %c0_i32_0 = arith.constant 0 : i32
    return %arg0, %c0_i32 : i32, i32
  }
  func.func @transform_3(%arg0: i32) -> (i32, i32) {
    %c0_i32 = arith.constant 0 : i32
    %c0_i32_0 = arith.constant 0 : i32
    %c0_i32_1 = arith.constant 0 : i32
    return %c0_i32, %c0_i32_0 : i32, i32
  }
  func.func @transform_4(%arg0: i32) -> (i32, i32) {
    %c0_i32 = arith.constant 0 : i32
    %c0_i32_0 = arith.constant 0 : i32
    %c0_i32_1 = arith.constant 0 : i32
    return %c0_i32, %c0_i32_0 : i32, i32
  }
  func.func @transform_5(%arg0: i32) -> (i32, i32) {
    %c0_i32 = arith.constant 0 : i32
    %c0_i32_0 = arith.constant 0 : i32
    %c0_i32_1 = arith.constant 0 : i32
    return %c0_i32, %c0_i32_0 : i32, i32
  }
  func.func @transform_6(%arg0: i32) -> (i32, i32) {
    %c0_i32 = arith.constant 0 : i32
    %c0_i32_0 = arith.constant 0 : i32
    %c0_i32_1 = arith.constant 0 : i32
    return %c0_i32, %c0_i32_0 : i32, i32
  }
  func.func @transform_7(%arg0: i32) -> (i32, i32) {
    %c0_i32 = arith.constant 0 : i32
    %c0_i32_0 = arith.constant 0 : i32
    %c0_i32_1 = arith.constant 0 : i32
    return %c0_i32, %c0_i32_0 : i32, i32
  }
  func.func @transform_8(%arg0: i32) -> (i32, i32) {
    %c0_i32 = arith.constant 0 : i32
    %c0_i32_0 = arith.constant 0 : i32
    %c0_i32_1 = arith.constant 0 : i32
    return %c0_i32, %c0_i32_0 : i32, i32
  }
  func.func @transform_9(%arg0: i32) -> (i32, i32) {
    %c0_i32 = arith.constant 0 : i32
    %c0_i32_0 = arith.constant 0 : i32
    %c0_i32_1 = arith.constant 0 : i32
    return %c0_i32, %c0_i32_0 : i32, i32
  }
  func.func @transform_10(%arg0: i32) -> (i32, i32) {
    %c0_i32 = arith.constant 0 : i32
    %c0_i32_0 = arith.constant 0 : i32
    %c0_i32_1 = arith.constant 0 : i32
    return %c0_i32, %c0_i32_0 : i32, i32
  }
  func.func @transform_11(%arg0: i32) -> (i32, i32) {
    %c0_i32 = arith.constant 0 : i32
    %c0_i32_0 = arith.constant 0 : i32
    %c0_i32_1 = arith.constant 0 : i32
    return %c0_i32, %c0_i32_0 : i32, i32
  }
  func.func @transform_12(%arg0: i32) -> (i32, i32) {
    %c0_i32 = arith.constant 0 : i32
    %c0_i32_0 = arith.constant 0 : i32
    %c0_i32_1 = arith.constant 0 : i32
    return %c0_i32, %c0_i32_0 : i32, i32
  }
  func.func @transform_13(%arg0: i32) -> (i32, i32) {
    %c0_i32 = arith.constant 0 : i32
    %c0_i32_0 = arith.constant 0 : i32
    return %arg0, %c0_i32 : i32, i32
  }
}

</mosaic_0001>

<bundles_post_ra>
// kernel: tpu_custom_call.1
= control target key start
LH: loop header
LB: loop body
LE: loop exit
PB: predicated region body
PF: predicated region fallthrough
CT: control target
= control target key end

     0   :  { %s6413_s0 = inlined_call_operand.vmem [shape: bf16[512,128], index: 0, kind: input, shape index: {}]   ;;  %s6414_s1 = inlined_call_operand.vmem [shape: bf16[512,64], index: 1, kind: input, shape index: {}]   ;;  %s6415_s2 = inlined_call_operand.vmem [shape: bf16[16,64], index: 2, kind: input, shape index: {}]   ;;  %s6416_s3 = inlined_call_operand.vmem [shape: f32[64,32], index: 3, kind: input, shape index: {}]   ;;  %s6417_s4 = inlined_call_operand.vmem [shape: f32[128,32], index: 4, kind: input, shape index: {}]   ;;  %s6418_s5 = inlined_call_operand.vmem [shape: f32[64,32], index: 5, kind: input, shape index: {}]   ;;  %s6419_s6 = inlined_call_operand.vmem [shape: f32[1,32], index: 6, kind: input, shape index: {}]   ;;  %s6420_s7 = inlined_call_operand.vmem [shape: f32[32,32], index: 7, kind: input, shape index: {}]   ;;  %s6421_s8 = inlined_call_operand.vmem [shape: f32[1,32], index: 8, kind: input, shape index: {}]   ;;  %s6422_s9 = inlined_call_operand.vmem [shape: f32[1,32], index: 9, kind: input, shape index: {}]   ;;  %s6423_s10 = inlined_call_operand.<no memory space> [shape: f32[1,1], index: 10, kind: input, shape index: {}]   ;;  %s6424_s11 = inlined_call_operand.vmem [shape: f32[64,32], index: 11, kind: input, shape index: {}]   ;;  %s6425_s12 = inlined_call_operand.vmem [shape: f32[1,32], index: 12, kind: input, shape index: {}]   ;;  %s6426_s13 = inlined_call_operand.hbm [shape: f32[16,128], index: 13, kind: output, shape index: {}]  }
   0x1   :  { %6437 = sst [smem:[#allocation19_spill]] %s6415_s2  ;;  %v18_v0 = vstv %s6423_s10 }
   0x2   :  { %6438 = sst [smem:[#allocation20_spill]] %s6416_s3  ;;  %19 = vst [vmem:[#allocation2] sm:$0x1] %v18_v0 }
   0x3   :  { %20 = vsyncpa [#allocation4], 0 }
   0x4   :  { %22 = vsyncpa [#allocation4 + $0x1], 0  ;;  %s5035_s27 = smov 0   ;;  %s5037_s28 = smov 0  }
   0x5   :  { %s5039_s29 = smov 0   ;;  %s5041_s30 = smov 0  }
   0x6 LB: > { %6439 = sst [smem:[#allocation6_spill]] %s4949_s29  ;;  %s5056_s10 = sadd.s32 4294967295, %s4953_s30   ;;  %s4953_s30 = sphi %s5041_s30, %s6471_s30   ;;  %s4949_s29 = sphi %s5039_s29, %s6468_s29   ;;  %s4945_s28 = sphi %s5037_s28, %s6470_s28   ;;  %s4941_s27 = sphi %s5035_s27, %s6469_s27  }
   0x7   : > { %s3793_s14 = sadd.s32 4294967294, %s4953_s30   ;;  %s5060_s15 = sadd.s32 1, %s4953_s30  }
   0x8   : > { %s323_s16 = sadd.s32 1, %s4949_s29  ;;  %s320_s17 = ssub.s32 %s4953_s30, %s5060_s15 }
   0x9   : > { %p333_p0 = scmp.ne.s32.totalorder %s4949_s29, %s4945_s28  ;;  %p321_p1 = scmp.eq.s32.totalorder %s320_s17, 0 }
   0xa   : > { %p334_p2 = scmp.eq.s32.totalorder %s5056_s10, 1  ;;  %p339_p3 = scmp.ne.s32.totalorder %s4945_s28, %s4941_s27 }
   0xb   : > { %p340_p4 = scmp.eq.s32.totalorder %s3793_s14, 1  ;;  %p3796_p7 = scmp.ge.s32.totalorder %s4953_s30, 1 }
   0xc   : > { %s5071_s18 = scalar_select %p321_p1, %s4949_s29, %s323_s16  }
   0xd   : > { %p5073_p5 = por %p334_p2, %p333_p0  ;;  %p5077_p6 = por %p340_p4, %p339_p3 }
   0xe   : > { %6440 = sst [smem:[#allocation7_spill]] %s5071_s18  ;;  %p413_p8 = scmp.lt.s32.totalorder %s4953_s30, 3 }
  0x10   : > { %p414_p9 = pnand %p3796_p7, %p413_p8 }
  0x12   : > { %417 = sbr.rel (%p414_p9) target bundleno = 2537 (0x9e9), region = 72 }
  0x19   : > { %s6443_s3 = sld [smem:[#allocation20_spill]]  ;;  %v4955_v4 = vmov 0.0|0.0   ;;  %vm4956_vm0 = vmmov 0   ;;  %v4957_v7 = vmov 0.0   ;;  %p478_p10 = scmp.lt.s32.totalorder %s5056_s10, 1  ;;  %v566_v16 = vld [vmem:[%s6418_s5] sm:$0xff] }
  0x1a   : > { %4508 = vmatprep.subr.bf16.mxu0 %v4955_v4  ;;  %4248 = vmatprep.mubr.msk.f32.mxu0 %vm4956_vm0, %v4957_v7  ;;  %s6444_s2 = sld [smem:[#allocation19_spill]]  ;;  %v567_v17 = vld [vmem:[%s6418_s5 + $0x8] sm:$0xff]  ;;  %vm492_vm1 = vcmask 523264   ;;  %v568_v20 = vld [vmem:[%s6418_s5 + $0x10] sm:$0xff]  ;;  %v569_v21 = vld [vmem:[%s6418_s5 + $0x18] sm:$0xff]  ;;  %vm1121_vm2 = vcmask 261120  }
  0x1b   : > { %s479_s17 = scalar_select %p478_p10, %s5056_s10, 1  ;;  %v4521_v19 = vpack.c.bf16 %v567_v17, %v566_v16  ;;  %v4524_v22 = vpack.c.bf16 %v569_v21, %v568_v20  ;;  %v570_v23 = vld [vmem:[%s6418_s5 + $0x20] sm:$0xff]  ;;  %v571_v24 = vld [vmem:[%s6418_s5 + $0x28] sm:$0xff]  ;;  %v572_v26 = vld [vmem:[%s6418_s5 + $0x30] sm:$0xff]  ;;  %vm1887_vm3 = vcmask 130112   ;;  %vm2024_vm4 = vcmask 1041409  }
  0x1c   : > { %v4527_v25 = vpack.c.bf16 %v571_v24, %v570_v23  ;;  %v573_v27 = vld [vmem:[%s6418_s5 + $0x38] sm:$0xff]  ;;  %v798_v28 = vld [vmem:[%s6417_s4] sm:$0xff]  ;;  %v799_v29 = vld [vmem:[%s6417_s4 + $0x8] sm:$0xff]  ;;  %vm2026_vm5 = vcmask 1042434   ;;  %vm2028_vm6 = vcmask 1043459   ;;  %vm2030_vm7 = vcmask 1044484  }
  0x1d   : > { %s3802_s25 = sshll.u32 %s479_s17, 2  ;;  %s3798_s17 = sshll.u32 %s5056_s10, 5  ;;  %v4530_v30 = vpack.c.bf16 %v573_v27, %v572_v26  ;;  %v4532_v31 = vpack.c.bf16 %v799_v29, %v798_v28  ;;  %v800_v33 = vld [vmem:[%s6417_s4 + $0x10] sm:$0xff]  ;;  %v801_v34 = vld [vmem:[%s6417_s4 + $0x18] sm:$0xff]  ;;  %v802_v37 = vld [vmem:[%s6417_s4 + $0x20] sm:$0xff]  ;;  %vm2032_vm8 = vcmask 1045509  }
  0x1e   : > { %p467_p11 = scmp.lt.s32.totalorder %s3798_s17, 63  ;;  %v4536_v36 = vpack.c.bf16 %v801_v34, %v800_v33  ;;  %v803_v38 = vld [vmem:[%s6417_s4 + $0x28] sm:$0xff]  ;;  %v804_v40 = vld [vmem:[%s6417_s4 + $0x30] sm:$0xff]  ;;  %v805_v41 = vld [vmem:[%s6417_s4 + $0x38] sm:$0xff]  ;;  %vm2034_vm9 = vcmask 1046534   ;;  %vm2036_vm10 = vcmask 1047559  }
  0x1f   : > { %v484_v1 = vld [vmem:[%s6443_s3] sm:$0xff]  ;;  %v485_v2 = vld [vmem:[%s6443_s3 + $0x8] sm:$0xff]  ;;  %v486_v3 = vld [vmem:[%s6443_s3 + $0x10] sm:$0xff]  ;;  %v4540_v39 = vpack.c.bf16 %v803_v38, %v802_v37  ;;  %v4544_v42 = vpack.c.bf16 %v805_v41, %v804_v40  ;;  %vm2047_vm11 = vcmask 130048   ;;  %s463_s22 = sand.u32 1, %s4945_s28   ;;  %s3911_s24 = sshll.u32 %s5056_s10, 7 }
  0x20   : > { %v5093_v5 = vpack.c.bf16 %v485_v2, %v484_v1  ;;  %v487_v6 = vld [vmem:[%s6443_s3 + $0x18] sm:$0xff]  ;;  %v488_v9 = vld [vmem:[%s6443_s3 + $0x20] sm:$0xff]  ;;  %v489_v10 = vld [vmem:[%s6443_s3 + $0x28] sm:$0xff]  ;;  %s481_s23 = scalar_lea.vmem %s6444_s2, %s3802_s25  ;;  %s6473_s17 = smov (!%p467_p11, %s3798_s17), 63 }
  0x21   : > { %v5102_v8 = vpack.c.bf16 %v487_v6, %v486_v3  ;;  %v5113_v11 = vpack.c.bf16 %v489_v10, %v488_v9  ;;  %v490_v12 = vld [vmem:[%s6443_s3 + $0x30] sm:$0xff]  ;;  %v491_v13 = vld [vmem:[%s6443_s3 + $0x38] sm:$0xff]  ;;  %v482_v15 = vld [vmem:[%s481_s23] sm:$0xf]  ;;  %s3799_s26 = sshll.u32 %s6473_s17, 2  ;;  %s3797_s23 = sshll.u32 %s463_s22, 3 }
  0x22   : > { %4510 = vmatpush3.bf16.msra.mxu0 %v5093_v5  ;;  %v5126_v14 = vpack.c.bf16 %v491_v13, %v490_v12  ;;  %v483_v18 = vunpack.c.l.bf16 %v482_v15  ;;  %s5175_s3 = scalar_lea.vmem %s6413_s0, %s3799_s26  ;;  %v806_v43 = vld [vmem:[%s6417_s4 + $0x40] sm:$0xff]  ;;  %v807_v44 = vld [vmem:[%s6417_s4 + $0x48] sm:$0xff]  ;;  %v808_v46 = vld [vmem:[%s6417_s4 + $0x50] sm:$0xff]  ;;  %s5730_s25 = scalar_lea.vmem %s6414_s1, %s3799_s26 }
  0x23   : > { %4511 = vmatprep.subr.bf16.mxu0 %v4955_v4  ;;  %v3915_v32 = vld [vmem:[%s5175_s3] sm:$0xff]   ;;  %v4548_v45 = vpack.c.bf16 %v807_v44, %v806_v43  ;;  %v809_v47 = vld [vmem:[%s6417_s4 + $0x58] sm:$0xff]  ;;  %v811_v50 = vld [vmem:[%s6417_s4 + $0x68] sm:$0xff]  ;;  %s465_s14 = scalar_lea.vmem [#allocation3], %s3797_s23  ;;  %s6368_s26 = scalar_lea.hbm %s6426_s13, %s3911_s24 }
  0x24   : > { %v3916_v35 = vunpack.c.l.bf16 %v3915_v32  ;;  %v4552_v48 = vpack.c.bf16 %v809_v47, %v808_v46  ;;  %v810_v49 = vld [vmem:[%s6417_s4 + $0x60] sm:$0xff]  ;;  %v812_v52 = vld [vmem:[%s6417_s4 + $0x70] sm:$0xff]  ;;  %v813_v53 = vld [vmem:[%s6417_s4 + $0x78] sm:$0xff]  ;;  %v3917_v56 = vunpack.c.h.bf16 %v3915_v32  ;;  %s3710_s18 = sshll.u32 %s465_s14, 4  ;;  %s3697_s10 = scalar_lea.sflag [#allocation4], %s463_s22  ;;  %s6370_s18 = int_to_ptr.vmem [resolvable:$true] %s3710_s18 }
  0x25   : > { %v4556_v51 = vpack.c.bf16 %v811_v50, %v810_v49  ;;  %v4560_v54 = vpack.c.bf16 %v813_v53, %v812_v52  ;;  %v4042_v55 = vld [vmem:[%s5175_s3 + $0x8] sm:$0xff]   ;;  %v4043_v58 = vld [vmem:[%s5175_s3 + $0x10] sm:$0xff]   ;;  %v4044_v61 = vld [vmem:[%s5175_s3 + $0x18] sm:$0xff]   ;;  %v4958_v53 = vmov 1966171168   ;;  %s4891_s16 = scalar_lea.vmem %s6370_s18, 128 }
  0x26   : > { %4513 = vmatpush3.bf16.msra.mxu0 %v5102_v8  ;;  %v3920_v57 = vunpack.c.l.bf16 %v4042_v55  ;;  %v3921_v59 = vunpack.c.h.bf16 %v4042_v55  ;;  %v3924_v60 = vunpack.c.l.bf16 %v4043_v58  ;;  %v3925_v62 = vunpack.c.h.bf16 %v4043_v58  ;;  %v4045_v0 = vld [vmem:[%s5175_s3 + $0x20] sm:$0xff]   ;;  %v4046_v3 = vld [vmem:[%s5175_s3 + $0x28] sm:$0xff]   ;;  %v4047_v10 = vld [vmem:[%s5175_s3 + $0x30] sm:$0xff]   ;;  %p4892_p12 = scmp.ne.s32.totalorder %s6370_s18, %s4891_s16  ;;  %s4961_s2 = smov [#allocation3]  }
  0x27   : > { %4514 = vmatprep.subr.bf16.mxu0 %v4955_v4  ;;  %v3928_v63 = vunpack.c.l.bf16 %v4044_v61  ;;  %v3929_v1 = vunpack.c.h.bf16 %v4044_v61  ;;  %v3932_v2 = vunpack.c.l.bf16 %v4045_v0  ;;  %v3933_v6 = vunpack.c.h.bf16 %v4045_v0  ;;  %v4048_v15 = vld [vmem:[%s5175_s3 + $0x38] sm:$0xff]   ;;  %v4050_v21 = vld [vmem:[%s5175_s3 + $0x48] sm:$0xff]   ;;  %v4051_v24 = vld [vmem:[%s5175_s3 + $0x50] sm:$0xff]  }
  0x28   : > { %v3936_v9 = vunpack.c.l.bf16 %v4046_v3  ;;  %v3937_v12 = vunpack.c.h.bf16 %v4046_v3  ;;  %v3940_v13 = vunpack.c.l.bf16 %v4047_v10  ;;  %v3941_v16 = vunpack.c.h.bf16 %v4047_v10  ;;  %v4052_v27 = vld [vmem:[%s5175_s3 + $0x58] sm:$0xff]   ;;  %v4054_v33 = vld [vmem:[%s5175_s3 + $0x68] sm:$0xff]   ;;  %v1110_v43 = vld [vmem:[%s6420_s7] sm:$0xff]  ;;  %p4893_p13 = pnand %p4892_p12, %p5073_p5 }
  0x29   : > { %v3944_v17 = vunpack.c.l.bf16 %v4048_v15  ;;  %v3952_v23 = vunpack.c.l.bf16 %v4050_v21  ;;  %v3956_v26 = vunpack.c.l.bf16 %v4051_v24  ;;  %v3957_v28 = vunpack.c.h.bf16 %v4051_v24  ;;  %v1111_v44 = vld [vmem:[%s6420_s7 + $0x8] sm:$0xff]  ;;  %v1112_v46 = vld [vmem:[%s6420_s7 + $0x10] sm:$0xff]  ;;  %v1113_v47 = vld [vmem:[%s6420_s7 + $0x18] sm:$0xff] }
  0x2a   : > { %4516 = vmatpush3.bf16.msra.mxu0 %v5113_v11  ;;  %v3960_v29 = vunpack.c.l.bf16 %v4052_v27  ;;  %v3969_v37 = vunpack.c.h.bf16 %v4054_v33  ;;  %v649_v55 = vlaneseq  ;;  %p4894_p0 = pneg %p4893_p13 }
  0x2b   : > { %4517 = vmatprep.subr.bf16.mxu0 %v4955_v4 }
  0x2e   : > { %4519 = vmatpush3.bf16.msra.mxu0 %v5126_v14 }
  0x2f   : > { %4520 = vmatprep.subr.bf16.mxu0 %v4955_v4 }
  0x31   : > { %4249 = vmatmul.mubr.msk.f32.vlgmr.msra.gmra.mrb[0].mxu0 %vm492_vm1, %v483_v18 }
  0x32   : > { %4522 = vmatpush3.bf16.msra.mxu0 %v4521_v19  ;;  %4267 = vmatprep.mubr.msk.f32.mxu0 %vm4956_vm0, %v4957_v7  ;;  %v3945_v19 = vunpack.c.h.bf16 %v4048_v15 }
  0x33   : > { %4523 = vmatprep.subr.bf16.mxu0 %v4955_v4 }
  0x36   : > { %4525 = vmatpush3.bf16.msra.mxu0 %v4524_v22 }
  0x37   : > { %4526 = vmatprep.subr.bf16.mxu0 %v4955_v4 }
  0x3a   : > { %4528 = vmatpush3.bf16.msra.mxu0 %v4527_v25  ;;  %v3953_v25 = vunpack.c.h.bf16 %v4050_v21 }
  0x3b   : > { %4529 = vmatprep.subr.bf16.mxu0 %v4955_v4 }
  0x3e   : > { %4531 = vmatpush3.bf16.msra.mxu0 %v4530_v30  ;;  %v4053_v30 = vld [vmem:[%s5175_s3 + $0x60] sm:$0xff]  }
  0x3f   : > { %4533 = vmatprep.subr.bf16.mxu0 %v4532_v31  ;;  %v3964_v32 = vunpack.c.l.bf16 %v4053_v30  ;;  %v3965_v34 = vunpack.c.h.bf16 %v4053_v30 }
  0x41   : > { %4268 = vmatmul.mubr.msk.f32.vlgmr.msra.gmra.mrb[2].mxu0 %vm492_vm1, %v483_v18  ;;  %v4049_v18 = vld [vmem:[%s5175_s3 + $0x40] sm:$0xff]  }
  0x42   : > { %4535 = vmatpush3.bf16.msra.mxu0 %v4532_v31  ;;  %4302 = vmatprep.mubr.f32.mxu0 %v3916_v35  ;;  %v3948_v20 = vunpack.c.l.bf16 %v4049_v18  ;;  %v3949_v22 = vunpack.c.h.bf16 %v4049_v18  ;;  %v3961_v31 = vunpack.c.h.bf16 %v4052_v27  ;;  %v3968_v35 = vunpack.c.l.bf16 %v4054_v33 }
  0x43   : > { %4537 = vmatprep.subr.bf16.mxu0 %v4536_v36 }
  0x46   : > { %4539 = vmatpush3.bf16.msra.mxu0 %v4536_v36  ;;  %v4055_v36 = vld [vmem:[%s5175_s3 + $0x70] sm:$0xff]  }
  0x47   : > { %4541 = vmatprep.subr.bf16.mxu0 %v4540_v39  ;;  %v3972_v38 = vunpack.c.l.bf16 %v4055_v36  ;;  %v3973_v40 = vunpack.c.h.bf16 %v4055_v36 }
  0x4a   : > { %4543 = vmatpush3.bf16.msra.mxu0 %v4540_v39  ;;  %v4056_v39 = vld [vmem:[%s5175_s3 + $0x78] sm:$0xff]  }
  0x4b   : > { %4545 = vmatprep.subr.bf16.mxu0 %v4544_v42  ;;  %v3976_v41 = vunpack.c.l.bf16 %v4056_v39 }
  0x4e   : > { %4547 = vmatpush3.bf16.msra.mxu0 %v4544_v42  ;;  %v3977_v42 = vunpack.c.h.bf16 %v4056_v39 }
  0x4f   : > { %4549 = vmatprep.subr.bf16.mxu0 %v4548_v45 }
  0x52   : > { %4551 = vmatpush3.bf16.msra.mxu0 %v4548_v45  ;;  %v4564_v45 = vpack.c.bf16 %v1111_v44, %v1110_v43 }
  0x53   : > { %4553 = vmatprep.subr.bf16.mxu0 %v4552_v48 }
  0x54   : > { %4565 = vmatprep.subr.bf16.mxu1 %v4564_v45 }
  0x55   : > { %4567 = vmatpush3.bf16.msra.mxu1 %v4564_v45 }
  0x56   : > { %4555 = vmatpush3.bf16.msra.mxu0 %v4552_v48  ;;  %v4568_v48 = vpack.c.bf16 %v1113_v47, %v1112_v46 }
  0x57   : > { %4557 = vmatprep.subr.bf16.mxu0 %v4556_v51 }
  0x58   : > { %4569 = vmatprep.subr.bf16.mxu1 %v4568_v48 }
  0x59   : > { %4571 = vmatpush3.bf16.msra.mxu1 %v4568_v48 }
  0x5a   : > { %4559 = vmatpush3.bf16.msra.mxu0 %v4556_v51  ;;  %4573 = vmatprep.subr.bf16.mxu1 %v5093_v5 }
  0x5b   : > { %4561 = vmatprep.subr.bf16.mxu0 %v4560_v54 }
  0x5e   : > { %4563 = vmatpush3.bf16.msra.mxu0 %v4560_v54  ;;  %v647_v54 = vunpack.c.l.s4 %v4958_v53 }
  0x5f   : > { %4600 = vmatprep.subr.bf16.mxu0 %v4955_v4 }
  0x61   : > { %4303 = vmatmul.mubr.f32.vlgmr.msra.gmra.mrb[4].mxu0 %v3917_v56  ;;  %v648_v56 = vunpack.c.0.s8 %v647_v54 }
  0x62   : > { %4305 = vmatprep.mubr.f32.mxu0 %v3920_v57  ;;  %v5256_v57 = vshrl.u32 %v649_v55, 7 }
  0x64   : > { %v651_v58 = vsub.s32 %v648_v56, %v5256_v57 }
  0x65   : > { %4306 = vmatmul.mubr.f32.gmra.mrb[6].mxu0 %v3921_v59 }
  0x66   : > { %4308 = vmatprep.mubr.f32.mxu0 %v3924_v60 }
  0x69   : > { %4309 = vmatmul.mubr.f32.gmra.mrb[8].mxu0 %v3925_v62  ;;  %v5260_v62 = vsub.s32 0, %v5256_v57 }
  0x6a   : > { %4311 = vmatprep.mubr.f32.mxu0 %v3928_v63 }
  0x6d   : > { %4312 = vmatmul.mubr.f32.gmra.mrb[10].mxu0 %v3929_v1 }
  0x6e   : > { %4314 = vmatprep.mubr.f32.mxu0 %v3932_v2  ;;  %v5268_v2 = vld [vmem:[%s6419_s6] ss:$0 sm:$0xff] }
  0x71   : > { %4315 = vmatmul.mubr.f32.gmra.mrb[12].mxu0 %v3933_v6 }
  0x72   : > { %4317 = vmatprep.mubr.f32.mxu0 %v3936_v9 }
  0x75   : > { %4318 = vmatmul.mubr.f32.gmra.mrb[14].mxu0 %v3937_v12 }
  0x76   : > { %4320 = vmatprep.mubr.f32.mxu0 %v3940_v13 }
  0x79   : > { %4321 = vmatmul.mubr.f32.gmra.mrb[16].mxu0 %v3941_v16 }
  0x7a   : > { %4323 = vmatprep.mubr.f32.mxu0 %v3944_v17 }
  0x7d   : > { %4324 = vmatmul.mubr.f32.gmra.mrb[18].mxu0 %v3945_v19 }
  0x7e   : > { %4326 = vmatprep.mubr.f32.mxu0 %v3948_v20 }
  0x81   : > { %4327 = vmatmul.mubr.f32.gmra.mrb[20].mxu0 %v3949_v22 }
  0x82   : > { %4329 = vmatprep.mubr.f32.mxu0 %v3952_v23 }
  0x85   : > { %4330 = vmatmul.mubr.f32.gmra.mrb[22].mxu0 %v3953_v25 }
  0x86   : > { %4332 = vmatprep.mubr.f32.mxu0 %v3956_v26 }
  0x89   : > { %4333 = vmatmul.mubr.f32.gmra.mrb[24].mxu0 %v3957_v28 }
  0x8a   : > { %4335 = vmatprep.mubr.f32.mxu0 %v3960_v29 }
  0x8d   : > { %4336 = vmatmul.mubr.f32.gmra.mrb[26].mxu0 %v3961_v31 }
  0x8e   : > { %4338 = vmatprep.mubr.f32.mxu0 %v3964_v32 }
  0x91   : > { %4339 = vmatmul.mubr.f32.gmra.mrb[28].mxu0 %v3965_v34 }
  0x92   : > { %4341 = vmatprep.mubr.f32.mxu0 %v3968_v35 }
  0x95   : > { %4342 = vmatmul.mubr.f32.gmra.mrb[30].mxu0 %v3969_v37 }
  0x96   : > { %4344 = vmatprep.mubr.f32.mxu0 %v3972_v38 }
  0x99   : > { %4345 = vmatmul.mubr.f32.gmra.mrb[32].mxu0 %v3973_v40 }
  0x9a   : > { %4347 = vmatprep.mubr.f32.mxu0 %v3976_v41 }
  0x9d   : > { %4348 = vmatmul.mubr.f32.gmra.mrb[34].mxu0 %v3977_v42 }
  0x9e   : > { %4505 = vmatprep.mubr.msk.f32.mxu0 %vm4956_vm0, %v4957_v7 }
 0x104   : > { %v5253_v49 = vpop.f32.mrb[0].mxu0 }
 0x105   : > { %6445 = vst [vmem:[#allocation8_spill] sm:$0xff] %v5253_v49  ;;  %v4250_v50 = vpop.f32.mrb[1].mxu0 }
 0x114   : > { %v640_v51 = vpop.f32.mrb[2].mxu0 }
 0x115   : > { %v4269_v52 = vpop.f32.mrb[3].mxu0  ;;  %v652_v59 = vrot.slane %v640_v51, %v651_v58  ;;  %v645_v9 = vcombine.high %v640_v51, %v640_v51 }
 0x117   : > { %v660_v60 = vcombine.high %v652_v59, %v652_v59  ;;  %v668_v61 = vrot.slane %v652_v59, %v651_v58  ;;  %v659_v20 = vrot.slane %v645_v9, %v651_v58 }
 0x119   : > { %v682_v63 = vrot.slane %v660_v60, %v651_v58  ;;  %v5263_v0 = vrot.slane %v668_v61, %v5260_v62  ;;  %v690_v12 = vcombine.high %v668_v61, %v668_v61  ;;  %v661_v31 = vcombine.high %v659_v20, %v659_v20 }
 0x11a   : > { %v675_v34 = vrot.slane %v659_v20, %v651_v58 }
 0x11b   : > { %v5273_v13 = vrot.slane %v682_v63, %v5260_v62  ;;  %v692_v23 = vcombine.high %v682_v63, %v682_v63  ;;  %v5280_v24 = vrot.slane %v690_v12, %v5260_v62  ;;  %v689_v43 = vrot.slane %v661_v31, %v651_v58 }
 0x11c   : > { %v5301_v44 = vrot.slane %v675_v34, %v5260_v62  ;;  %v691_v53 = vcombine.high %v675_v34, %v675_v34 }
 0x11d   : > { %v5291_v37 = vrot.slane %v692_v23, %v5260_v62  ;;  %v5313_v58 = vrot.slane %v689_v43, %v5260_v62 }
 0x134   : > { %v4304_v1 = vpop.f32.mrb[4].mxu0 }
 0x135   : > { %v886_v3 = vadd.f32 %v4304_v1, %v5263_v0  ;;  %v880_v6 = vpop.f32.mrb[5].mxu0 }
 0x136   : > { %v881_v10 = vadd.f32 %v880_v6, %v5263_v0 }
 0x137   : > { %v1047_v15 = vadd.f32 %v5268_v2, %v886_v3  ;;  %v693_v3 = vcombine.high %v689_v43, %v689_v43 }
 0x138   : > { %v4307_v16 = vpop.f32.mrb[6].mxu0  ;;  %v1046_v17 = vadd.f32 %v5268_v2, %v881_v10  ;;  %v5324_v10 = vrot.slane %v691_v53, %v5260_v62 }
 0x139   : > { %v896_v18 = vadd.f32 %v4307_v16, %v5273_v13  ;;  %v890_v19 = vpop.f32.mrb[7].mxu0  ;;  %v1079_v25 = vmax.f32 %v1047_v15, 0.0 }
 0x13a   : > { %v891_v21 = vadd.f32 %v890_v19, %v5273_v13  ;;  %v1078_v22 = vmax.f32 %v1046_v17, 0.0 }
 0x13b   : > { %v1049_v26 = vadd.f32 %v5268_v2, %v896_v18 }
 0x13c   : > { %v1048_v27 = vadd.f32 %v5268_v2, %v891_v21  ;;  %v4310_v28 = vpop.f32.mrb[8].mxu0  ;;  %4358 = vmatprep.mubr.msk.f32.mxu1 %vm1121_vm2, %v1078_v22  ;;  %v5334_v21 = vrot.slane %v693_v3, %v5260_v62 }
 0x13d   : > { %v906_v29 = vadd.f32 %v4310_v28, %v5280_v24  ;;  %v900_v30 = vpop.f32.mrb[9].mxu0  ;;  %4359 = vmatmul.mubr.msk.f32.vlgmr.msra.gmra.mrb[0].mxu1 %vm1121_vm2, %v1079_v25  ;;  %v1081_v35 = vmax.f32 %v1049_v26, 0.0 }
 0x13e   : > { %v1080_v32 = vmax.f32 %v1048_v27, 0.0  ;;  %v901_v33 = vadd.f32 %v900_v30, %v5280_v24  ;;  %4575 = vmatpush3.bf16.msra.mxu1 %v5093_v5 }
 0x13f   : > { %v1051_v36 = vadd.f32 %v5268_v2, %v906_v29  ;;  %4577 = vmatprep.subr.bf16.mxu1 %v5102_v8 }
 0x140   : > { %v1050_v38 = vadd.f32 %v5268_v2, %v901_v33  ;;  %v4313_v39 = vpop.f32.mrb[10].mxu0  ;;  %4361 = vmatprep.mubr.msk.f32.mxu1 %vm1121_vm2, %v1080_v32 }
 0x141   : > { %v916_v40 = vadd.f32 %v4313_v39, %v5291_v37  ;;  %v910_v41 = vpop.f32.mrb[11].mxu0  ;;  %4362 = vmatmul.mubr.msk.f32.gmra.mrb[2].mxu1 %vm1121_vm2, %v1081_v35  ;;  %v1083_v45 = vmax.f32 %v1051_v36, 0.0 }
 0x142   : > { %v1082_v5 = vmax.f32 %v1050_v38, 0.0  ;;  %v911_v42 = vadd.f32 %v910_v41, %v5291_v37  ;;  %4579 = vmatpush3.bf16.msra.mxu1 %v5102_v8 }
 0x143   : > { %v1053_v46 = vadd.f32 %v5268_v2, %v916_v40  ;;  %4581 = vmatprep.subr.bf16.mxu1 %v5113_v11 }
 0x144   : > { %v1052_v47 = vadd.f32 %v5268_v2, %v911_v42  ;;  %v4316_v48 = vpop.f32.mrb[12].mxu0  ;;  %4364 = vmatprep.mubr.msk.f32.mxu1 %vm1121_vm2, %v1082_v5 }
 0x145   : > { %v926_v50 = vadd.f32 %v4316_v48, %v5301_v44  ;;  %v920_v51 = vpop.f32.mrb[13].mxu0  ;;  %4365 = vmatmul.mubr.msk.f32.gmra.mrb[4].mxu1 %vm1121_vm2, %v1083_v45  ;;  %v1085_v54 = vmax.f32 %v1053_v46, 0.0 }
 0x146   : > { %v1084_v8 = vmax.f32 %v1052_v47, 0.0  ;;  %v921_v52 = vadd.f32 %v920_v51, %v5301_v44  ;;  %4583 = vmatpush3.bf16.msra.mxu1 %v5113_v11 }
 0x147   : > { %v1055_v56 = vadd.f32 %v5268_v2, %v926_v50  ;;  %4585 = vmatprep.subr.bf16.mxu1 %v5126_v14 }
 0x148   : > { %v1054_v59 = vadd.f32 %v5268_v2, %v921_v52  ;;  %v4319_v60 = vpop.f32.mrb[14].mxu0  ;;  %4367 = vmatprep.mubr.msk.f32.mxu1 %vm1121_vm2, %v1084_v8 }
 0x149   : > { %v936_v61 = vadd.f32 %v4319_v60, %v5313_v58  ;;  %v930_v63 = vpop.f32.mrb[15].mxu0  ;;  %4368 = vmatmul.mubr.msk.f32.gmra.mrb[6].mxu1 %vm1121_vm2, %v1085_v54  ;;  %v1087_v6 = vmax.f32 %v1055_v56, 0.0 }
 0x14a   : > { %v1086_v11 = vmax.f32 %v1054_v59, 0.0  ;;  %v931_v1 = vadd.f32 %v930_v63, %v5313_v58  ;;  %4587 = vmatpush3.bf16.msra.mxu1 %v5126_v14 }
 0x14b   : > { %v1057_v9 = vadd.f32 %v5268_v2, %v936_v61  ;;  %4588 = vmatprep.subr.bf16.mxu1 %v4955_v4 }
 0x14c   : > { %v1056_v12 = vadd.f32 %v5268_v2, %v931_v1  ;;  %v4322_v15 = vpop.f32.mrb[16].mxu0  ;;  %4370 = vmatprep.mubr.msk.f32.mxu1 %vm1121_vm2, %v1086_v11 }
 0x14d   : > { %v946_v16 = vadd.f32 %v4322_v15, %v5324_v10  ;;  %v940_v17 = vpop.f32.mrb[17].mxu0  ;;  %4371 = vmatmul.mubr.msk.f32.gmra.mrb[8].mxu1 %vm1121_vm2, %v1087_v6  ;;  %v1089_v19 = vmax.f32 %v1057_v9, 0.0 }
 0x14e   : > { %v1088_v14 = vmax.f32 %v1056_v12, 0.0  ;;  %v941_v18 = vadd.f32 %v940_v17, %v5324_v10 }
 0x14f   : > { %v1059_v20 = vadd.f32 %v5268_v2, %v946_v16 }
 0x150   : > { %v1058_v22 = vadd.f32 %v5268_v2, %v941_v18  ;;  %v4325_v23 = vpop.f32.mrb[18].mxu0  ;;  %4373 = vmatprep.mubr.msk.f32.mxu1 %vm1121_vm2, %v1088_v14 }
 0x151   : > { %v956_v25 = vadd.f32 %v4325_v23, %v5334_v21  ;;  %v950_v26 = vpop.f32.mrb[19].mxu0  ;;  %4374 = vmatmul.mubr.msk.f32.gmra.mrb[10].mxu1 %vm1121_vm2, %v1089_v19  ;;  %v1091_v29 = vmax.f32 %v1059_v20, 0.0 }
 0x152   : > { %v1090_v27 = vmax.f32 %v1058_v22, 0.0  ;;  %v951_v28 = vadd.f32 %v950_v26, %v5334_v21 }
 0x153   : > { %v1061_v30 = vadd.f32 %v5268_v2, %v956_v25 }
 0x154   : > { %v1060_v31 = vadd.f32 %v5268_v2, %v951_v28  ;;  %v4328_v32 = vpop.f32.mrb[20].mxu0  ;;  %4376 = vmatprep.mubr.msk.f32.mxu1 %vm1121_vm2, %v1090_v27 }
 0x155   : > { %v966_v33 = vadd.f32 %v4328_v32, %v5263_v0  ;;  %v960_v34 = vpop.f32.mrb[21].mxu0  ;;  %4377 = vmatmul.mubr.msk.f32.gmra.mrb[12].mxu1 %vm1121_vm2, %v1091_v29  ;;  %v1093_v38 = vmax.f32 %v1061_v30, 0.0 }
 0x156   : > { %v1092_v35 = vmax.f32 %v1060_v31, 0.0  ;;  %v961_v36 = vadd.f32 %v960_v34, %v5263_v0 }
 0x157   : > { %v1063_v39 = vadd.f32 %v5268_v2, %v966_v33 }
 0x158   : > { %v1062_v40 = vadd.f32 %v5268_v2, %v961_v36  ;;  %v4331_v41 = vpop.f32.mrb[22].mxu0  ;;  %4379 = vmatprep.mubr.msk.f32.mxu1 %vm1121_vm2, %v1092_v35 }
 0x159   : > { %v976_v5 = vadd.f32 %v4331_v41, %v5273_v13  ;;  %v970_v42 = vpop.f32.mrb[23].mxu0  ;;  %4380 = vmatmul.mubr.msk.f32.gmra.mrb[14].mxu1 %vm1121_vm2, %v1093_v38  ;;  %v1095_v46 = vmax.f32 %v1063_v39, 0.0 }
 0x15a   : > { %v1094_v43 = vmax.f32 %v1062_v40, 0.0  ;;  %v971_v45 = vadd.f32 %v970_v42, %v5273_v13  ;;  %v4959_v42 = vmov 0  }
 0x15b   : > { %v1065_v47 = vadd.f32 %v5268_v2, %v976_v5  ;;  %4657 = vset.pattern.permute.xlu0 %v4959_v42  ;;  %4658 = vset.pattern.permute.xlu1 %v4959_v42 }
 0x15c   : > { %v1064_v0 = vadd.f32 %v5268_v2, %v971_v45  ;;  %v4334_v48 = vpop.f32.mrb[24].mxu0  ;;  %4382 = vmatprep.mubr.msk.f32.mxu1 %vm1121_vm2, %v1094_v43 }
 0x15d   : > { %v986_v50 = vadd.f32 %v4334_v48, %v5280_v24  ;;  %v980_v51 = vpop.f32.mrb[25].mxu0  ;;  %4383 = vmatmul.mubr.msk.f32.gmra.mrb[16].mxu1 %vm1121_vm2, %v1095_v46  ;;  %v1097_v53 = vmax.f32 %v1065_v47, 0.0  ;;  %v5405_v47 = vld [vmem:[%s6422_s9] ss:$0 sm:$0xff] }
 0x15e   : > { %v1096_v8 = vmax.f32 %v1064_v0, 0.0  ;;  %v981_v52 = vadd.f32 %v980_v51, %v5280_v24 }
 0x15f   : > { %v1067_v54 = vadd.f32 %v5268_v2, %v986_v50 }
 0x160   : > { %v1066_v13 = vadd.f32 %v5268_v2, %v981_v52  ;;  %v4337_v56 = vpop.f32.mrb[26].mxu0  ;;  %4385 = vmatprep.mubr.msk.f32.mxu1 %vm1121_vm2, %v1096_v8 }
 0x161   : > { %v996_v59 = vadd.f32 %v4337_v56, %v5291_v37  ;;  %v990_v60 = vpop.f32.mrb[27].mxu0  ;;  %4386 = vmatmul.mubr.msk.f32.gmra.mrb[18].mxu1 %vm1121_vm2, %v1097_v53  ;;  %v1099_v11 = vmax.f32 %v1067_v54, 0.0 }
 0x162   : > { %v1098_v61 = vmax.f32 %v1066_v13, 0.0  ;;  %v991_v63 = vadd.f32 %v990_v60, %v5291_v37 }
 0x163   : > { %v1069_v1 = vadd.f32 %v5268_v2, %v996_v59 }
 0x164   : > { %v1068_v24 = vadd.f32 %v5268_v2, %v991_v63  ;;  %v4340_v3 = vpop.f32.mrb[28].mxu0  ;;  %4388 = vmatprep.mubr.msk.f32.mxu1 %vm1121_vm2, %v1098_v61 }
 0x165   : > { %v1006_v6 = vadd.f32 %v4340_v3, %v5301_v44  ;;  %v1000_v9 = vpop.f32.mrb[29].mxu0  ;;  %4389 = vmatmul.mubr.msk.f32.gmra.mrb[20].mxu1 %vm1121_vm2, %v1099_v11  ;;  %v1101_v16 = vmax.f32 %v1069_v1, 0.0 }
 0x166   : > { %v1100_v12 = vmax.f32 %v1068_v24, 0.0  ;;  %v1001_v15 = vadd.f32 %v1000_v9, %v5301_v44 }
 0x167   : > { %v1071_v17 = vadd.f32 %v5268_v2, %v1006_v6 }
 0x168   : > { %v1070_v37 = vadd.f32 %v5268_v2, %v1001_v15  ;;  %v4343_v14 = vpop.f32.mrb[30].mxu0  ;;  %4391 = vmatprep.mubr.msk.f32.mxu1 %vm1121_vm2, %v1100_v12 }
 0x169   : > { %v1016_v18 = vadd.f32 %v4343_v14, %v5313_v58  ;;  %v1010_v19 = vpop.f32.mrb[31].mxu0  ;;  %4392 = vmatmul.mubr.msk.f32.gmra.mrb[22].mxu1 %vm1121_vm2, %v1101_v16  ;;  %v1103_v23 = vmax.f32 %v1071_v17, 0.0 }
 0x16a   : > { %v1102_v20 = vmax.f32 %v1070_v37, 0.0  ;;  %v1011_v22 = vadd.f32 %v1010_v19, %v5313_v58 }
 0x16b   : > { %v1073_v25 = vadd.f32 %v5268_v2, %v1016_v18 }
 0x16c   : > { %v1072_v44 = vadd.f32 %v5268_v2, %v1011_v22  ;;  %v4346_v26 = vpop.f32.mrb[32].mxu0  ;;  %4394 = vmatprep.mubr.msk.f32.mxu1 %vm1121_vm2, %v1102_v20 }
 0x16d   : > { %v1026_v27 = vadd.f32 %v4346_v26, %v5324_v10  ;;  %v1020_v28 = vpop.f32.mrb[33].mxu0  ;;  %4395 = vmatmul.mubr.msk.f32.gmra.mrb[24].mxu1 %vm1121_vm2, %v1103_v23  ;;  %v1105_v31 = vmax.f32 %v1073_v25, 0.0 }
 0x16e   : > { %v1104_v29 = vmax.f32 %v1072_v44, 0.0  ;;  %v1021_v30 = vadd.f32 %v1020_v28, %v5324_v10 }
 0x16f   : > { %v1075_v32 = vadd.f32 %v5268_v2, %v1026_v27 }
 0x170   : > { %v1074_v58 = vadd.f32 %v5268_v2, %v1021_v30  ;;  %v4349_v33 = vpop.f32.mrb[34].mxu0  ;;  %4397 = vmatprep.mubr.msk.f32.mxu1 %vm1121_vm2, %v1104_v29 }
 0x171   : > { %v1036_v34 = vadd.f32 %v4349_v33, %v5334_v21  ;;  %v1030_v35 = vpop.f32.mrb[35].mxu0  ;;  %4398 = vmatmul.mubr.msk.f32.gmra.mrb[26].mxu1 %vm1121_vm2, %v1105_v31  ;;  %v1107_v39 = vmax.f32 %v1075_v32, 0.0 }
 0x172   : > { %v1106_v36 = vmax.f32 %v1074_v58, 0.0  ;;  %v1031_v38 = vadd.f32 %v1030_v35, %v5334_v21  ;;  %v5398_v21 = vld [vmem:[%s6421_s8] ss:$0 sm:$0xff] }
 0x173   : > { %v1077_v40 = vadd.f32 %v5268_v2, %v1036_v34 }
 0x174   : > { %v1076_v10 = vadd.f32 %v5268_v2, %v1031_v38  ;;  %4400 = vmatprep.mubr.msk.f32.mxu1 %vm1121_vm2, %v1106_v36 }
 0x175   : > { %4401 = vmatmul.mubr.msk.f32.gmra.mrb[28].mxu1 %vm1121_vm2, %v1107_v39  ;;  %v1109_v5 = vmax.f32 %v1077_v40, 0.0 }
 0x176   : > { %v1108_v41 = vmax.f32 %v1076_v10, 0.0 }
 0x178   : > { %4403 = vmatprep.mubr.msk.f32.mxu1 %vm1121_vm2, %v1108_v41 }
 0x179   : > { %4404 = vmatmul.mubr.msk.f32.gmra.mrb[30].mxu1 %vm1121_vm2, %v1109_v5 }
 0x210   : > { %v4360_v43 = vpop.f32.mrb[0].mxu1 }
 0x211   : > { %v1290_v2 = vadd.f32 %v4360_v43, %v5398_v21  ;;  %v1284_v45 = vpop.f32.mrb[1].mxu1 }
 0x212   : > { %v1285_v46 = vadd.f32 %v5398_v21, %v1284_v45 }
 0x213   : > { %v1444_v0 = vmax.f32 %v1290_v2, 0.0 }
 0x214   : > { %v1443_v48 = vmax.f32 %v1285_v46, 0.0  ;;  %v4363_v50 = vpop.f32.mrb[2].mxu1 }
 0x215   : > { %v1300_v51 = vadd.f32 %v4363_v50, %v5398_v21  ;;  %v1294_v8 = vpop.f32.mrb[3].mxu1  ;;  %v1483_v52 = vmul.f32 %v5405_v47, %v1444_v0 }
 0x216   : > { %v1295_v53 = vadd.f32 %v5398_v21, %v1294_v8  ;;  %v1482_v56 = vmul.f32 %v5405_v47, %v1443_v48 }
 0x217   : > { %v1446_v54 = vmax.f32 %v1300_v51, 0.0  ;;  %v1517_v13 = vsel %vm1121_vm2, %v1483_v52, 0.0 }
 0x218   : > { %v1445_v59 = vmax.f32 %v1295_v53, 0.0  ;;  %1518 = vadd.xlane.f32.xlu0 %v1517_v13  ;;  %v4366_v60 = vpop.f32.mrb[4].mxu1  ;;  %v1514_v6 = vsel %vm1121_vm2, %v1482_v56, 0.0 }
 0x219   : > { %v1310_v61 = vadd.f32 %v4366_v60, %v5398_v21  ;;  %v1304_v63 = vpop.f32.mrb[5].mxu1  ;;  %v1485_v11 = vmul.f32 %v5405_v47, %v1446_v54 }
 0x21a   : > { %v1305_v1 = vadd.f32 %v5398_v21, %v1304_v63  ;;  %v1484_v9 = vmul.f32 %v5405_v47, %v1445_v59 }
 0x21b   : > { %v1448_v24 = vmax.f32 %v1310_v61, 0.0  ;;  %v1523_v3 = vsel %vm1121_vm2, %v1485_v11, 0.0 }
 0x21c   : > { %v1447_v12 = vmax.f32 %v1305_v1, 0.0  ;;  %1524 = vadd.xlane.f32.xlu1 %v1523_v3  ;;  %v4369_v15 = vpop.f32.mrb[6].mxu1  ;;  %1515 = vadd.xlane.f32.xlu0 %v1514_v6  ;;  %v1520_v19 = vsel %vm1121_vm2, %v1484_v9, 0.0 }
 0x21d   : > { %v1320_v16 = vadd.f32 %v4369_v15, %v5398_v21  ;;  %v1314_v17 = vpop.f32.mrb[7].mxu1  ;;  %v1487_v20 = vmul.f32 %v5405_v47, %v1448_v24 }
 0x21e   : > { %v1315_v37 = vadd.f32 %v5398_v21, %v1314_v17  ;;  %v1486_v14 = vmul.f32 %v5405_v47, %v1447_v12 }
 0x21f   : > { %v1450_v18 = vmax.f32 %v1320_v16, 0.0  ;;  %v1529_v30 = vsel %vm1121_vm2, %v1487_v20, 0.0 }
 0x220   : > { %v1449_v22 = vmax.f32 %v1315_v37, 0.0  ;;  %v4372_v23 = vpop.f32.mrb[8].mxu1  ;;  %1521 = vadd.xlane.f32.xlu1 %v1520_v19  ;;  %v1526_v25 = vsel %vm1121_vm2, %v1486_v14, 0.0 }
 0x221   : > { %v1330_v44 = vadd.f32 %v4372_v23, %v5398_v21  ;;  %v1324_v26 = vpop.f32.mrb[9].mxu1  ;;  %1527 = vadd.xlane.f32.xlu0 %v1526_v25  ;;  %v1489_v31 = vmul.f32 %v5405_v47, %v1450_v18 }
 0x222   : > { %v1325_v27 = vadd.f32 %v5398_v21, %v1324_v26  ;;  %v1488_v28 = vmul.f32 %v5405_v47, %v1449_v22 }
 0x223   : > { %v1452_v29 = vmax.f32 %v1330_v44, 0.0  ;;  %v1535_v40 = vsel %vm1121_vm2, %v1489_v31, 0.0 }
 0x224   : > { %v1451_v32 = vmax.f32 %v1325_v27, 0.0  ;;  %v4375_v58 = vpop.f32.mrb[10].mxu1  ;;  %1530 = vadd.xlane.f32.xlu1 %v1529_v30  ;;  %v1532_v33 = vsel %vm1121_vm2, %v1488_v28, 0.0 }
 0x225   : > { %v1340_v34 = vadd.f32 %v4375_v58, %v5398_v21  ;;  %v1334_v35 = vpop.f32.mrb[11].mxu1  ;;  %1533 = vadd.xlane.f32.xlu0 %v1532_v33  ;;  %v1491_v10 = vmul.f32 %v5405_v47, %v1452_v29 }
 0x226   : > { %v1335_v36 = vadd.f32 %v5398_v21, %v1334_v35  ;;  %v1490_v38 = vmul.f32 %v5405_v47, %v1451_v32 }
 0x227   : > { %v1454_v39 = vmax.f32 %v1340_v34, 0.0  ;;  %v1541_v48 = vsel %vm1121_vm2, %v1491_v10, 0.0 }
 0x228   : > { %v1453_v41 = vmax.f32 %v1335_v36, 0.0  ;;  %v4378_v5 = vpop.f32.mrb[12].mxu1  ;;  %1536 = vadd.xlane.f32.xlu1 %v1535_v40  ;;  %v1538_v42 = vsel %vm1121_vm2, %v1490_v38, 0.0 }
 0x229   : > { %v1350_v43 = vadd.f32 %v4378_v5, %v5398_v21  ;;  %v1344_v2 = vpop.f32.mrb[13].mxu1  ;;  %1539 = vadd.xlane.f32.xlu0 %v1538_v42  ;;  %v1493_v50 = vmul.f32 %v5405_v47, %v1454_v39 }
 0x22a   : > { %v1345_v45 = vadd.f32 %v5398_v21, %v1344_v2  ;;  %v1492_v46 = vmul.f32 %v5405_v47, %v1453_v41 }
 0x22b   : > { %v1456_v0 = vmax.f32 %v1350_v43, 0.0  ;;  %v1547_v60 = vsel %vm1121_vm2, %v1493_v50, 0.0 }
 0x22c   : > { %v1455_v51 = vmax.f32 %v1345_v45, 0.0  ;;  %v4381_v8 = vpop.f32.mrb[14].mxu1  ;;  %1542 = vadd.xlane.f32.xlu1 %v1541_v48  ;;  %v1544_v52 = vsel %vm1121_vm2, %v1492_v46, 0.0 }
 0x22d   : > { %v1360_v53 = vadd.f32 %v4381_v8, %v5398_v21  ;;  %v1354_v54 = vpop.f32.mrb[15].mxu1  ;;  %1545 = vadd.xlane.f32.xlu0 %v1544_v52  ;;  %v1495_v61 = vmul.f32 %v5405_v47, %v1456_v0 }
 0x22e   : > { %v1355_v13 = vadd.f32 %v5398_v21, %v1354_v54  ;;  %v1494_v56 = vmul.f32 %v5405_v47, %v1455_v51 }
 0x22f   : > { %v1458_v59 = vmax.f32 %v1360_v53, 0.0  ;;  %v1553_v15 = vsel %vm1121_vm2, %v1495_v61, 0.0 }
 0x230   : > { %v1457_v63 = vmax.f32 %v1355_v13, 0.0  ;;  %v4384_v11 = vpop.f32.mrb[16].mxu1  ;;  %1548 = vadd.xlane.f32.xlu1 %v1547_v60  ;;  %v1550_v1 = vsel %vm1121_vm2, %v1494_v56, 0.0  ;;  %v3840_v60 = vld [vmem:[#allocation2] ss:$0 sm:$0xff] }
 0x231   : > { %v1370_v24 = vadd.f32 %v4384_v11, %v5398_v21  ;;  %v1364_v3 = vpop.f32.mrb[17].mxu1  ;;  %1551 = vadd.xlane.f32.xlu0 %v1550_v1  ;;  %v1497_v16 = vmul.f32 %v5405_v47, %v1458_v59 }
 0x232   : > { %v1365_v6 = vadd.f32 %v5398_v21, %v1364_v3  ;;  %v1496_v9 = vmul.f32 %v5405_v47, %v1457_v63 }
 0x233   : > { %v1460_v12 = vmax.f32 %v1370_v24, 0.0  ;;  %v1559_v44 = vsel %vm1121_vm2, %v1497_v16, 0.0 }
 0x234   : > { %v1459_v17 = vmax.f32 %v1365_v6, 0.0  ;;  %v4387_v37 = vpop.f32.mrb[18].mxu1  ;;  %1554 = vadd.xlane.f32.xlu1 %v1553_v15  ;;  %v1556_v14 = vsel %vm1121_vm2, %v1496_v9, 0.0 }
 0x235   : > { %v1380_v18 = vadd.f32 %v4387_v37, %v5398_v21  ;;  %v1374_v19 = vpop.f32.mrb[19].mxu1  ;;  %1557 = vadd.xlane.f32.xlu0 %v1556_v14  ;;  %v5456_v20 = vmul.f32 %v5405_v47, %v1460_v12 }
 0x236   : > { %v1375_v22 = vadd.f32 %v5398_v21, %v1374_v19  ;;  %v5460_v23 = vmul.f32 %v5405_v47, %v1459_v17 }
 0x237   : > { %v1462_v25 = vmax.f32 %v1380_v18, 0.0 }
 0x238   : > { %v1461_v26 = vmax.f32 %v1375_v22, 0.0  ;;  %v4390_v27 = vpop.f32.mrb[20].mxu1  ;;  %1560 = vadd.xlane.f32.xlu1 %v1559_v44 }
 0x239   : > { %v1390_v28 = vadd.f32 %v4390_v27, %v5398_v21  ;;  %v1384_v29 = vpop.f32.mrb[21].mxu1  ;;  %v5465_v30 = vmul.f32 %v5405_v47, %v1462_v25 }
 0x23a   : > { %v1385_v31 = vadd.f32 %v5398_v21, %v1384_v29  ;;  %v5469_v32 = vmul.f32 %v5405_v47, %v1461_v26 }
 0x23b   : > { %v1464_v58 = vmax.f32 %v1390_v28, 0.0 }
 0x23c   : > { %v1463_v33 = vmax.f32 %v1385_v31, 0.0  ;;  %v4393_v34 = vpop.f32.mrb[22].mxu1 }
 0x23d   : > { %v1400_v35 = vadd.f32 %v4393_v34, %v5398_v21  ;;  %v1394_v36 = vpop.f32.mrb[23].mxu1  ;;  %v5473_v38 = vmul.f32 %v5405_v47, %v1464_v58 }
 0x23e   : > { %v1395_v39 = vadd.f32 %v5398_v21, %v1394_v36  ;;  %v5477_v40 = vmul.f32 %v5405_v47, %v1463_v33 }
 0x23f   : > { %v1466_v10 = vmax.f32 %v1400_v35, 0.0 }
 0x240   : > { %v1465_v41 = vmax.f32 %v1395_v39, 0.0  ;;  %v4396_v5 = vpop.f32.mrb[24].mxu1 }
 0x241   : > { %v1410_v42 = vadd.f32 %v4396_v5, %v5398_v21  ;;  %v1404_v43 = vpop.f32.mrb[25].mxu1  ;;  %v5481_v2 = vmul.f32 %v5405_v47, %v1466_v10 }
 0x242   : > { %v1405_v45 = vadd.f32 %v5398_v21, %v1404_v43  ;;  %v5485_v46 = vmul.f32 %v5405_v47, %v1465_v41 }
 0x243   : > { %v1468_v0 = vmax.f32 %v1410_v42, 0.0 }
 0x244   : > { %v1467_v48 = vmax.f32 %v1405_v45, 0.0  ;;  %v4399_v50 = vpop.f32.mrb[26].mxu1 }
 0x245   : > { %v1420_v51 = vadd.f32 %v4399_v50, %v5398_v21  ;;  %v1414_v8 = vpop.f32.mrb[27].mxu1  ;;  %v5489_v52 = vmul.f32 %v5405_v47, %v1468_v0 }
 0x246   : > { %v1415_v53 = vadd.f32 %v5398_v21, %v1414_v8  ;;  %v5493_v54 = vmul.f32 %v5405_v47, %v1467_v48 }
 0x247   : > { %v1470_v13 = vmax.f32 %v1420_v51, 0.0 }
 0x248   : > { %v1469_v56 = vmax.f32 %v1415_v53, 0.0  ;;  %v4402_v59 = vpop.f32.mrb[28].mxu1 }
 0x249   : > { %v1430_v61 = vadd.f32 %v4402_v59, %v5398_v21  ;;  %v1424_v63 = vpop.f32.mrb[29].mxu1  ;;  %v5497_v11 = vmul.f32 %v5405_v47, %v1470_v13 }
 0x24a   : > { %v1425_v1 = vadd.f32 %v5398_v21, %v1424_v63  ;;  %v5501_v24 = vmul.f32 %v5405_v47, %v1469_v56 }
 0x24b   : > { %v1472_v3 = vmax.f32 %v1430_v61, 0.0  ;;  %1617 = vperm.xlu0 %4657, %v3840_v60  }
 0x24c   : > { %v1471_v6 = vmax.f32 %v1425_v1, 0.0  ;;  %v4405_v9 = vpop.f32.mrb[30].mxu1 }
 0x24d   : > { %v1440_v12 = vadd.f32 %v4405_v9, %v5398_v21  ;;  %v1434_v15 = vpop.f32.mrb[31].mxu1  ;;  %v5505_v16 = vmul.f32 %v5405_v47, %v1472_v3 }
 0x24e   : > { %v1435_v17 = vadd.f32 %v5398_v21, %v1434_v15  ;;  %v5509_v37 = vmul.f32 %v5405_v47, %v1471_v6 }
 0x24f   : > { %v1474_v14 = vmax.f32 %v1440_v12, 0.0 }
 0x250   : > { %v1473_v18 = vmax.f32 %v1435_v17, 0.0 }
 0x251   : > { %v5512_v19 = vmul.f32 %v5405_v47, %v1474_v14 }
 0x252   : > { %v5515_v22 = vmul.f32 %v5405_v47, %v1473_v18 }
 0x2a5   : > { %v1519_v25 = vpop.xlane.xlu0 %1518 }
 0x2a9   : > { %v1516_v44 = vpop.xlane.xlu0 %1515  ;;  %v1525_v26 = vpop.xlane.xlu1 %1524 }
 0x2ad   : > { %v1522_v29 = vpop.xlane.xlu1 %1521 }
 0x2ae   : > { %v1528_v27 = vpop.xlane.xlu0 %1527 }
 0x2b1   : > { %v1531_v58 = vpop.xlane.xlu1 %1530 }
 0x2b2   : > { %v1534_v28 = vpop.xlane.xlu0 %1533 }
 0x2b5   : > { %v1537_v33 = vpop.xlane.xlu1 %1536 }
 0x2b6   : > { %v1540_v31 = vpop.xlane.xlu0 %1539 }
 0x2b9   : > { %v1543_v35 = vpop.xlane.xlu1 %1542 }
 0x2ba   : > { %v1546_v21 = vpop.xlane.xlu0 %1545 }
 0x2bd   : > { %v1549_v10 = vpop.xlane.xlu1 %1548 }
 0x2be   : > { %v1552_v34 = vpop.xlane.xlu0 %1551 }
 0x2c1   : > { %v1555_v13 = vpop.xlane.xlu1 %1554 }
 0x2c2   : > { %v1558_v36 = vpop.xlane.xlu0 %1557 }
 0x2c5   : > { %v1561_v14 = vpop.xlane.xlu1 %1560 }
 0x2ca   : > { %v5517_v39 = vpop.permute.xlu0 %1617 }
 0x2cb   : > { %v1620_v41 = vadd.f32 %v5517_v39, %v1516_v44  ;;  %v1621_v47 = vadd.f32 %v5517_v39, %v1519_v25  ;;  %v1622_v5 = vadd.f32 %v5517_v39, %v1522_v29  ;;  %v1623_v42 = vadd.f32 %v5517_v39, %v1525_v26 }
 0x2cc   : > { %v1624_v43 = vadd.f32 %v5517_v39, %v1528_v27  ;;  %v1625_v45 = vadd.f32 %v5517_v39, %v1531_v58  ;;  %v1626_v0 = vadd.f32 %v5517_v39, %v1534_v28  ;;  %v1627_v8 = vadd.f32 %v5517_v39, %v1537_v33 }
 0x2cd   : > { %v3841_v48 = vmul.f32 -1.442695, %v1620_v41  ;;  %v3842_v50 = vmul.f32 -1.442695, %v1621_v47  ;;  %v3843_v51 = vmul.f32 -1.442695, %v1622_v5  ;;  %v1628_v56 = vadd.f32 %v5517_v39, %v1540_v31 }
 0x2ce   : > { %v3844_v53 = vmul.f32 -1.442695, %v1623_v42  ;;  %v3845_v59 = vmul.f32 -1.442695, %v1624_v43  ;;  %v1629_v60 = vadd.f32 %v5517_v39, %v1543_v35  ;;  %v3846_v61 = vmul.f32 -1.442695, %v1625_v45 }
 0x2cf   : > { %4659 = vpow2.f32 %v3841_v48  ;;  %v1630_v63 = vadd.f32 %v5517_v39, %v1546_v21  ;;  %v3847_v1 = vmul.f32 -1.442695, %v1626_v0  ;;  %v1631_v3 = vadd.f32 %v5517_v39, %v1549_v10 }
 0x2d0   : > { %4661 = vpow2.f32 %v3842_v50  ;;  %v3848_v6 = vmul.f32 -1.442695, %v1627_v8  ;;  %v1632_v9 = vadd.f32 %v5517_v39, %v1552_v34  ;;  %v3849_v12 = vmul.f32 -1.442695, %v1628_v56 }
 0x2d1   : > { %4663 = vpow2.f32 %v3843_v51  ;;  %v1633_v15 = vadd.f32 %v5517_v39, %v1555_v13  ;;  %v3850_v17 = vmul.f32 -1.442695, %v1629_v60  ;;  %v1634_v18 = vadd.f32 %v5517_v39, %v1558_v36 }
 0x2d2   : > { %4665 = vpow2.f32 %v3844_v53  ;;  %v3851_v25 = vmul.f32 -1.442695, %v1630_v63  ;;  %v1635_v44 = vadd.f32 %v5517_v39, %v1561_v14  ;;  %v3852_v26 = vmul.f32 -1.442695, %v1631_v3 }
 0x2d3   : > { %4667 = vpow2.f32 %v3845_v59  ;;  %v3853_v27 = vmul.f32 -1.442695, %v1632_v9  ;;  %v3854_v28 = vmul.f32 -1.442695, %v1633_v15  ;;  %v3855_v31 = vmul.f32 -1.442695, %v1634_v18 }
 0x2d4   : > { %4669 = vpow2.f32 %v3846_v61  ;;  %v3856_v21 = vmul.f32 -1.442695, %v1635_v44  ;;  %v1877_v43 = vand.u32 127, %v649_v55 }
 0x2d5   : > { %4671 = vpow2.f32 %v3847_v1 }
 0x2d6   : > { %4673 = vpow2.f32 %v3848_v6  ;;  %v1882_v56 = vadd.s32 4294967288, %v1877_v43  ;;  %v5537_v3 = vsub.s32 %v1877_v43, %v5256_v57 }
 0x2d7   : > { %4675 = vpow2.f32 %v3849_v12 }
 0x2d8   : > { %4677 = vpow2.f32 %v3850_v17  ;;  %v5540_v12 = vsub.s32 %v1882_v56, %v5256_v57 }
 0x2d9   : > { %v4660_v29 = vpop.eup %4659  ;;  %4679 = vpow2.f32 %v3851_v25 }
 0x2da   : > { %v4662_v58 = vpop.eup %4661  ;;  %4681 = vpow2.f32 %v3852_v26  ;;  %v1748_v34 = vadd.f32 1.0, %v4660_v29 }
 0x2db   : > { %v4664_v33 = vpop.eup %4663  ;;  %4683 = vpow2.f32 %v3853_v27  ;;  %v1749_v36 = vadd.f32 1.0, %v4662_v58 }
 0x2dc   : > { %v4666_v35 = vpop.eup %4665  ;;  %4685 = vpow2.f32 %v3854_v28  ;;  %v1750_v41 = vadd.f32 1.0, %v4664_v33 }
 0x2dd   : > { %v4668_v10 = vpop.eup %4667  ;;  %4687 = vpow2.f32 %v3855_v31  ;;  %v1751_v5 = vadd.f32 1.0, %v4666_v35 }
 0x2de   : > { %v4670_v47 = vpop.eup %4669  ;;  %4689 = vpow2.f32 %v3856_v21  ;;  %v1752_v45 = vadd.f32 1.0, %v4668_v10 }
 0x2df   : > { %v4672_v42 = vpop.eup %4671  ;;  %4691 = vrcp.f32 %v1748_v34  ;;  %v1753_v48 = vadd.f32 1.0, %v4670_v47 }
 0x2e0   : > { %v4674_v0 = vpop.eup %4673  ;;  %4693 = vrcp.f32 %v1749_v36  ;;  %v1754_v51 = vadd.f32 1.0, %v4672_v42 }
 0x2e1   : > { %v4676_v50 = vpop.eup %4675  ;;  %4695 = vrcp.f32 %v1750_v41  ;;  %v1755_v53 = vadd.f32 1.0, %v4674_v0 }
 0x2e2   : > { %v4678_v8 = vpop.eup %4677  ;;  %4697 = vrcp.f32 %v1751_v5  ;;  %v1756_v59 = vadd.f32 1.0, %v4676_v50 }
 0x2e3   : > { %v4680_v13 = vpop.eup %4679  ;;  %4699 = vrcp.f32 %v1752_v45  ;;  %v1757_v61 = vadd.f32 1.0, %v4678_v8 }
 0x2e4   : > { %v4682_v60 = vpop.eup %4681  ;;  %4701 = vrcp.f32 %v1753_v48  ;;  %v1758_v55 = vadd.f32 1.0, %v4680_v13 }
 0x2e5   : > { %v4684_v63 = vpop.eup %4683  ;;  %4703 = vrcp.f32 %v1754_v51  ;;  %v1759_v6 = vadd.f32 1.0, %v4682_v60 }
 0x2e6   : > { %v4686_v1 = vpop.eup %4685  ;;  %4705 = vrcp.f32 %v1755_v53  ;;  %v1760_v15 = vadd.f32 1.0, %v4684_v63 }
 0x2e7   : > { %v4688_v9 = vpop.eup %4687  ;;  %4707 = vrcp.f32 %v1756_v59  ;;  %v1761_v14 = vadd.f32 1.0, %v4686_v1 }
 0x2e8   : > { %v4690_v17 = vpop.eup %4689  ;;  %4709 = vrcp.f32 %v1757_v61  ;;  %v1762_v25 = vadd.f32 1.0, %v4688_v9 }
 0x2e9   : > { %v5542_v18 = vpop.eup %4691  ;;  %4711 = vrcp.f32 %v1758_v55  ;;  %v1763_v26 = vadd.f32 1.0, %v4690_v17 }
 0x2ea   : > { %v5544_v44 = vpop.eup %4693  ;;  %4713 = vrcp.f32 %v1759_v6  ;;  %v1881_v27 = vrot.slane %v5542_v18, %v5537_v3 }
 0x2eb   : > { %v5548_v28 = vpop.eup %4695  ;;  %4715 = vrcp.f32 %v1760_v15  ;;  %v1886_v29 = vrot.slane %v5544_v44, %v5540_v12 }
 0x2ec   : > { %v5552_v31 = vpop.eup %4697  ;;  %4717 = vrcp.f32 %v1761_v14  ;;  %v1892_v58 = vrot.slane %v5548_v28, %v5537_v3 }
 0x2ed   : > { %v5556_v21 = vpop.eup %4699  ;;  %4719 = vrcp.f32 %v1762_v25  ;;  %v1888_v33 = vsel %vm1887_vm3, %v1886_v29, %v1881_v27  ;;  %v1896_v34 = vrot.slane %v5552_v31, %v5540_v12 }
 0x2ee   : > { %v5561_v35 = vpop.eup %4701  ;;  %4721 = vrcp.f32 %v1763_v26  ;;  %v1901_v36 = vrot.slane %v5556_v21, %v5537_v3 }
 0x2ef   : > { %v5565_v10 = vpop.eup %4703  ;;  %v1897_v41 = vsel %vm1887_vm3, %v1896_v34, %v1892_v58  ;;  %v1905_v47 = vrot.slane %v5561_v35, %v5540_v12 }
 0x2f0   : > { %v4706_v5 = vpop.eup %4705  ;;  %v1910_v42 = vrot.slane %v5565_v10, %v5537_v3  ;;  %v2025_v43 = vsel %vm2024_vm4, %v1897_v41, %v1888_v33 }
 0x2f1   : > { %v5573_v45 = vpop.eup %4707  ;;  %v1906_v0 = vsel %vm1887_vm3, %v1905_v47, %v1901_v36  ;;  %v1914_v48 = vrot.slane %v4706_v5, %v5540_v12 }
 0x2f2   : > { %v4710_v50 = vpop.eup %4709  ;;  %v1919_v51 = vrot.slane %v5573_v45, %v5537_v3  ;;  %v2027_v8 = vsel %vm2026_vm5, %v1906_v0, %v2025_v43  ;;  %v5620_v0 = vsub.s32 1, %v5256_v57 }
 0x2f3   : > { %v5580_v53 = vpop.eup %4711  ;;  %v1915_v13 = vsel %vm1887_vm3, %v1914_v48, %v1910_v42  ;;  %v1923_v56 = vrot.slane %v4710_v50, %v5540_v12  ;;  %v5617_v42 = vsub.s32 3, %v5256_v57 }
 0x2f4   : > { %v5584_v59 = vpop.eup %4713  ;;  %v1928_v60 = vrot.slane %v5580_v53, %v5537_v3  ;;  %v2029_v61 = vsel %vm2028_vm6, %v1915_v13, %v2027_v8  ;;  %v5625_v8 = vsub.s32 4, %v5256_v57 }
 0x2f5   : > { %v5589_v63 = vpop.eup %4715  ;;  %v1924_v55 = vsel %vm1887_vm3, %v1923_v56, %v1919_v51  ;;  %v1932_v1 = vrot.slane %v5584_v59, %v5540_v12 }
 0x2f6   : > { %v5594_v6 = vpop.eup %4717  ;;  %v1937_v9 = vrot.slane %v5589_v63, %v5537_v3  ;;  %v2031_v15 = vsel %vm2030_vm7, %v1924_v55, %v2029_v61  ;;  %v5631_v55 = vsub.s32 5, %v5256_v57 }
 0x2f7   : > { %v5599_v17 = vpop.eup %4719  ;;  %v1933_v14 = vsel %vm1887_vm3, %v1932_v1, %v1928_v60  ;;  %v1941_v25 = vrot.slane %v5594_v6, %v5540_v12 }
 0x2f8   : > { %v5604_v26 = vpop.eup %4721  ;;  %v1946_v27 = vrot.slane %v5599_v17, %v5537_v3  ;;  %v2033_v29 = vsel %vm2032_vm8, %v1933_v14, %v2031_v15  ;;  %v5635_v15 = vsub.s32 2, %v5256_v57 }
 0x2f9   : > { %v1942_v58 = vsel %vm1887_vm3, %v1941_v25, %v1937_v9  ;;  %v1950_v33 = vrot.slane %v5604_v26, %v5540_v12  ;;  %v5639_v25 = vsub.s32 6, %v5256_v57 }
 0x2fa   : > { %v2035_v34 = vsel %vm2034_vm9, %v1942_v58, %v2033_v29 }
 0x2fb   : > { %v1951_v36 = vsel %vm1887_vm3, %v1950_v33, %v1946_v27 }
 0x2fc   : > { %v2037_v41 = vsel %vm2036_vm10, %v1951_v36, %v2035_v34  ;;  %v5645_v34 = vsub.s32 7, %v5256_v57 }
 0x2fd   : > { %v2048_v47 = vsel %vm2047_vm11, %v2037_v41, -inf }
 0x2fe   : > { %2049 = vmax.xlane.f32.xlu1 %v2048_v47 }
 0x38b   : > { %v2050_v43 = vpop.xlane.xlu1 %2049 }
 0x38c   : > { %v2059_v48 = vrot.slane %v2050_v43, %v5260_v62  ;;  %v2071_v13 = vrot.slane %v2050_v43, %v5617_v42  ;;  %v2063_v56 = vrot.slane %v2050_v43, %v5620_v0  ;;  %v2075_v1 = vrot.slane %v2050_v43, %v5625_v8 }
 0x38d   : > { %v2079_v27 = vrot.slane %v2050_v43, %v5631_v55  ;;  %v2067_v58 = vrot.slane %v2050_v43, %v5635_v15 }
 0x38e   : > { %v2136_v51 = vsub.f32 %v5542_v18, %v2059_v48  ;;  %v2137_v60 = vsub.f32 %v5544_v44, %v2059_v48  ;;  %v2143_v9 = vsub.f32 %v4706_v5, %v2071_v13  ;;  %v2138_v18 = vsub.f32 %v5548_v28, %v2063_v56 }
 0x38f   : > { %v2145_v44 = vsub.f32 %v4710_v50, %v2075_v1  ;;  %v2139_v33 = vsub.f32 %v5552_v31, %v2063_v56  ;;  %v2083_v28 = vrot.slane %v2050_v43, %v5639_v25  ;;  %v2147_v36 = vsub.f32 %v5584_v59, %v2079_v27 }
 0x390   : > { %v2168_v61 = vmul.f32 1.442695, %v2136_v51  ;;  %v2170_v14 = vmul.f32 1.442695, %v2137_v60  ;;  %v2182_v29 = vmul.f32 1.442695, %v2143_v9  ;;  %v2140_v47 = vsub.f32 %v5556_v21, %v2067_v58 }
 0x391   : > { %v2172_v5 = vmul.f32 1.442695, %v2138_v18  ;;  %v2186_v41 = vmul.f32 1.442695, %v2145_v44  ;;  %v2174_v50 = vmul.f32 1.442695, %v2139_v33  ;;  %v2087_v51 = vrot.slane %v2050_v43, %v5645_v34 }
 0x392   : > { %4723 = vpow2.f32 %v2168_v61  ;;  %v2149_v31 = vsub.f32 %v5594_v6, %v2083_v28  ;;  %v2190_v56 = vmul.f32 1.442695, %v2147_v36  ;;  %v2141_v57 = vsub.f32 %v5561_v35, %v2067_v58 }
 0x393   : > { %4725 = vpow2.f32 %v2170_v14  ;;  %v2176_v59 = vmul.f32 1.442695, %v2140_v47  ;;  %v2151_v21 = vsub.f32 %v5604_v26, %v2087_v51  ;;  %v2142_v43 = vsub.f32 %v5565_v10, %v2071_v13 }
 0x394   : > { %4727 = vpow2.f32 %v2182_v29  ;;  %v2194_v61 = vmul.f32 1.442695, %v2149_v31  ;;  %v2178_v6 = vmul.f32 1.442695, %v2141_v57  ;;  %v2144_v26 = vsub.f32 %v5573_v45, %v2075_v1 }
 0x395   : > { %4729 = vpow2.f32 %v2172_v5  ;;  %v2198_v35 = vmul.f32 1.442695, %v2151_v21  ;;  %v2180_v14 = vmul.f32 1.442695, %v2142_v43  ;;  %v2146_v10 = vsub.f32 %v5580_v53, %v2079_v27  ;;  %v4058_v43 = vld [vmem:[%s5730_s25 + $0x10] sm:$0xff]  }
 0x396   : > { %4731 = vpow2.f32 %v2186_v41  ;;  %v2184_v13 = vmul.f32 1.442695, %v2144_v26  ;;  %v2148_v45 = vsub.f32 %v5589_v63, %v2083_v28  ;;  %v2150_v53 = vsub.f32 %v5599_v17, %v2087_v51 }
 0x397   : > { %4733 = vpow2.f32 %v2174_v50  ;;  %v2188_v1 = vmul.f32 1.442695, %v2146_v10  ;;  %v1562_v31 = vsel %vm1121_vm2, %v5460_v23, 0.0  ;;  %v1571_v57 = vsel %vm1121_vm2, %v5465_v30, 0.0 }
 0x398   : > { %4735 = vpow2.f32 %v2190_v56  ;;  %v2192_v27 = vmul.f32 1.442695, %v2148_v45  ;;  %v2196_v63 = vmul.f32 1.442695, %v2150_v53  ;;  %v1565_v56 = vsel %vm1121_vm2, %v5456_v20, 0.0 }
 0x399   : > { %4737 = vpow2.f32 %v2176_v59  ;;  %v1577_v59 = vsel %vm1121_vm2, %v5473_v38, 0.0  ;;  %v1583_v21 = vsel %vm1121_vm2, %v5481_v2, 0.0  ;;  %v1589_v23 = vsel %vm1121_vm2, %v5489_v52, 0.0  ;;  %v3979_v2 = vld [vmem:[%s5730_s25] sm:$0xff]   ;;  %v4057_v52 = vld [vmem:[%s5730_s25 + $0x8] sm:$0xff]  }
 0x39a   : > { %4739 = vpow2.f32 %v2194_v61  ;;  %v1595_v20 = vsel %vm1121_vm2, %v5497_v11, 0.0  ;;  %v1601_v30 = vsel %vm1121_vm2, %v5505_v16, 0.0  ;;  %v1607_v38 = vsel %vm1121_vm2, %v5512_v19, 0.0 }
 0x39b   : > { %4741 = vpow2.f32 %v2178_v6  ;;  %v3980_v11 = vunpack.c.l.bf16 %v3979_v2  ;;  %v3981_v16 = vunpack.c.h.bf16 %v3979_v2  ;;  %v3984_v61 = vunpack.c.l.bf16 %v4057_v52 }
 0x39c   : > { %v5650_v48 = vpop.eup %4723  ;;  %4743 = vpow2.f32 %v2198_v35  ;;  %v3985_v19 = vunpack.c.h.bf16 %v4057_v52  ;;  %v3988_v6 = vunpack.c.l.bf16 %v4058_v43  ;;  %v4059_v35 = vld [vmem:[%s5730_s25 + $0x18] sm:$0xff]   ;;  %v3989_v26 = vunpack.c.h.bf16 %v4058_v43 }
 0x39d   : > { %2265 = vperm.xlu1 %4658, %v5650_v48   ;;  %v5656_v60 = vpop.eup %4725  ;;  %4745 = vpow2.f32 %v2180_v14  ;;  %4422 = vmatprep.mubr.msk.f32.mxu1 %vm492_vm1, %v3980_v11  ;;  %v3992_v14 = vunpack.c.l.bf16 %v4059_v35  ;;  %v3993_v45 = vunpack.c.h.bf16 %v4059_v35 }
 0x39e   : > { %v5661_v9 = vpop.eup %4727  ;;  %4747 = vpow2.f32 %v2184_v13  ;;  %4423 = vmatmul.mubr.msk.f32.vlgmr.msra.gmra.mrb[32].mxu1 %vm492_vm1, %v3981_v16  ;;  %v4060_v13 = vld [vmem:[%s5730_s25 + $0x20] sm:$0xff]  }
 0x39f   : > { %v5663_v18 = vpop.eup %4729  ;;  %2286 = vperm.xlu0 %4657, %v5661_v9   ;;  %4749 = vpow2.f32 %v2188_v1  ;;  %4425 = vmatprep.mubr.msk.f32.mxu1 %vm492_vm1, %v3984_v61  ;;  %v3996_v1 = vunpack.c.l.bf16 %v4060_v13 }
 0x3a0   : > { %v5668_v44 = vpop.eup %4731  ;;  %4751 = vpow2.f32 %v2192_v27  ;;  %v4061_v27 = vld [vmem:[%s5730_s25 + $0x28] sm:$0xff]  }
 0x3a1   : > { %2268 = vperm.xlu1 %4658, %v5656_v60   ;;  %v5670_v29 = vpop.eup %4733  ;;  %4753 = vpow2.f32 %v2196_v63  ;;  %v3997_v63 = vunpack.c.h.bf16 %v4060_v13 }
 0x3a2   : > { %v5675_v58 = vpop.eup %4735  ;;  %4426 = vmatmul.mubr.msk.f32.gmra.mrb[34].mxu1 %vm492_vm1, %v3985_v19 }
 0x3a3   : > { %2292 = vperm.xlu0 %4657, %v5668_v44   ;;  %v5677_v33 = vpop.eup %4737  ;;  %4428 = vmatprep.mubr.msk.f32.mxu1 %vm492_vm1, %v3988_v6 }
 0x3a4   : > { %v5682_v5 = vpop.eup %4739 }
 0x3a5   : > { %2271 = vperm.xlu1 %4658, %v5663_v18   ;;  %v5684_v36 = vpop.eup %4741 }
 0x3a6   : > { %v5689_v41 = vpop.eup %4743  ;;  %4429 = vmatmul.mubr.msk.f32.gmra.mrb[36].mxu1 %vm492_vm1, %v3989_v26 }
 0x3a7   : > { %2298 = vperm.xlu0 %4657, %v5675_v58   ;;  %v5691_v47 = vpop.eup %4745  ;;  %4431 = vmatprep.mubr.msk.f32.mxu1 %vm492_vm1, %v3992_v14 }
 0x3a8   : > { %v5695_v28 = vpop.eup %4747 }
 0x3a9   : > { %2274 = vperm.xlu1 %4658, %v5670_v29   ;;  %v5698_v50 = vpop.eup %4749 }
 0x3aa   : > { %v5701_v17 = vpop.eup %4751  ;;  %4432 = vmatmul.mubr.msk.f32.gmra.mrb[38].mxu1 %vm492_vm1, %v3993_v45 }
 0x3ab   : > { %2304 = vperm.xlu0 %4657, %v5682_v5   ;;  %v5704_v51 = vpop.eup %4753  ;;  %4434 = vmatprep.mubr.msk.f32.mxu1 %vm492_vm1, %v3996_v1 }
 0x3ad   : > { %2277 = vperm.xlu1 %4658, %v5677_v33  }
 0x3ae   : > { %4435 = vmatmul.mubr.msk.f32.gmra.mrb[40].mxu1 %vm492_vm1, %v3997_v63 }
 0x3af   : > { %2310 = vperm.xlu0 %4657, %v5689_v41  }
 0x3b1   : > { %2280 = vperm.xlu1 %4658, %v5684_v36  }
 0x3b5   : > { %2283 = vperm.xlu1 %4658, %v5691_v47  }
 0x3b9   : > { %2289 = vperm.xlu1 %4658, %v5695_v28  }
 0x3bd   : > { %2295 = vperm.xlu1 %4658, %v5698_v50  }
 0x3c1   : > { %2301 = vperm.xlu1 %4658, %v5701_v17  }
 0x3c5   : > { %2307 = vperm.xlu1 %4658, %v5704_v51  }
 0x3ce   : > { %1563 = vadd.xlane.f32.xlu0 %v1562_v31  ;;  %v4000_v31 = vunpack.c.l.bf16 %v4061_v27 }
 0x3d0   : > { %4437 = vmatprep.mubr.msk.f32.mxu1 %vm492_vm1, %v4000_v31 }
 0x3d2   : > { %1566 = vadd.xlane.f32.xlu0 %v1565_v56 }
 0x3d6   : > { %1572 = vadd.xlane.f32.xlu0 %v1571_v57  ;;  %v4062_v57 = vld [vmem:[%s5730_s25 + $0x30] sm:$0xff]  }
 0x3da   : > { %1578 = vadd.xlane.f32.xlu0 %v1577_v59  ;;  %v4001_v59 = vunpack.c.h.bf16 %v4061_v27 }
 0x3dc   : > { %4438 = vmatmul.mubr.msk.f32.gmra.mrb[42].mxu1 %vm492_vm1, %v4001_v59 }
 0x3de   : > { %1584 = vadd.xlane.f32.xlu0 %v1583_v21  ;;  %v4004_v21 = vunpack.c.l.bf16 %v4062_v57 }
 0x3e0   : > { %4440 = vmatprep.mubr.msk.f32.mxu1 %vm492_vm1, %v4004_v21 }
 0x3e2   : > { %1590 = vadd.xlane.f32.xlu0 %v1589_v23 }
 0x3e6   : > { %1596 = vadd.xlane.f32.xlu0 %v1595_v20  ;;  %v4063_v20 = vld [vmem:[%s5730_s25 + $0x38] sm:$0xff]  }
 0x3e7   : > { %v4008_v2 = vunpack.c.l.bf16 %v4063_v20  ;;  %v4009_v11 = vunpack.c.h.bf16 %v4063_v20 }
 0x3ea   : > { %1602 = vadd.xlane.f32.xlu0 %v1601_v30 }
 0x3ee   : > { %1608 = vadd.xlane.f32.xlu0 %v1607_v38  ;;  %v4005_v38 = vunpack.c.h.bf16 %v4062_v57 }
 0x3f0   : > { %4441 = vmatmul.mubr.msk.f32.gmra.mrb[44].mxu1 %vm492_vm1, %v4005_v38 }
 0x3f1   : > { %4443 = vmatprep.mubr.msk.f32.mxu1 %vm492_vm1, %v4008_v2 }
 0x3f4   : > { %4444 = vmatmul.mubr.msk.f32.gmra.mrb[46].mxu1 %vm492_vm1, %v4009_v11 }
 0x41c   : > { %v2266_v10 = vpop.permute.xlu1 %2265 }
 0x41d   : > { %v2363_v59 = vrot.slane %v2266_v10, %v5537_v3 }
 0x41e   : > { %v2287_v30 = vpop.permute.xlu0 %2286 }
 0x41f   : > { %v2394_v57 = vrot.slane %v2287_v30, %v5540_v12 }
 0x420   : > { %v2269_v53 = vpop.permute.xlu1 %2268 }
 0x421   : > { %v2367_v45 = vrot.slane %v2269_v53, %v5540_v12 }
 0x422   : > { %v2293_v16 = vpop.permute.xlu0 %2292 }
 0x423   : > { %v2403_v20 = vrot.slane %v2293_v16, %v5540_v12 }
 0x424   : > { %v2272_v56 = vpop.permute.xlu1 %2271 }
 0x425   : > { %v2372_v1 = vrot.slane %v2272_v56, %v5537_v3  ;;  %v2368_v56 = vsel %vm1887_vm3, %v2367_v45, %v2363_v59  ;;  %v1568_v59 = vsel %vm1121_vm2, %v5469_v32, 0.0  ;;  %v1598_v32 = vsel %vm1121_vm2, %v5509_v37, 0.0 }
 0x426   : > { %v2299_v19 = vpop.permute.xlu0 %2298 }
 0x427   : > { %v2412_v2 = vrot.slane %v2299_v19, %v5540_v12 }
 0x428   : > { %v2275_v23 = vpop.permute.xlu1 %2274 }
 0x429   : > { %v2376_v35 = vrot.slane %v2275_v23, %v5540_v12 }
 0x42a   : > { %v2305_v26 = vpop.permute.xlu0 %2304 }
 0x42b   : > { %v2377_v21 = vsel %vm1887_vm3, %v2376_v35, %v2372_v1  ;;  %v2421_v30 = vrot.slane %v2305_v26, %v5540_v12 }
 0x42c   : > { %v2278_v52 = vpop.permute.xlu1 %2277  ;;  %v2504_v10 = vsel %vm2024_vm4, %v2377_v21, %v2368_v56  ;;  %v1574_v21 = vsel %vm1121_vm2, %v5477_v40, 0.0  ;;  %v1604_v40 = vsel %vm1121_vm2, %v5515_v22, 0.0 }
 0x42d   : > { %v2381_v63 = vrot.slane %v2278_v52, %v5537_v3 }
 0x430   : > { %v2281_v61 = vpop.permute.xlu1 %2280 }
 0x431   : > { %v2385_v14 = vrot.slane %v2281_v61, %v5540_v12  ;;  %v2311_v61 = vpop.permute.xlu0 %2310 }
 0x433   : > { %v2386_v53 = vsel %vm1887_vm3, %v2385_v14, %v2381_v63 }
 0x434   : > { %v2284_v43 = vpop.permute.xlu1 %2283  ;;  %v2505_v16 = vsel %vm2026_vm5, %v2386_v53, %v2504_v10  ;;  %v1592_v53 = vsel %vm1121_vm2, %v5501_v24, 0.0 }
 0x435   : > { %v2390_v27 = vrot.slane %v2284_v43, %v5537_v3 }
 0x437   : > { %v2395_v52 = vsel %vm1887_vm3, %v2394_v57, %v2390_v27 }
 0x438   : > { %v2290_v6 = vpop.permute.xlu1 %2289  ;;  %v2506_v35 = vsel %vm2028_vm6, %v2395_v52, %v2505_v16 }
 0x439   : > { %v2399_v31 = vrot.slane %v2290_v6, %v5537_v3 }
 0x43b   : > { %v2404_v43 = vsel %vm1887_vm3, %v2403_v20, %v2399_v31  ;;  %v1586_v20 = vsel %vm1121_vm2, %v5493_v54, 0.0 }
 0x43c   : > { %v2296_v13 = vpop.permute.xlu1 %2295  ;;  %v2507_v45 = vsel %vm2030_vm7, %v2404_v43, %v2506_v35 }
 0x43d   : > { %v2408_v23 = vrot.slane %v2296_v13, %v5537_v3  ;;  %v2430_v13 = vrot.slane %v2311_v61, %v5540_v12 }
 0x43f   : > { %v2413_v6 = vsel %vm1887_vm3, %v2412_v2, %v2408_v23  ;;  %v1580_v23 = vsel %vm1121_vm2, %v5485_v46, 0.0 }
 0x440   : > { %v2302_v38 = vpop.permute.xlu1 %2301  ;;  %v2508_v1 = vsel %vm2032_vm8, %v2413_v6, %v2507_v45 }
 0x441   : > { %v2417_v11 = vrot.slane %v2302_v38, %v5537_v3 }
 0x443   : > { %v2422_v14 = vsel %vm1887_vm3, %v2421_v30, %v2417_v11 }
 0x444   : > { %v2308_v19 = vpop.permute.xlu1 %2307  ;;  %v2509_v63 = vsel %vm2034_vm9, %v2422_v14, %v2508_v1 }
 0x445   : > { %v2426_v26 = vrot.slane %v2308_v19, %v5537_v3 }
 0x447   : > { %v2431_v27 = vsel %vm1887_vm3, %v2430_v13, %v2426_v26 }
 0x448   : > { %v2510_v31 = vsel %vm2036_vm10, %v2431_v27, %v2509_v63 }
 0x449   : > { %v2520_v57 = vsel %vm2047_vm11, %v2510_v31, 0.0 }
 0x44a   : > { %2521 = vadd.xlane.f32.xlu1 %v2520_v57 }
 0x44e   : > { %1569 = vadd.xlane.f32.xlu1 %v1568_v59 }
 0x452   : > { %1575 = vadd.xlane.f32.xlu1 %v1574_v21 }
 0x456   : > { %1581 = vadd.xlane.f32.xlu1 %v1580_v23 }
 0x45a   : > { %1587 = vadd.xlane.f32.xlu1 %v1586_v20 }
 0x45b   : > { %v1564_v38 = vpop.xlane.xlu0 %1563 }
 0x45c   : > { %v1636_v22 = vadd.f32 %v5517_v39, %v1564_v38 }
 0x45e   : > { %1593 = vadd.xlane.f32.xlu1 %v1592_v53  ;;  %v3857_v6 = vmul.f32 -1.442695, %v1636_v22 }
 0x45f   : > { %v1567_v56 = vpop.xlane.xlu0 %1566 }
 0x460   : > { %v1637_v43 = vadd.f32 %v5517_v39, %v1567_v56 }
 0x462   : > { %1599 = vadd.xlane.f32.xlu1 %v1598_v32  ;;  %v3858_v45 = vmul.f32 -1.442695, %v1637_v43 }
 0x463   : > { %v1573_v46 = vpop.xlane.xlu0 %1572 }
 0x464   : > { %v1639_v16 = vadd.f32 %v5517_v39, %v1573_v46 }
 0x466   : > { %1605 = vadd.xlane.f32.xlu1 %v1604_v40  ;;  %v3860_v26 = vmul.f32 -1.442695, %v1639_v16 }
 0x467   : > { %v1579_v2 = vpop.xlane.xlu0 %1578 }
 0x468   : > { %v1641_v35 = vadd.f32 %v5517_v39, %v1579_v2 }
 0x46a   : > { %v3862_v27 = vmul.f32 -1.442695, %v1641_v35 }
 0x46b   : > { %v1585_v52 = vpop.xlane.xlu0 %1584 }
 0x46c   : > { %v1643_v1 = vadd.f32 %v5517_v39, %v1585_v52 }
 0x46e   : > { %v3864_v40 = vmul.f32 -1.442695, %v1643_v1 }
 0x46f   : > { %v1591_v30 = vpop.xlane.xlu0 %1590 }
 0x470   : > { %v1645_v63 = vadd.f32 %v5517_v39, %v1591_v30 }
 0x471   : > { %v5832_v30 = vpop.f32.mrb[32].mxu1 }
 0x472   : > { %v3866_v46 = vmul.f32 -1.442695, %v1645_v63  ;;  %v5835_v43 = vpop.f32.mrb[33].mxu1 }
 0x473   : > { %v1597_v19 = vpop.xlane.xlu0 %1596 }
 0x474   : > { %v1647_v23 = vadd.f32 %v5517_v39, %v1597_v19 }
 0x477   : > { %v1603_v38 = vpop.xlane.xlu0 %1602 }
 0x478   : > { %v1649_v1 = vadd.f32 %v5517_v39, %v1603_v38 }
 0x47b   : > { %v1609_v35 = vpop.xlane.xlu0 %1608 }
 0x4d7   : > { %v5802_v11 = vpop.xlane.xlu1 %2521 }
 0x4d8   : > { %v2531_v54 = vrot.slane %v5802_v11, %v5260_v62  ;;  %v2539_v24 = vrot.slane %v5802_v11, %v5635_v15  ;;  %v2535_v37 = vrot.slane %v5802_v11, %v5620_v0  ;;  %v2543_v61 = vrot.slane %v5802_v11, %v5617_v42 }
 0x4d9   : > { %v2547_v13 = vrot.slane %v5802_v11, %v5625_v8  ;;  %v2551_v59 = vrot.slane %v5802_v11, %v5631_v55 }
 0x4da   : > { %4755 = vrcp.f32 %v2531_v54  ;;  %v2555_v54 = vrot.slane %v5802_v11, %v5639_v25 }
 0x4db   : > { %v1570_v10 = vpop.xlane.xlu1 %1569  ;;  %4757 = vrcp.f32 %v2539_v24 }
 0x4dc   : > { %4759 = vrcp.f32 %v2535_v37  ;;  %v1638_v56 = vadd.f32 %v5517_v39, %v1570_v10 }
 0x4dd   : > { %4761 = vrcp.f32 %v2543_v61 }
 0x4de   : > { %4763 = vpow2.f32 %v3857_v6  ;;  %v3859_v10 = vmul.f32 -1.442695, %v1638_v56  ;;  %v2559_v6 = vrot.slane %v5802_v11, %v5645_v34  ;;  %v1651_v11 = vadd.f32 %v5517_v39, %v1609_v35 }
 0x4df   : > { %v1576_v14 = vpop.xlane.xlu1 %1575  ;;  %4765 = vrcp.f32 %v2547_v13 }
 0x4e0   : > { %4767 = vpow2.f32 %v3858_v45  ;;  %v1640_v52 = vadd.f32 %v5517_v39, %v1576_v14  ;;  %v3872_v38 = vmul.f32 -1.442695, %v1651_v11 }
 0x4e1   : > { %4769 = vpow2.f32 %v3860_v26 }
 0x4e2   : > { %4771 = vpow2.f32 %v3862_v27 }
 0x4e3   : > { %v1582_v31 = vpop.xlane.xlu1 %1581  ;;  %4773 = vrcp.f32 %v2551_v59 }
 0x4e4   : > { %v4756_v57 = vpop.eup %4755  ;;  %4775 = vpow2.f32 %v3864_v40 }
 0x4e5   : > { %v4758_v21 = vpop.eup %4757  ;;  %v2610_v20 = vmul.f32 %v4756_v57, %v5656_v60  ;;  %v2609_v53 = vmul.f32 %v4756_v57, %v5650_v48  ;;  %v3868_v60 = vmul.f32 -1.442695, %v1647_v23  ;;  %v1642_v48 = vadd.f32 %v5517_v39, %v1582_v31 }
 0x4e6   : > { %v4760_v32 = vpop.eup %4759  ;;  %v2615_v24 = vmul.f32 %v4758_v21, %v5677_v33  ;;  %4777 = vpow2.f32 %v3866_v46  ;;  %v3861_v33 = vmul.f32 -1.442695, %v1640_v52 }
 0x4e7   : > { %3048 = vperm.xlu0 %4657, %v2610_v20   ;;  %3043 = vperm.xlu1 %4658, %v2609_v53   ;;  %v1588_v2 = vpop.xlane.xlu1 %1587  ;;  %v2612_v37 = vmul.f32 %v4760_v32, %v5663_v18  ;;  %v4762_v22 = vpop.eup %4761  ;;  %4779 = vrcp.f32 %v2555_v54  ;;  %v3863_v19 = vmul.f32 -1.442695, %v1642_v48  ;;  %v2613_v45 = vmul.f32 %v4760_v32, %v5670_v29 }
 0x4e8   : > { %v1644_v61 = vadd.f32 %v5517_v39, %v1588_v2  ;;  %v4764_v14 = vpop.eup %4763  ;;  %4781 = vpow2.f32 %v3868_v60  ;;  %v2618_v13 = vmul.f32 %v4762_v22, %v5691_v47  ;;  %v2616_v20 = vmul.f32 %v4758_v21, %v5684_v36 }
 0x4e9   : > { %v4766_v26 = vpop.eup %4765  ;;  %4783 = vpow2.f32 %v3859_v10  ;;  %v3870_v32 = vmul.f32 -1.442695, %v1649_v1  ;;  %v1764_v54 = vadd.f32 1.0, %v4764_v14 }
 0x4ea   : > { %v3865_v27 = vmul.f32 -1.442695, %v1644_v61  ;;  %v4768_v63 = vpop.eup %4767  ;;  %4785 = vrcp.f32 %v2559_v6  ;;  %v2621_v29 = vmul.f32 %v4766_v26, %v5695_v28  ;;  %v2619_v28 = vmul.f32 %v4762_v22, %v5661_v9 }
 0x4eb   : > { %3063 = vperm.xlu0 %4657, %v2615_v24   ;;  %3053 = vperm.xlu1 %4658, %v2612_v37   ;;  %v1594_v16 = vpop.xlane.xlu1 %1593  ;;  %v4770_v59 = vpop.eup %4769  ;;  %4787 = vpow2.f32 %v3861_v33  ;;  %v1765_v21 = vadd.f32 1.0, %v4768_v63  ;;  %v2622_v35 = vmul.f32 %v4766_v26, %v5668_v44 }
 0x4ec   : > { %v1646_v18 = vadd.f32 %v5517_v39, %v1594_v16  ;;  %v4772_v47 = vpop.eup %4771  ;;  %4789 = vpow2.f32 %v3863_v19  ;;  %v5850_v24 = vpop.f32.mrb[34].mxu1  ;;  %v1767_v10 = vadd.f32 1.0, %v4770_v59 }
 0x4ed   : > { %v4774_v53 = vpop.eup %4773  ;;  %4791 = vpow2.f32 %v3865_v27  ;;  %v5852_v61 = vpop.f32.mrb[35].mxu1  ;;  %v1769_v16 = vadd.f32 1.0, %v4772_v47 }
 0x4ee   : > { %v3867_v31 = vmul.f32 -1.442695, %v1646_v18  ;;  %v4776_v46 = vpop.eup %4775  ;;  %v2624_v60 = vmul.f32 %v4774_v53, %v5698_v50  ;;  %v5854_v6 = vpop.f32.mrb[36].mxu1  ;;  %v2625_v11 = vmul.f32 %v4774_v53, %v5675_v58 }
 0x4ef   : > { %3073 = vperm.xlu0 %4657, %v2618_v13   ;;  %3058 = vperm.xlu1 %4658, %v2613_v45   ;;  %v1600_v57 = vpop.xlane.xlu1 %1599  ;;  %v1771_v9 = vadd.f32 1.0, %v4776_v46  ;;  %v5858_v33 = vpop.f32.mrb[37].mxu1 }
 0x4f0   : > { %v1648_v23 = vadd.f32 %v5517_v39, %v1600_v57  ;;  %4793 = vpow2.f32 %v3867_v31  ;;  %v4778_v52 = vpop.eup %4777  ;;  %v5860_v19 = vpop.f32.mrb[38].mxu1 }
 0x4f1   : > { %v4780_v36 = vpop.eup %4779  ;;  %v1773_v14 = vadd.f32 1.0, %v4778_v52  ;;  %v5862_v1 = vpop.f32.mrb[39].mxu1 }
 0x4f2   : > { %v3869_v40 = vmul.f32 -1.442695, %v1648_v23  ;;  %v4782_v37 = vpop.eup %4781  ;;  %v2627_v22 = vmul.f32 %v4780_v36, %v5701_v17 }
 0x4f3   : > { %3083 = vperm.xlu0 %4657, %v2621_v29   ;;  %3068 = vperm.xlu1 %4658, %v2616_v20   ;;  %v1606_v56 = vpop.xlane.xlu1 %1605  ;;  %v1775_v45 = vadd.f32 1.0, %v4782_v37  ;;  %v5866_v29 = vpop.f32.mrb[40].mxu1 }
 0x4f4   : > { %4795 = vpow2.f32 %v3869_v40  ;;  %v1650_v2 = vadd.f32 %v5517_v39, %v1606_v56  ;;  %v4784_v39 = vpop.eup %4783  ;;  %v2628_v40 = vmul.f32 %v4780_v36, %v5682_v5 }
 0x4f5   : > { %4797 = vpow2.f32 %v3870_v32  ;;  %v4786_v50 = vpop.eup %4785  ;;  %v1766_v63 = vadd.f32 1.0, %v4784_v39 }
 0x4f6   : > { %v3871_v48 = vmul.f32 -1.442695, %v1650_v2  ;;  %4799 = vpow2.f32 %v3872_v38  ;;  %v4788_v18 = vpop.eup %4787  ;;  %v2630_v26 = vmul.f32 %v4786_v50, %v5704_v51  ;;  %v5869_v51 = vpop.f32.mrb[41].mxu1  ;;  %v2631_v5 = vmul.f32 %v4786_v50, %v5689_v41 }
 0x4f7   : > { %3093 = vperm.xlu0 %4657, %v2624_v60   ;;  %3078 = vperm.xlu1 %4658, %v2619_v28   ;;  %v4790_v13 = vpop.eup %4789  ;;  %v1768_v44 = vadd.f32 1.0, %v4788_v18  ;;  %v5871_v53 = vpop.f32.mrb[42].mxu1 }
 0x4f8   : > { %4801 = vpow2.f32 %v3871_v48  ;;  %v4792_v27 = vpop.eup %4791  ;;  %v1770_v57 = vadd.f32 1.0, %v4790_v13  ;;  %v5875_v2 = vpop.f32.mrb[43].mxu1 }
 0x4f9   : > { %4803 = vrcp.f32 %v1764_v54  ;;  %v1772_v59 = vadd.f32 1.0, %v4792_v27  ;;  %v5884_v36 = vpop.f32.mrb[44].mxu1 }
 0x4fa   : > { %4805 = vrcp.f32 %v1765_v21  ;;  %v4794_v17 = vpop.eup %4793  ;;  %v5888_v48 = vpop.f32.mrb[45].mxu1 }
 0x4fb   : > { %4807 = vrcp.f32 %v1767_v10  ;;  %3103 = vperm.xlu0 %4657, %v2627_v22   ;;  %3088 = vperm.xlu1 %4658, %v2622_v35   ;;  %v1774_v47 = vadd.f32 1.0, %v4794_v17 }
 0x4fc   : > { %4809 = vrcp.f32 %v1769_v16  ;;  %v5896_v16 = vpop.f32.mrb[46].mxu1 }
 0x4fd   : > { %4811 = vrcp.f32 %v1771_v9  ;;  %v5900_v50 = vpop.f32.mrb[47].mxu1 }
 0x4fe   : > { %v4796_v31 = vpop.eup %4795  ;;  %4813 = vrcp.f32 %v1773_v14 }
 0x4ff   : > { %4815 = vrcp.f32 %v1775_v45  ;;  %3113 = vperm.xlu0 %4657, %v2630_v26   ;;  %3098 = vperm.xlu1 %4658, %v2625_v11   ;;  %v4798_v23 = vpop.eup %4797  ;;  %v1776_v32 = vadd.f32 1.0, %v4796_v31 }
 0x500   : > { %4817 = vrcp.f32 %v1766_v63  ;;  %v4800_v20 = vpop.eup %4799  ;;  %v1777_v56 = vadd.f32 1.0, %v4798_v23 }
 0x501   : > { %4819 = vrcp.f32 %v1768_v44  ;;  %v1779_v54 = vadd.f32 1.0, %v4800_v20 }
 0x502   : > { %v4802_v58 = vpop.eup %4801  ;;  %4821 = vrcp.f32 %v1770_v57 }
 0x503   : > { %v5873_v38 = vpop.eup %4803  ;;  %4823 = vrcp.f32 %v1772_v59  ;;  %v1778_v46 = vadd.f32 1.0, %v4802_v58  ;;  %3108 = vperm.xlu1 %4658, %v2628_v40  }
 0x504   : > { %v5877_v52 = vpop.eup %4805  ;;  %4825 = vrcp.f32 %v1774_v47  ;;  %v1955_v31 = vrot.slane %v5873_v38, %v5537_v3 }
 0x505   : > { %v5879_v60 = vpop.eup %4807  ;;  %4827 = vrcp.f32 %v1776_v32  ;;  %v1959_v45 = vrot.slane %v5877_v52, %v5540_v12 }
 0x506   : > { %v5882_v28 = vpop.eup %4809  ;;  %4829 = vrcp.f32 %v1778_v46  ;;  %v1968_v27 = vrot.slane %v5879_v60, %v5540_v12 }
 0x507   : > { %v5886_v21 = vpop.eup %4811  ;;  %4831 = vrcp.f32 %v1777_v56  ;;  %3118 = vperm.xlu1 %4658, %v2631_v5   ;;  %v1977_v44 = vrot.slane %v5882_v28, %v5540_v12  ;;  %v1960_v58 = vsel %vm1887_vm3, %v1959_v45, %v1955_v31 }
 0x508   : > { %v5890_v37 = vpop.eup %4813  ;;  %4833 = vrcp.f32 %v1779_v54  ;;  %v1986_v57 = vrot.slane %v5886_v21, %v5540_v12 }
 0x509   : > { %v5892_v10 = vpop.eup %4815  ;;  %v1995_v32 = vrot.slane %v5890_v37, %v5540_v12 }
 0x50a   : > { %v5894_v39 = vpop.eup %4817  ;;  %v2004_v46 = vrot.slane %v5892_v10, %v5540_v12 }
 0x50b   : > { %v5898_v41 = vpop.eup %4819  ;;  %v1964_v35 = vrot.slane %v5894_v39, %v5537_v3 }
 0x50c   : > { %v5902_v9 = vpop.eup %4821  ;;  %v1973_v14 = vrot.slane %v5898_v41, %v5537_v3 }
 0x50d   : > { %v5904_v22 = vpop.eup %4823  ;;  %v1982_v63 = vrot.slane %v5902_v9, %v5537_v3  ;;  %v1969_v59 = vsel %vm1887_vm3, %v1968_v27, %v1964_v35 }
 0x50e   : > { %v5908_v18 = vpop.eup %4825  ;;  %v1991_v26 = vrot.slane %v5904_v22, %v5537_v3  ;;  %v1978_v20 = vsel %vm1887_vm3, %v1977_v44, %v1973_v14  ;;  %v2038_v14 = vsel %vm2024_vm4, %v1969_v59, %v1960_v58 }
 0x50f   : > { %v5912_v13 = vpop.eup %4827  ;;  %v2000_v23 = vrot.slane %v5908_v18, %v5537_v3  ;;  %v1987_v56 = vsel %vm1887_vm3, %v1986_v57, %v1982_v63  ;;  %v2039_v63 = vsel %vm2026_vm5, %v1978_v20, %v2038_v14 }
 0x510   : > { %v5920_v17 = vpop.eup %4829  ;;  %v2009_v40 = vrot.slane %v5912_v13, %v5537_v3  ;;  %v1996_v5 = vsel %vm1887_vm3, %v1995_v32, %v1991_v26  ;;  %v2040_v31 = vsel %vm2028_vm6, %v1987_v56, %v2039_v63 }
 0x511   : > { %v5926_v11 = vpop.eup %4831  ;;  %v2018_v54 = vrot.slane %v5920_v17, %v5537_v3  ;;  %v2005_v27 = vsel %vm1887_vm3, %v2004_v46, %v2000_v23  ;;  %v2041_v26 = vsel %vm2030_vm7, %v1996_v5, %v2040_v31 }
 0x512   : > { %v5935_v47 = vpop.eup %4833  ;;  %v2013_v35 = vrot.slane %v5926_v11, %v5540_v12  ;;  %v2042_v32 = vsel %vm2032_vm8, %v2005_v27, %v2041_v26  ;;  %v4065_v26 = vld [vmem:[%s5730_s25 + $0x48] sm:$0xff]  }
 0x513   : > { %v2022_v45 = vrot.slane %v5935_v47, %v5540_v12 }
 0x514   : > { %v2014_v44 = vsel %vm1887_vm3, %v2013_v35, %v2009_v40 }
 0x515   : > { %v2023_v57 = vsel %vm1887_vm3, %v2022_v45, %v2018_v54  ;;  %v2043_v59 = vsel %vm2034_vm9, %v2014_v44, %v2042_v32  ;;  %v4064_v45 = vld [vmem:[%s5730_s25 + $0x40] sm:$0xff]   ;;  %v4066_v32 = vld [vmem:[%s5730_s25 + $0x50] sm:$0xff]  }
 0x516   : > { %v2044_v23 = vsel %vm2036_vm10, %v2023_v57, %v2043_v59  ;;  %v4012_v63 = vunpack.c.l.bf16 %v4064_v45  ;;  %v4013_v44 = vunpack.c.h.bf16 %v4064_v45  ;;  %v4016_v59 = vunpack.c.l.bf16 %v4065_v26  ;;  %v3398_v45 = vld [vmem:[%s6424_s11 + $0x10] sm:$0xff] }
 0x517   : > { %v2051_v58 = vsel %vm2047_vm11, %v2044_v23, -inf  ;;  %v4017_v23 = vunpack.c.h.bf16 %v4065_v26 }
 0x518   : > { %4446 = vmatprep.mubr.msk.f32.mxu1 %vm492_vm1, %v4012_v63  ;;  %v3399_v63 = vld [vmem:[%s6424_s11 + $0x18] sm:$0xff] }
 0x519   : > { %4447 = vmatmul.mubr.msk.f32.gmra.mrb[48].mxu1 %vm492_vm1, %v4013_v44 }
 0x51a   : > { %4449 = vmatprep.mubr.msk.f32.mxu1 %vm492_vm1, %v4016_v59  ;;  %v4068_v59 = vld [vmem:[%s5730_s25 + $0x60] sm:$0xff]  }
 0x51d   : > { %4450 = vmatmul.mubr.msk.f32.gmra.mrb[50].mxu1 %vm492_vm1, %v4017_v23 }
 0x51e   : > { %2052 = vmax.xlane.f32.xlu0 %v2051_v58  ;;  %v4020_v58 = vunpack.c.l.bf16 %v4066_v32 }
 0x520   : > { %4452 = vmatprep.mubr.msk.f32.mxu1 %vm492_vm1, %v4020_v58  ;;  %v4028_v58 = vunpack.c.l.bf16 %v4068_v59 }
 0x566   : > { %v3049_v46 = vpop.permute.xlu0 %3048  ;;  %v3044_v20 = vpop.permute.xlu1 %3043 }
 0x567   : > { %v3202_v40 = vmul.f32 %v5832_v30, %v3049_v46  ;;  %v3201_v56 = vmul.f32 %v3044_v20, %v5835_v43  ;;  %v3396_v46 = vld [vmem:[%s6424_s11] sm:$0xff] }
 0x569   : > { %v3234_v54 = vsel %vm1121_vm2, %v3202_v40, 0.0  ;;  %v3233_v5 = vsel %vm1121_vm2, %v3201_v56, 0.0  ;;  %v4067_v56 = vld [vmem:[%s5730_s25 + $0x58] sm:$0xff]  }
 0x56a   : > { %v5968_v35 = vadd.f32 %v3234_v54, %v3233_v5  ;;  %v3064_v14 = vpop.permute.xlu0 %3063  ;;  %v3054_v27 = vpop.permute.xlu1 %3053  ;;  %v4025_v23 = vunpack.c.h.bf16 %v4067_v56 }
 0x56b   : > { %v3203_v31 = vmul.f32 %v3054_v27, %v5852_v61  ;;  %v3397_v61 = vld [vmem:[%s6424_s11 + $0x8] sm:$0xff]  ;;  %v3205_v20 = vmul.f32 %v3064_v14, %v5858_v33  ;;  %v4021_v14 = vunpack.c.h.bf16 %v4066_v32  ;;  %v3400_v32 = vld [vmem:[%s6424_s11 + $0x20] sm:$0xff] }
 0x56c   : > { %v4589_v44 = vpack.c.bf16 %v3397_v61, %v3396_v46 }
 0x56d   : > { %v3242_v40 = vsel %vm1121_vm2, %v3203_v31, 0.0  ;;  %v4024_v31 = vunpack.c.l.bf16 %v4067_v56  ;;  %4453 = vmatmul.mubr.msk.f32.gmra.mrb[52].mxu1 %vm492_vm1, %v4021_v14  ;;  %v4029_v14 = vunpack.c.h.bf16 %v4068_v59 }
 0x56e   : > { %v3074_v57 = vpop.permute.xlu0 %3073  ;;  %v3059_v30 = vpop.permute.xlu1 %3058  ;;  %4590 = vmatpush3.bf16.msra.mxu1 %v4589_v44  ;;  %4602 = vmatpush3.bf16.msra.mxu0 %v4589_v44 }
 0x56f   : > { %v3204_v43 = vmul.f32 %v5850_v24, %v3059_v30  ;;  %v3251_v30 = vsel %vm1121_vm2, %v3205_v20, 0.0  ;;  %4591 = vmatprep.subr.bf16.mxu1 %v4955_v4  ;;  %4603 = vmatprep.subr.bf16.mxu0 %v4955_v4 }
 0x570   : > { %4455 = vmatprep.mubr.msk.f32.mxu1 %vm492_vm1, %v4024_v31  ;;  %v3236_v31 = vrot.slane %v5968_v35, 4 }
 0x571   : > { %v3243_v24 = vsel %vm1121_vm2, %v3204_v43, 0.0  ;;  %v3207_v43 = vmul.f32 %v3074_v57, %v5862_v1  ;;  %v3401_v1 = vld [vmem:[%s6424_s11 + $0x28] sm:$0xff]  ;;  %4456 = vmatmul.mubr.msk.f32.gmra.mrb[54].mxu1 %vm492_vm1, %v4025_v23 }
 0x572   : > { %v3244_v54 = vadd.f32 %v3243_v24, %v3242_v40  ;;  %v3084_v5 = vpop.permute.xlu0 %3083  ;;  %v3069_v27 = vpop.permute.xlu1 %3068  ;;  %v4592_v40 = vpack.c.bf16 %v3399_v63, %v3398_v45  ;;  %v4069_v45 = vld [vmem:[%s5730_s25 + $0x68] sm:$0xff]   ;;  %v4595_v63 = vpack.c.bf16 %v3401_v1, %v3400_v32  ;;  %4458 = vmatprep.mubr.msk.f32.mxu1 %vm492_vm1, %v4028_v58 }
 0x573   : > { %v3206_v33 = vmul.f32 %v5854_v6, %v3069_v27  ;;  %v3260_v46 = vsel %vm1121_vm2, %v3207_v43, 0.0  ;;  %v3209_v61 = vmul.f32 %v3084_v5, %v5869_v51  ;;  %v3403_v51 = vld [vmem:[%s6424_s11 + $0x38] sm:$0xff] }
 0x574   : > { %4593 = vmatpush3.bf16.msra.mxu1 %v4592_v40  ;;  %4605 = vmatpush3.bf16.msra.mxu0 %v4592_v40  ;;  %v4032_v40 = vunpack.c.l.bf16 %v4069_v45 }
 0x575   : > { %v3252_v26 = vsel %vm1121_vm2, %v3206_v33, 0.0  ;;  %v3245_v33 = vrot.slane %v3244_v54, 4  ;;  %4594 = vmatprep.subr.bf16.mxu1 %v4955_v4  ;;  %4606 = vmatprep.subr.bf16.mxu0 %v4955_v4 }
 0x576   : > { %v3253_v24 = vadd.f32 %v3252_v26, %v3251_v30  ;;  %v3094_v6 = vpop.permute.xlu0 %3093  ;;  %v3079_v27 = vpop.permute.xlu1 %3078  ;;  %4459 = vmatmul.mubr.msk.f32.gmra.mrb[56].mxu1 %vm492_vm1, %v4029_v14 }
 0x577   : > { %v3208_v57 = vmul.f32 %v5860_v19, %v3079_v27  ;;  %v3402_v19 = vld [vmem:[%s6424_s11 + $0x30] sm:$0xff]  ;;  %v3269_v27 = vsel %vm1121_vm2, %v3209_v61, 0.0  ;;  %v3211_v32 = vmul.f32 %v3094_v6, %v5875_v2  ;;  %v4033_v61 = vunpack.c.h.bf16 %v4069_v45  ;;  %4461 = vmatprep.mubr.msk.f32.mxu1 %vm492_vm1, %v4032_v40 }
 0x578   : > { %v3254_v56 = vrot.slane %v3253_v24, 4  ;;  %4596 = vmatpush3.bf16.msra.mxu1 %v4595_v63  ;;  %4608 = vmatpush3.bf16.msra.mxu0 %v4595_v63  ;;  %v3237_v2 = vadd.f32 %v3236_v31, %v5968_v35 }
 0x579   : > { %v3261_v20 = vsel %vm1121_vm2, %v3208_v57, 0.0  ;;  %v4070_v57 = vld [vmem:[%s5730_s25 + $0x70] sm:$0xff]   ;;  %4597 = vmatprep.subr.bf16.mxu1 %v4955_v4  ;;  %4609 = vmatprep.subr.bf16.mxu0 %v4955_v4  ;;  %v3278_v63 = vsel %vm1121_vm2, %v3211_v32, 0.0 }
 0x57a   : > { %v3262_v44 = vadd.f32 %v3261_v20, %v3260_v46  ;;  %v3089_v30 = vpop.permute.xlu1 %3088  ;;  %v3104_v26 = vpop.permute.xlu0 %3103  ;;  %v4598_v46 = vpack.c.bf16 %v3403_v51, %v3402_v19  ;;  %v3255_v20 = vadd.f32 %v3254_v56, %v3253_v24  ;;  %v4071_v19 = vld [vmem:[%s5730_s25 + $0x78] sm:$0xff]   ;;  %4462 = vmatmul.mubr.msk.f32.gmra.mrb[58].mxu1 %vm492_vm1, %v4033_v61  ;;  %v3238_v14 = vrot.slane %v3237_v2, 2  ;;  %s4960_s25 = smov 32  }
 0x57b   : > { %v3210_v5 = vmul.f32 %v5866_v29, %v3089_v30  ;;  %v3246_v29 = vadd.f32 %v3245_v33, %v3244_v54  ;;  %v4036_v54 = vunpack.c.l.bf16 %v4070_v57  ;;  %v3213_v33 = vmul.f32 %v3104_v26, %v5888_v48 }
 0x57c   : > { %v3263_v43 = vrot.slane %v3262_v44, 4  ;;  %4599 = vmatpush3.bf16.msra.mxu1 %v4598_v46  ;;  %4611 = vmatpush3.bf16.msra.mxu0 %v4598_v46  ;;  %v3256_v35 = vrot.slane %v3255_v20, 2  ;;  %v4040_v48 = vunpack.c.l.bf16 %v4071_v19  ;;  %v3239_v61 = vadd.f32 %v3238_v14, %v3237_v2 }
 0x57d   : > { %v3270_v1 = vsel %vm1121_vm2, %v3210_v5, 0.0  ;;  %v4037_v5 = vunpack.c.h.bf16 %v4070_v57  ;;  %4464 = vmatprep.mubr.msk.f32.mxu1 %vm492_vm1, %v4036_v54  ;;  %v3287_v26 = vsel %vm1121_vm2, %v3213_v33, 0.0 }
 0x57e   : > { %v3271_v23 = vadd.f32 %v3270_v1, %v3269_v27  ;;  %v3099_v59 = vpop.permute.xlu1 %3098  ;;  %v3264_v6 = vadd.f32 %v3263_v43, %v3262_v44  ;;  %v3114_v51 = vpop.permute.xlu0 %3113 }
 0x57f   : > { %v3212_v58 = vmul.f32 %v5871_v53, %v3099_v59  ;;  %v3247_v53 = vrot.slane %v3246_v29, 2  ;;  %v3215_v27 = vmul.f32 %v3114_v51, %v5900_v50  ;;  %v3257_v59 = vadd.f32 %v3256_v35, %v3255_v20  ;;  %4465 = vmatmul.mubr.msk.f32.gmra.mrb[60].mxu1 %vm492_vm1, %v4037_v5 }
 0x580   : > { %v3272_v30 = vrot.slane %v3271_v23, 4  ;;  %v3265_v31 = vrot.slane %v3264_v6, 2  ;;  %4467 = vmatprep.mubr.msk.f32.mxu1 %vm492_vm1, %v4040_v48 }
 0x581   : > { %v3279_v24 = vsel %vm1121_vm2, %v3212_v58, 0.0  ;;  %v3248_v1 = vadd.f32 %v3247_v53, %v3246_v29  ;;  %v4041_v58 = vunpack.c.h.bf16 %v4071_v19  ;;  %v3296_v50 = vsel %vm1121_vm2, %v3215_v27, 0.0 }
 0x582   : > { %v3273_v45 = vadd.f32 %v3272_v30, %v3271_v23  ;;  %v3280_v4 = vadd.f32 %v3279_v24, %v3278_v63  ;;  %v3109_v56 = vpop.permute.xlu1 %3108  ;;  %v3266_v30 = vadd.f32 %v3265_v31, %v3264_v6 }
 0x583   : > { %v3214_v44 = vmul.f32 %v5884_v36, %v3109_v56  ;;  %v3249_v24 = vrot.slane %v3248_v1, 1  ;;  %4468 = vmatmul.mubr.msk.f32.gmra.mrb[62].mxu1 %vm492_vm1, %v4041_v58 }
 0x584   : > { %v3281_v43 = vrot.slane %v3280_v4, 4  ;;  %v3274_v40 = vrot.slane %v3273_v45, 2  ;;  %v3267_v19 = vrot.slane %v3266_v30, 1  ;;  %4486 = vmatprep.mubr.msk.f32.mxu1 %vm4956_vm0, %v4957_v7 }
 0x585   : > { %v3288_v32 = vsel %vm1121_vm2, %v3214_v44, 0.0 }
 0x586   : > { %v3282_v46 = vadd.f32 %v3281_v43, %v3280_v4  ;;  %v3289_v23 = vadd.f32 %v3288_v32, %v3287_v26  ;;  %v3119_v36 = vpop.permute.xlu1 %3118  ;;  %v3275_v33 = vadd.f32 %v3274_v40, %v3273_v45  ;;  %v3258_v4 = vrot.slane %v3257_v59, 1 }
 0x587   : > { %v3216_v57 = vmul.f32 %v5896_v16, %v3119_v36  ;;  %v3240_v16 = vrot.slane %v3239_v61, 1  ;;  %v6056_v45 = vadd.f32 %v3249_v24, %v3248_v1  ;;  %v6062_v43 = vadd.f32 %v3267_v19, %v3266_v30 }
 0x588   : > { %v3283_v54 = vrot.slane %v3282_v46, 2  ;;  %v3290_v63 = vrot.slane %v3289_v23, 4  ;;  %v3276_v56 = vrot.slane %v3275_v33, 1  ;;  %v6058_v14 = vadd.f32 %v3258_v4, %v3257_v59 }
 0x589   : > { %v3297_v29 = vsel %vm1121_vm2, %v3216_v57, 0.0  ;;  %6446 = vst [vmem:[#allocation9_spill] sm:$0xff] %v6056_v45  ;;  %v6060_v31 = vadd.f32 %v3240_v16, %v3239_v61  ;;  %6449 = vst [vmem:[#allocation12_spill] sm:$0xff] %v6062_v43 }
 0x58a   : > { %v3284_v53 = vadd.f32 %v3283_v54, %v3282_v46  ;;  %v3291_v51 = vadd.f32 %v3290_v63, %v3289_v23  ;;  %v3298_v20 = vadd.f32 %v3297_v29, %v3296_v50  ;;  %6447 = vst [vmem:[#allocation10_spill] sm:$0xff] %v6058_v14  ;;  %v6064_v40 = vadd.f32 %v3276_v56, %v3275_v33 }
 0x58b   : > { %6448 = vst [vmem:[#allocation11_spill] sm:$0xff] %v6060_v31  ;;  %v3385_v7 = vsel %vm2024_vm4, %v6056_v45, %v6060_v31 }
 0x58c   : > { %v3292_v2 = vrot.slane %v3291_v51, 2  ;;  %v3299_v6 = vrot.slane %v3298_v20, 4  ;;  %v3285_v35 = vrot.slane %v3284_v53, 1  ;;  %6450 = vst [vmem:[#allocation13_spill] sm:$0xff] %v6064_v40  ;;  %v3386_v46 = vsel %vm2026_vm5, %v6058_v14, %v3385_v7 }
 0x58d   : > { %v3387_v36 = vsel %vm2028_vm6, %v6062_v43, %v3386_v46 }
 0x58e   : > { %v3293_v44 = vadd.f32 %v3292_v2, %v3291_v51  ;;  %v3300_v5 = vadd.f32 %v3299_v6, %v3298_v20  ;;  %v6069_v27 = vadd.f32 %v3285_v35, %v3284_v53  ;;  %v3388_v59 = vsel %vm2030_vm7, %v6064_v40, %v3387_v36 }
 0x590   : > { %v3294_v48 = vrot.slane %v3293_v44, 1  ;;  %v3301_v26 = vrot.slane %v3300_v5, 2  ;;  %6451 = vst [vmem:[#allocation14_spill] sm:$0xff] %v6069_v27  ;;  %v3389_v58 = vsel %vm2032_vm8, %v6069_v27, %v3388_v59 }
 0x592   : > { %v3302_v32 = vadd.f32 %v3301_v26, %v3300_v5  ;;  %v6071_v1 = vadd.f32 %v3294_v48, %v3293_v44 }
 0x594   : > { %6452 = vst [vmem:[#allocation15_spill] sm:$0xff] %v6071_v1  ;;  %v3303_v23 = vrot.slane %v3302_v32, 1  ;;  %v3390_v61 = vsel %vm2034_vm9, %v6071_v1, %v3389_v58 }
 0x596   : > { %v6079_v57 = vadd.f32 %v3303_v23, %v3302_v32 }
 0x598   : > { %6453 = vst [vmem:[#allocation16_spill] sm:$0xff] %v6079_v57  ;;  %v3391_v30 = vsel %vm2036_vm10, %v6079_v57, %v3390_v61 }
 0x599   : > { %3392 = vrot.lane.b32.xlu1 %v3391_v30, %s4960_s25 }
 0x5ab   : > { %v2053_v54 = vpop.xlane.xlu0 %2052 }
 0x5ac   : > { %v2091_v63 = vrot.slane %v2053_v54, %v5260_v62  ;;  %v2103_v50 = vrot.slane %v2053_v54, %v5617_v42  ;;  %v2095_v29 = vrot.slane %v2053_v54, %v5620_v0  ;;  %v6096_v16 = vrot.slane %v2053_v54, %v5639_v25 }
 0x5ad   : > { %v2099_v2 = vrot.slane %v2053_v54, %v5635_v15  ;;  %v2119_v56 = vrot.slane %v2053_v54, %v5645_v34 }
 0x5ae   : > { %v2152_v33 = vsub.f32 %v5873_v38, %v2091_v63  ;;  %v2153_v24 = vsub.f32 %v5877_v52, %v2091_v63  ;;  %v2159_v51 = vsub.f32 %v5886_v21, %v2103_v50  ;;  %v2154_v20 = vsub.f32 %v5894_v39, %v2095_v29 }
 0x5af   : > { %v2155_v38 = vsub.f32 %v5879_v60, %v2095_v29  ;;  %v2165_v52 = vsub.f32 %v5926_v11, %v6096_v16  ;;  %v2156_v21 = vsub.f32 %v5898_v41, %v2099_v2  ;;  %v2167_v35 = vsub.f32 %v5935_v47, %v2119_v56 }
 0x5b0   : > { %v2200_v53 = vmul.f32 1.442695, %v2152_v33  ;;  %v2202_v4 = vmul.f32 1.442695, %v2153_v24  ;;  %v2214_v19 = vmul.f32 1.442695, %v2159_v51  ;;  %v2157_v60 = vsub.f32 %v5882_v28, %v2099_v2 }
 0x5b1   : > { %v2204_v6 = vmul.f32 1.442695, %v2154_v20  ;;  %v2206_v39 = vmul.f32 1.442695, %v2155_v38  ;;  %v2226_v44 = vmul.f32 1.442695, %v2165_v52  ;;  %v2107_v41 = vrot.slane %v2053_v54, %v5625_v8 }
 0x5b2   : > { %4835 = vpow2.f32 %v2200_v53  ;;  %v2208_v48 = vmul.f32 1.442695, %v2156_v21  ;;  %v2230_v26 = vmul.f32 1.442695, %v2167_v35  ;;  %v2158_v11 = vsub.f32 %v5902_v9, %v2103_v50 }
 0x5b3   : > { %4837 = vpow2.f32 %v2202_v4  ;;  %v2210_v47 = vmul.f32 1.442695, %v2157_v60  ;;  %v2160_v28 = vsub.f32 %v5904_v22, %v2107_v41  ;;  %v2111_v9 = vrot.slane %v2053_v54, %v5631_v55 }
 0x5b4   : > { %4839 = vpow2.f32 %v2214_v19  ;;  %v2212_v23 = vmul.f32 1.442695, %v2158_v11  ;;  %v2161_v58 = vsub.f32 %v5890_v37, %v2107_v41  ;;  %v2164_v24 = vsub.f32 %v5912_v13, %v6096_v16 }
 0x5b5   : > { %4841 = vpow2.f32 %v2204_v6  ;;  %v2216_v61 = vmul.f32 1.442695, %v2160_v28  ;;  %v2162_v22 = vsub.f32 %v5908_v18, %v2111_v9  ;;  %v2163_v37 = vsub.f32 %v5892_v10, %v2111_v9 }
 0x5b6   : > { %4843 = vpow2.f32 %v2206_v39  ;;  %v2218_v33 = vmul.f32 1.442695, %v2161_v58  ;;  %v2166_v51 = vsub.f32 %v5920_v17, %v2119_v56  ;;  %v2224_v20 = vmul.f32 1.442695, %v2164_v24 }
 0x5b7   : > { %4845 = vpow2.f32 %v2226_v44  ;;  %v2220_v54 = vmul.f32 1.442695, %v2162_v22  ;;  %v2222_v18 = vmul.f32 1.442695, %v2163_v37 }
 0x5b8   : > { %4847 = vpow2.f32 %v2208_v48  ;;  %v2228_v4 = vmul.f32 1.442695, %v2166_v51 }
 0x5b9   : > { %4849 = vpow2.f32 %v2230_v26 }
 0x5ba   : > { %4851 = vpow2.f32 %v2210_v47 }
 0x5bb   : > { %4853 = vpow2.f32 %v2212_v23 }
 0x5bc   : > { %v6105_v5 = vpop.eup %4835  ;;  %4855 = vpow2.f32 %v2216_v61 }
 0x5bd   : > { %2313 = vperm.xlu1 %4658, %v6105_v5   ;;  %v6109_v7 = vpop.eup %4837  ;;  %4857 = vpow2.f32 %v2218_v33 }
 0x5be   : > { %v6114_v32 = vpop.eup %4839  ;;  %4859 = vpow2.f32 %v2220_v54 }
 0x5bf   : > { %v6116_v46 = vpop.eup %4841  ;;  %2334 = vperm.xlu0 %4657, %v6114_v32   ;;  %4861 = vpow2.f32 %v2222_v18 }
 0x5c0   : > { %v6121_v36 = vpop.eup %4843  ;;  %4863 = vpow2.f32 %v2224_v20 }
 0x5c1   : > { %2316 = vperm.xlu1 %4658, %v6109_v7   ;;  %v6123_v59 = vpop.eup %4845  ;;  %4865 = vpow2.f32 %v2228_v4 }
 0x5c2   : > { %v6129_v30 = vpop.eup %4847 }
 0x5c3   : > { %2352 = vperm.xlu0 %4657, %v6123_v59   ;;  %v6131_v63 = vpop.eup %4849 }
 0x5c4   : > { %v6136_v50 = vpop.eup %4851 }
 0x5c5   : > { %2319 = vperm.xlu1 %4658, %v6116_v46   ;;  %v6140_v29 = vpop.eup %4853 }
 0x5c6   : > { %v6145_v53 = vpop.eup %4855 }
 0x5c7   : > { %2358 = vperm.xlu0 %4657, %v6131_v63   ;;  %v6149_v10 = vpop.eup %4857 }
 0x5c8   : > { %v6152_v19 = vpop.eup %4859 }
 0x5c9   : > { %2322 = vperm.xlu1 %4658, %v6121_v36   ;;  %v6155_v13 = vpop.eup %4861 }
 0x5ca   : > { %v6158_v16 = vpop.eup %4863 }
 0x5cb   : > { %v6161_v17 = vpop.eup %4865 }
 0x5cd   : > { %2325 = vperm.xlu1 %4658, %v6129_v30  }
 0x5d1   : > { %2328 = vperm.xlu1 %4658, %v6136_v50  }
 0x5d5   : > { %2331 = vperm.xlu1 %4658, %v6140_v29  }
 0x5d9   : > { %2337 = vperm.xlu1 %4658, %v6145_v53  }
 0x5dd   : > { %2340 = vperm.xlu1 %4658, %v6149_v10  }
 0x5e1   : > { %2343 = vperm.xlu1 %4658, %v6152_v19  }
 0x5e5   : > { %2346 = vperm.xlu1 %4658, %v6155_v13  }
 0x5e9   : > { %2349 = vperm.xlu1 %4658, %v6158_v16  }
 0x5ec   : > { %v6167_v52 = vpop.f32.mrb[48].mxu1 }
 0x5ed   : > { %2355 = vperm.xlu1 %4658, %v6161_v17   ;;  %v6169_v21 = vpop.f32.mrb[49].mxu1 }
 0x5f0   : > { %v6171_v35 = vpop.f32.mrb[50].mxu1 }
 0x5f1   : > { %v6173_v44 = vpop.f32.mrb[51].mxu1 }
 0x60b   : > { %v3393_v2 = vpop.permute.xlu1 %3392 }
 0x60c   : > { %v3395_v38 = vsel %vm1121_vm2, %v5253_v49, %v3393_v2 }
 0x60d   : > { %4487 = vmatmul.mubr.msk.f32.vlgmr.msra.gmra.mrb[64].mxu1 %vm492_vm1, %v3395_v38 }
 0x63c   : > { %v2314_v6 = vpop.permute.xlu1 %2313 }
 0x63d   : > { %v2435_v45 = vrot.slane %v2314_v6, %v5537_v3 }
 0x63e   : > { %v2335_v20 = vpop.permute.xlu0 %2334 }
 0x63f   : > { %v2466_v14 = vrot.slane %v2335_v20, %v5540_v12 }
 0x640   : > { %v2317_v56 = vpop.permute.xlu1 %2316  ;;  %v6175_v48 = vpop.f32.mrb[52].mxu1 }
 0x641   : > { %v6177_v26 = vpop.f32.mrb[53].mxu1  ;;  %v2439_v1 = vrot.slane %v2317_v56, %v5540_v12 }
 0x642   : > { %v2353_v38 = vpop.permute.xlu0 %2352 }
 0x643   : > { %v2493_v20 = vrot.slane %v2353_v38, %v5540_v12 }
 0x644   : > { %v2320_v39 = vpop.permute.xlu1 %2319  ;;  %v6179_v11 = vpop.f32.mrb[54].mxu1 }
 0x645   : > { %v6181_v47 = vpop.f32.mrb[55].mxu1  ;;  %v2444_v27 = vrot.slane %v2320_v39, %v5537_v3  ;;  %v2440_v39 = vsel %vm1887_vm3, %v2439_v1, %v2435_v45 }
 0x646   : > { %v2359_v6 = vpop.permute.xlu0 %2358 }
 0x648   : > { %v2323_v60 = vpop.permute.xlu1 %2322 }
 0x649   : > { %v6183_v23 = vpop.f32.mrb[56].mxu1  ;;  %v2448_v2 = vrot.slane %v2323_v60, %v5540_v12 }
 0x64a   : > { %v6185_v9 = vpop.f32.mrb[57].mxu1 }
 0x64b   : > { %v2449_v60 = vsel %vm1887_vm3, %v2448_v2, %v2444_v27 }
 0x64c   : > { %v2326_v41 = vpop.permute.xlu1 %2325  ;;  %v2511_v27 = vsel %vm2024_vm4, %v2449_v60, %v2440_v39 }
 0x64d   : > { %v6187_v61 = vpop.f32.mrb[58].mxu1  ;;  %v2453_v43 = vrot.slane %v2326_v41, %v5537_v3 }
 0x64e   : > { %v6189_v22 = vpop.f32.mrb[59].mxu1 }
 0x650   : > { %v2329_v28 = vpop.permute.xlu1 %2328 }
 0x651   : > { %v2457_v49 = vrot.slane %v2329_v28, %v5540_v12 }
 0x652   : > { %v6191_v37 = vpop.f32.mrb[60].mxu1 }
 0x653   : > { %v6193_v54 = vpop.f32.mrb[61].mxu1  ;;  %v2458_v28 = vsel %vm1887_vm3, %v2457_v49, %v2453_v43 }
 0x654   : > { %v2332_v58 = vpop.permute.xlu1 %2331  ;;  %v2512_v49 = vsel %vm2026_vm5, %v2458_v28, %v2511_v27 }
 0x655   : > { %v2462_v40 = vrot.slane %v2332_v58, %v5537_v3 }
 0x656   : > { %v6195_v18 = vpop.f32.mrb[62].mxu1 }
 0x657   : > { %6454 = vst [vmem:[#allocation17_spill] sm:$0xff] %v6195_v18  ;;  %v6197_v51 = vpop.f32.mrb[63].mxu1  ;;  %v2467_v58 = vsel %vm1887_vm3, %v2466_v14, %v2462_v40  ;;  %v2502_v40 = vrot.slane %v2359_v6, %v5540_v12 }
 0x658   : > { %v2338_v33 = vpop.permute.xlu1 %2337  ;;  %6455 = vst [vmem:[#allocation18_spill] sm:$0xff] %v6197_v51 }
 0x659   : > { %v2471_v56 = vrot.slane %v2338_v33, %v5537_v3  ;;  %v2513_v33 = vsel %vm2028_vm6, %v2467_v58, %v2512_v49 }
 0x65c   : > { %v2341_v24 = vpop.permute.xlu1 %2340 }
 0x65d   : > { %v2475_v31 = vrot.slane %v2341_v24, %v5540_v12 }
 0x660   : > { %v2344_v4 = vpop.permute.xlu1 %2343 }
 0x661   : > { %v2480_v41 = vrot.slane %v2344_v4, %v5537_v3 }
 0x664   : > { %v2347_v57 = vpop.permute.xlu1 %2346 }
 0x665   : > { %v2484_v18 = vrot.slane %v2347_v57, %v5540_v12  ;;  %v2476_v57 = vsel %vm1887_vm3, %v2475_v31, %v2471_v56 }
 0x666   : > { %v2514_v1 = vsel %vm2030_vm7, %v2476_v57, %v2513_v33 }
 0x667   : > { %v2485_v43 = vsel %vm1887_vm3, %v2484_v18, %v2480_v41 }
 0x668   : > { %v2350_v51 = vpop.permute.xlu1 %2349  ;;  %v2515_v4 = vsel %vm2032_vm8, %v2485_v43, %v2514_v1 }
 0x669   : > { %v2489_v24 = vrot.slane %v2350_v51, %v5537_v3 }
 0x66b   : > { %v2494_v45 = vsel %vm1887_vm3, %v2493_v20, %v2489_v24 }
 0x66c   : > { %v2356_v14 = vpop.permute.xlu1 %2355  ;;  %v2516_v31 = vsel %vm2034_vm9, %v2494_v45, %v2515_v4 }
 0x66d   : > { %v2498_v51 = vrot.slane %v2356_v14, %v5537_v3 }
 0x66f   : > { %v2503_v2 = vsel %vm1887_vm3, %v2502_v40, %v2498_v51 }
 0x670   : > { %v2517_v38 = vsel %vm2036_vm10, %v2503_v2, %v2516_v31 }
 0x671   : > { %v2523_v18 = vsel %vm2047_vm11, %v2517_v38, 0.0 }
 0x672   : > { %2524 = vadd.xlane.f32.xlu1 %v2523_v18 }
 0x6e0   : > { %v3473_v60 = vpop.f32.mrb[64].mxu1 }
 0x6e1   : > { %v4488_v28 = vpop.f32.mrb[65].mxu1 }
 0x6ff   : > { %v2525_v56 = vpop.xlane.xlu1 %2524 }
 0x700   : > { %v2579_v12 = vrot.slane %v2525_v56, %v5625_v8  ;;  %v2563_v39 = vrot.slane %v2525_v56, %v5260_v62  ;;  %v2591_v3 = vrot.slane %v2525_v56, %v5645_v34  ;;  %v2567_v58 = vrot.slane %v2525_v56, %v5620_v0 }
 0x701   : > { %v2571_v6 = vrot.slane %v2525_v56, %v5635_v15  ;;  %v2575_v0 = vrot.slane %v2525_v56, %v5617_v42 }
 0x702   : > { %4867 = vrcp.f32 %v2579_v12 }
 0x703   : > { %4869 = vrcp.f32 %v2563_v39 }
 0x704   : > { %4871 = vrcp.f32 %v2591_v3 }
 0x705   : > { %4873 = vrcp.f32 %v2567_v58 }
 0x706   : > { %4875 = vrcp.f32 %v2571_v6 }
 0x707   : > { %4877 = vrcp.f32 %v2575_v0 }
 0x70c   : > { %v4868_v41 = vpop.eup %4867 }
 0x70d   : > { %v4870_v24 = vpop.eup %4869  ;;  %v2646_v20 = vmul.f32 %v4868_v41, %v6149_v10 }
 0x70e   : > { %v4872_v27 = vpop.eup %4871  ;;  %v2633_v57 = vmul.f32 %v4870_v24, %v6105_v5  ;;  %v2634_v8 = vmul.f32 %v4870_v24, %v6109_v7 }
 0x70f   : > { %3168 = vperm.xlu1 %4658, %v2646_v20   ;;  %v2654_v62 = vmul.f32 %v4872_v27, %v6161_v17  ;;  %v4874_v34 = vpop.eup %4873  ;;  %v2583_v17 = vrot.slane %v2525_v56, %v5631_v55  ;;  %v6253_v55 = vld [vmem:[%s6425_s12] ss:$0 sm:$0xff]  ;;  %v2655_v1 = vmul.f32 %v4872_v27, %v6131_v63 }
 0x710   : > { %3123 = vperm.xlu0 %4657, %v2633_v57   ;;  %v2636_v49 = vmul.f32 %v4874_v34, %v6116_v46  ;;  %v2637_v15 = vmul.f32 %v4874_v34, %v6121_v36  ;;  %v4876_v10 = vpop.eup %4875  ;;  %v2587_v46 = vrot.slane %v2525_v56, %v5639_v25  ;;  %v3477_v36 = vmax.f32 %v3473_v60, 0.0 }
 0x711   : > { %v2639_v5 = vmul.f32 %v4876_v10, %v6129_v30  ;;  %v2640_v7 = vmul.f32 %v4876_v10, %v6136_v50  ;;  %v4878_v43 = vpop.eup %4877  ;;  %4879 = vrcp.f32 %v2583_v17  ;;  %v2645_v30 = vmul.f32 %v4868_v41, %v6145_v53 }
 0x712   : > { %v2642_v42 = vmul.f32 %v4878_v43, %v6140_v29  ;;  %v2643_v33 = vmul.f32 %v4878_v43, %v6114_v32  ;;  %4881 = vrcp.f32 %v2587_v46  ;;  %v3485_v50 = vmul.f32 %v6253_v55, %v3477_v36 }
 0x713   : > { %3193 = vperm.xlu1 %4658, %v2654_v62  }
 0x714   : > { %3128 = vperm.xlu0 %4657, %v2634_v8   ;;  %v3486_v25 = vsel %vm1121_vm2, %v3485_v50, 0.0 }
 0x718   : > { %3133 = vperm.xlu0 %4657, %v2636_v49  }
 0x71b   : > { %v4880_v45 = vpop.eup %4879 }
 0x71c   : > { %3138 = vperm.xlu0 %4657, %v2637_v15   ;;  %v2648_v29 = vmul.f32 %v4880_v45, %v6152_v19  ;;  %v2649_v32 = vmul.f32 %v4880_v45, %v6155_v13  ;;  %v4882_v14 = vpop.eup %4881 }
 0x71d   : > { %v2651_v53 = vmul.f32 %v4882_v14, %v6158_v16  ;;  %v2652_v40 = vmul.f32 %v4882_v14, %v6123_v59 }
 0x720   : > { %3143 = vperm.xlu0 %4657, %v2639_v5  }
 0x724   : > { %3148 = vperm.xlu0 %4657, %v2640_v7  }
 0x728   : > { %3153 = vperm.xlu0 %4657, %v2642_v42  }
 0x72c   : > { %3158 = vperm.xlu0 %4657, %v2643_v33  }
 0x730   : > { %3163 = vperm.xlu0 %4657, %v2645_v30  }
 0x734   : > { %3173 = vperm.xlu0 %4657, %v2648_v29  }
 0x737   : > { %3487 = vadd.xlane.f32.xlu1 %v3486_v25 }
 0x738   : > { %3178 = vperm.xlu0 %4657, %v2649_v32  }
 0x73c   : > { %3183 = vperm.xlu0 %4657, %v2651_v53  }
 0x740   : > { %3188 = vperm.xlu0 %4657, %v2652_v40  }
 0x744   : > { %3198 = vperm.xlu0 %4657, %v2655_v1  }
 0x78f   : > { %v3124_v51 = vpop.permute.xlu0 %3123 }
 0x790   : > { %v3217_v19 = vmul.f32 %v3124_v51, %v6169_v21 }
 0x792   : > { %v3305_v13 = vsel %vm1121_vm2, %v3217_v19, 0.0 }
 0x793   : > { %v3129_v4 = vpop.permute.xlu0 %3128 }
 0x794   : > { %v3218_v2 = vmul.f32 %v6167_v52, %v3129_v4  ;;  %v6456_v4 = vld [vmem:[#allocation18_spill] sm:$0xff] }
 0x796   : > { %v3306_v31 = vsel %vm1121_vm2, %v3218_v2, 0.0 }
 0x797   : > { %v3307_v38 = vadd.f32 %v3306_v31, %v3305_v13  ;;  %v3134_v18 = vpop.permute.xlu0 %3133 }
 0x798   : > { %v3219_v16 = vmul.f32 %v3134_v18, %v6173_v44 }
 0x799   : > { %v3308_v17 = vrot.slane %v3307_v38, 4 }
 0x79a   : > { %v3314_v63 = vsel %vm1121_vm2, %v3219_v16, 0.0 }
 0x79b   : > { %v3139_v60 = vpop.permute.xlu0 %3138  ;;  %v3309_v45 = vadd.f32 %v3308_v17, %v3307_v38 }
 0x79c   : > { %v3220_v59 = vmul.f32 %v6171_v35, %v3139_v60  ;;  %v3169_v35 = vpop.permute.xlu1 %3168 }
 0x79d   : > { %v3226_v27 = vmul.f32 %v6183_v23, %v3169_v35  ;;  %v3310_v51 = vrot.slane %v3309_v45, 2 }
 0x79e   : > { %v3315_v28 = vsel %vm1121_vm2, %v3220_v59, 0.0 }
 0x79f   : > { %v3316_v56 = vadd.f32 %v3315_v28, %v3314_v63  ;;  %v3144_v21 = vpop.permute.xlu0 %3143  ;;  %v3342_v34 = vsel %vm1121_vm2, %v3226_v27, 0.0  ;;  %v6457_v63 = vld [vmem:[#allocation17_spill] sm:$0xff] }
 0x7a0   : > { %v3221_v12 = vmul.f32 %v3144_v21, %v6177_v26  ;;  %v3194_v32 = vpop.permute.xlu1 %3193 }
 0x7a1   : > { %v3317_v10 = vrot.slane %v3316_v56, 4  ;;  %v3231_v2 = vmul.f32 %v3194_v32, %v6456_v4  ;;  %v6460_v4 = vld [vmem:[#allocation11_spill] sm:$0xff] }
 0x7a2   : > { %v3323_v3 = vsel %vm1121_vm2, %v3221_v12, 0.0 }
 0x7a3   : > { %v3149_v52 = vpop.permute.xlu0 %3148  ;;  %v3318_v46 = vadd.f32 %v3317_v10, %v3316_v56  ;;  %v3311_v56 = vadd.f32 %v3310_v51, %v3309_v45 }
 0x7a4   : > { %v3222_v39 = vmul.f32 %v6175_v48, %v3149_v52 }
 0x7a5   : > { %v3319_v14 = vrot.slane %v3318_v46, 2  ;;  %v3312_v35 = vrot.slane %v3311_v56, 1 }
 0x7a6   : > { %v3324_v58 = vsel %vm1121_vm2, %v3222_v39, 0.0 }
 0x7a7   : > { %v3325_v41 = vadd.f32 %v3324_v58, %v3323_v3  ;;  %v3154_v44 = vpop.permute.xlu0 %3153  ;;  %v3320_v18 = vadd.f32 %v3319_v14, %v3318_v46 }
 0x7a8   : > { %v3223_v24 = vmul.f32 %v3154_v44, %v6181_v47 }
 0x7a9   : > { %v3326_v5 = vrot.slane %v3325_v41, 4  ;;  %v3321_v3 = vrot.slane %v3320_v18, 1 }
 0x7aa   : > { %v3332_v57 = vsel %vm1121_vm2, %v3223_v24, 0.0 }
 0x7ab   : > { %v3159_v20 = vpop.permute.xlu0 %3158  ;;  %v3327_v30 = vadd.f32 %v3326_v5, %v3325_v41 }
 0x7ac   : > { %v3224_v6 = vmul.f32 %v6179_v11, %v3159_v20 }
 0x7ad   : > { %v3328_v40 = vrot.slane %v3327_v30, 2 }
 0x7ae   : > { %v3333_v26 = vsel %vm1121_vm2, %v3224_v6, 0.0 }
 0x7af   : > { %v3334_v62 = vadd.f32 %v3333_v26, %v3332_v57  ;;  %v3164_v48 = vpop.permute.xlu0 %3163  ;;  %v3329_v59 = vadd.f32 %v3328_v40, %v3327_v30  ;;  %v6294_v26 = vadd.f32 %v3321_v3, %v3320_v18  ;;  %v6459_v40 = vld [vmem:[#allocation10_spill] sm:$0xff]  ;;  %v6464_v3 = vld [vmem:[#allocation15_spill] sm:$0xff] }
 0x7b0   : > { %v3225_v8 = vmul.f32 %v3164_v48, %v6185_v9 }
 0x7b1   : > { %v3335_v7 = vrot.slane %v3334_v62, 4  ;;  %v3330_v24 = vrot.slane %v3329_v59, 1 }
 0x7b2   : > { %v3341_v0 = vsel %vm1121_vm2, %v3225_v8, 0.0 }
 0x7b3   : > { %v3343_v49 = vadd.f32 %v3342_v34, %v3341_v0  ;;  %v3174_v47 = vpop.permute.xlu0 %3173  ;;  %v3336_v50 = vadd.f32 %v3335_v7, %v3334_v62  ;;  %v6296_v34 = vadd.f32 %v3330_v24, %v3329_v59  ;;  %v6298_v0 = vadd.f32 %v3312_v35, %v3311_v56  ;;  %v6465_v24 = vld [vmem:[#allocation16_spill] sm:$0xff] }
 0x7b4   : > { %v3227_v15 = vmul.f32 %v3174_v47, %v6189_v22 }
 0x7b5   : > { %v3344_v43 = vrot.slane %v3343_v49, 4  ;;  %v3337_v19 = vrot.slane %v3336_v50, 2 }
 0x7b6   : > { %v3350_v42 = vsel %vm1121_vm2, %v3227_v15, 0.0 }
 0x7b7   : > { %v3179_v11 = vpop.permute.xlu0 %3178  ;;  %v3345_v22 = vadd.f32 %v3344_v43, %v3343_v49  ;;  %v3338_v21 = vadd.f32 %v3337_v19, %v3336_v50 }
 0x7b8   : > { %v3228_v23 = vmul.f32 %v6187_v61, %v3179_v11  ;;  %v3551_v11 = vsel %vm2024_vm4, %v6294_v26, %v6298_v0 }
 0x7b9   : > { %v3346_v13 = vrot.slane %v3345_v22, 2  ;;  %v3339_v20 = vrot.slane %v3338_v21, 1  ;;  %v3552_v7 = vsel %vm2026_vm5, %v6296_v34, %v3551_v11 }
 0x7ba   : > { %v3351_v9 = vsel %vm1121_vm2, %v3228_v23, 0.0 }
 0x7bb   : > { %v3352_v33 = vadd.f32 %v3351_v9, %v3350_v42  ;;  %v3184_v36 = vpop.permute.xlu0 %3183  ;;  %v3347_v52 = vadd.f32 %v3346_v13, %v3345_v22  ;;  %v6300_v49 = vadd.f32 %v3339_v20, %v3338_v21  ;;  %v6463_v21 = vld [vmem:[#allocation14_spill] sm:$0xff] }
 0x7bc   : > { %v3229_v25 = vmul.f32 %v3184_v36, %v6193_v54 }
 0x7bd   : > { %v3353_v29 = vrot.slane %v3352_v33, 4  ;;  %v3348_v57 = vrot.slane %v3347_v52, 1  ;;  %v3553_v42 = vsel %vm2028_vm6, %v6300_v49, %v3552_v7 }
 0x7be   : > { %v3359_v31 = vsel %vm1121_vm2, %v3229_v25, 0.0 }
 0x7bf   : > { %v3354_v61 = vadd.f32 %v3353_v29, %v3352_v33  ;;  %v3189_v53 = vpop.permute.xlu0 %3188  ;;  %v6302_v10 = vadd.f32 %v3348_v57, %v3347_v52 }
 0x7c0   : > { %v3230_v1 = vmul.f32 %v6191_v37, %v3189_v53  ;;  %v3368_v37 = vsel %vm1121_vm2, %v3231_v2, 0.0 }
 0x7c1   : > { %v3355_v16 = vrot.slane %v3354_v61, 2  ;;  %v3554_v9 = vsel %vm2030_vm7, %v6302_v10, %v3553_v42 }
 0x7c2   : > { %v3360_v38 = vsel %vm1121_vm2, %v3230_v1, 0.0 }
 0x7c3   : > { %v3361_v60 = vadd.f32 %v3360_v38, %v3359_v31  ;;  %v3199_v54 = vpop.permute.xlu0 %3198  ;;  %v3356_v58 = vadd.f32 %v3355_v16, %v3354_v61  ;;  %v6458_v61 = vld [vmem:[#allocation9_spill] sm:$0xff]  ;;  %v6461_v38 = vld [vmem:[#allocation12_spill] sm:$0xff] }
 0x7c4   : > { %v3232_v28 = vmul.f32 %v6457_v63, %v3199_v54  ;;  %v3488_v45 = vpop.xlane.xlu1 %3487  ;;  %v6462_v54 = vld [vmem:[#allocation13_spill] sm:$0xff] }
 0x7c5   : > { %v3362_v12 = vrot.slane %v3361_v60, 4  ;;  %v3357_v62 = vrot.slane %v3356_v58, 1  ;;  %v3907_v50 = vmul.f32 -1.442695, %v3488_v45 }
 0x7c6   : > { %v3369_v39 = vsel %vm1121_vm2, %v3232_v28, 0.0 }
 0x7c7   : > { %v3363_v41 = vadd.f32 %v3362_v12, %v3361_v60  ;;  %v3370_v44 = vadd.f32 %v3369_v39, %v3368_v37  ;;  %v6307_v5 = vadd.f32 %v3357_v62, %v3356_v58  ;;  %4883 = vpow2.f32 %v3907_v50 }
 0x7c9   : > { %v3364_v6 = vrot.slane %v3363_v41, 2  ;;  %v3371_v27 = vrot.slane %v3370_v44, 4  ;;  %v3555_v33 = vsel %vm2032_vm8, %v6307_v5, %v3554_v9 }
 0x7cb   : > { %v3365_v48 = vadd.f32 %v3364_v6, %v3363_v41  ;;  %v3372_v8 = vadd.f32 %v3371_v27, %v3370_v44 }
 0x7cd   : > { %v3366_v47 = vrot.slane %v3365_v48, 1  ;;  %v3373_v15 = vrot.slane %v3372_v8, 2 }
 0x7cf   : > { %v3374_v23 = vadd.f32 %v3373_v15, %v3372_v8  ;;  %v6309_v17 = vadd.f32 %v3366_v47, %v3365_v48  ;;  %v6466_v48 = vld [vmem:[#allocation8_spill] sm:$0xff] }
 0x7d1   : > { %v3375_v43 = vrot.slane %v3374_v23, 1  ;;  %v3556_v36 = vsel %vm2034_vm9, %v6309_v17, %v3555_v33  ;;  %v4884_v29 = vpop.eup %4883 }
 0x7d2   : > { %v3492_v22 = vadd.f32 1.0, %v4884_v29 }
 0x7d3   : > { %v6317_v46 = vadd.f32 %v3375_v43, %v3374_v23 }
 0x7d4   : > { %4885 = vrcp.f32 %v3492_v22 }
 0x7d5   : > { %v3557_v30 = vsel %vm2036_vm10, %v6317_v46, %v3556_v36 }
 0x7d6   : > { %3558 = vrot.lane.b32.xlu0 %v3557_v30, %s4960_s25  ;;  %s4895_s25 = sshll.u32 %s4961_s2, 4  ;;  %s4896_s25 = int_to_ptr.vmem [resolvable:$false] %s4895_s25 }
 0x7d7   : > { %s4897_s21 = scalar_lea.vmem %s4896_s25, 256  ;;  %p4898_p1 = scmp.lt.s32.totalorder %s6370_s18, %s4896_s25 }
 0x7d8   : > { %p4899_p2 = scmp.lt.s32.totalorder %s4897_s21, %s4891_s16 }
 0x7da   : > { %p4900_p3 = por %p4899_p2, %p4898_p1 }
 0x7dc   : > { %p4901_p4 = pnand %p4900_p3, %p4894_p0 }
 0x7de   : > { %v4886_v25 = vpop.eup %4885 }
 0x7df   : > { %v3496_v32 = vrot.slane %v4886_v25, 1  ;;  %v3497_v14 = vrot.slane %v4886_v25, 2  ;;  %v3498_v51 = vrot.slane %v4886_v25, 3  ;;  %v3511_v2 = vmul.f32 %v4886_v25, %v6460_v4 }
 0x7e0   : > { %v3499_v13 = vrot.slane %v4886_v25, 4  ;;  %v3500_v60 = vrot.slane %v4886_v25, 5  ;;  %v3501_v56 = vrot.slane %v4886_v25, 6  ;;  %v3502_v39 = vrot.slane %v4886_v25, 7 }
 0x7e1   : > { %v3512_v53 = vmul.f32 %v3496_v32, %v6458_v61  ;;  %v3513_v1 = vmul.f32 %v3497_v14, %v6459_v40  ;;  %v3514_v18 = vmul.f32 %v3498_v51, %v6461_v38 }
 0x7e2   : > { %v3515_v59 = vmul.f32 %v3499_v13, %v6462_v54  ;;  %v3516_v12 = vmul.f32 %v3500_v60, %v6463_v21  ;;  %v3517_v58 = vmul.f32 %v3501_v56, %v6464_v3  ;;  %v3518_v35 = vmul.f32 %v3502_v39, %v6465_v24 }
 0x7e3   : > { %v3527_v19 = vrot.slane %v3512_v53, 7  ;;  %v3529_v31 = vrot.slane %v3513_v1, 6  ;;  %v3531_v28 = vrot.slane %v3514_v18, 5 }
 0x7e4   : > { %v3533_v52 = vrot.slane %v3515_v59, 4  ;;  %v3535_v44 = vrot.slane %v3516_v12, 3  ;;  %v3537_v6 = vrot.slane %v3517_v58, 2  ;;  %v3539_v57 = vrot.slane %v3518_v35, 1 }
 0x7e5   : > { %v3528_v16 = vsel %vm2024_vm4, %v3527_v19, %v3511_v2 }
 0x7e6   : > { %v3530_v63 = vsel %vm2026_vm5, %v3529_v31, %v3528_v16 }
 0x7e7   : > { %v3532_v37 = vsel %vm2028_vm6, %v3531_v28, %v3530_v63 }
 0x7e8   : > { %v3534_v41 = vsel %vm2030_vm7, %v3533_v52, %v3532_v37 }
 0x7e9   : > { %v3536_v20 = vsel %vm2032_vm8, %v3535_v44, %v3534_v41 }
 0x7ea   : > { %v3538_v27 = vsel %vm2034_vm9, %v3537_v6, %v3536_v20 }
 0x7eb   : > { %v3540_v62 = vsel %vm2036_vm10, %v3539_v57, %v3538_v27 }
 0x7ec   : > { %v3542_v8 = vadd.f32 %v3540_v62, %v6466_v48 }
 0x848   : > { %v3559_v47 = vpop.permute.xlu0 %3558 }
 0x849   : > { %v3561_v15 = vsel %vm1121_vm2, %v3542_v8, %v3559_v47 }
 0x84a   : > { %4506 = vmatmul.mubr.msk.f32.vlgmr.msra.gmra.mrb[36].mxu0 %vm492_vm1, %v3561_v15 }
 0x91d   : > { %v3631_v11 = vpop.f32.mrb[36].mxu0 }
 0x91e   : > { %v3635_v23 = vmax.f32 %v3631_v11, 0.0  ;;  %v4507_v7 = vpop.f32.mrb[37].mxu0 }
 0x920   : > { %v3636_v43 = vmul.f32 %v6253_v55, %v3635_v23 }
 0x922   : > { %v3637_v42 = vsel %vm1121_vm2, %v3636_v43, 0.0 }
 0x923   : > { %3638 = vadd.xlane.f32.xlu0 %v3637_v42 }
 0x9b0   : > { %v3639_v9 = vpop.xlane.xlu0 %3638 }
 0x9b1   : > { %v3909_v33 = vmul.f32 -1.442695, %v3639_v9 }
 0x9b3   : > { %4887 = vpow2.f32 %v3909_v33 }
 0x9bd   : > { %v4888_v36 = vpop.eup %4887 }
 0x9be   : > { %v3643_v30 = vadd.f32 1.0, %v4888_v36 }
 0x9c0   : > { %4889 = vrcp.f32 %v3643_v30 }
 0x9ca   : > { %v4890_v45 = vpop.eup %4889 }
 0x9cb   : > { %v3647_v50 = vrot.slane %v4890_v45, 1  ;;  %v3648_v29 = vrot.slane %v4890_v45, 2  ;;  %v3649_v22 = vrot.slane %v4890_v45, 3  ;;  %v3650_v25 = vrot.slane %v4890_v45, 4 }
 0x9cc   : > { %v3651_v32 = vrot.slane %v4890_v45, 5  ;;  %v3652_v14 = vrot.slane %v4890_v45, 6  ;;  %v3653_v55 = vrot.slane %v4890_v45, 7  ;;  %v3662_v51 = vmul.f32 %v4890_v45, %v6298_v0 }
 0x9cd   : > { %v3663_v61 = vmul.f32 %v3647_v50, %v6294_v26  ;;  %v3664_v53 = vmul.f32 %v3648_v29, %v6296_v34  ;;  %v3665_v40 = vmul.f32 %v3649_v22, %v6300_v49  ;;  %v3666_v1 = vmul.f32 %v3650_v25, %v6302_v10 }
 0x9ce   : > { %v3667_v19 = vmul.f32 %v3651_v32, %v6307_v5  ;;  %v3668_v13 = vmul.f32 %v3652_v14, %v6309_v17  ;;  %v3669_v31 = vmul.f32 %v3653_v55, %v6317_v46 }
 0x9cf   : > { %v3678_v4 = vrot.slane %v3663_v61, 7  ;;  %v3680_v2 = vrot.slane %v3664_v53, 6  ;;  %v3682_v34 = vrot.slane %v3665_v40, 5  ;;  %v3684_v38 = vrot.slane %v3666_v1, 4 }
 0x9d0   : > { %v3686_v0 = vrot.slane %v3667_v19, 3  ;;  %v3688_v18 = vrot.slane %v3668_v13, 2  ;;  %v3690_v60 = vrot.slane %v3669_v31, 1 }
 0x9d1   : > { %v3679_v26 = vsel %vm2024_vm4, %v3678_v4, %v3662_v51 }
 0x9d2   : > { %v3681_v49 = vsel %vm2026_vm5, %v3680_v2, %v3679_v26 }
 0x9d3   : > { %v3683_v10 = vsel %vm2028_vm6, %v3682_v34, %v3681_v49 }
 0x9d4   : > { %v3685_v5 = vsel %vm2030_vm7, %v3684_v38, %v3683_v10 }
 0x9d5   : > { %v3687_v16 = vsel %vm2032_vm8, %v3686_v0, %v3685_v5 }
 0x9d6   : > { %v3689_v17 = vsel %vm2034_vm9, %v3688_v18, %v3687_v16 }
 0x9d7   : > { %v3691_v46 = vsel %vm2036_vm10, %v3690_v60, %v3689_v17 }
 0x9d8   : > { %v3693_v54 = vadd.f32 %v3691_v46, %v3542_v8 }
 0x9da   : > { %v3694_v59 = vsel %vm1121_vm2, %v3693_v54, 0.0 }
 0x9db   : > { %3695 = vst [vmem:[%s465_s14] sm:$0xff] %v3694_v59 }
 0x9dc   : > { %4904 = shalt.err (!%p4901_p4)
}
 0x9dd   : > { %s4905_s29 = scalar_lea.hbm %s6368_s26, 128  ;;  %s4909_s24 = scalar_lea.hbm %s6426_s13, 256 }
 0x9de   : > { %p4906_p7 = scmp.ne.s32.totalorder %s6368_s26, %s4905_s29  ;;  %p4910_p10 = scmp.lt.u32.totalorder %s6368_s26, %s6426_s13 }
 0x9df   : > { %p4911_p11 = scmp.lt.u32.totalorder %s4909_s24, %s4905_s29  ;;  %p4913_p13 = scmp.lt.u32.totalorder %s4905_s29, %s6368_s26 }
 0x9e0   : > { %p4907_p8 = pnand %p4906_p7, %p5073_p5 }
 0x9e1   : > { %p4912_p12 = por %p4911_p11, %p4910_p10 }
 0x9e2   : > { %p4908_p9 = pneg %p4907_p8 }
 0x9e3   : > { %p4914_p0 = por %p4913_p13, %p4912_p12 }
 0x9e5   : > { %p4915_p1 = pnand %p4914_p0, %p4908_p9 }
 0x9e7   : > { %4918 = shalt.err (!%p4915_p1)
}
 0x9e8   : > { %4612 = dma.vmem_to_hbm [thread:$0]  (%p5073_p5), %s6370_s18, 128, %s6368_s26, %s3697_s10  }
 0x9e9 PF: > { %p4618_p2 = scmp.ge.s32.totalorder %s4953_s30, 2  ;;  %s3722_s17 = sand.u32 1, %s4941_s27  }
 0x9ea   : > { %s3723_s16 = scalar_lea.sflag [#allocation4], %s3722_s17 }
 0x9eb   : > { %p4615_p3 = pnand %p4618_p2, %p5077_p6 }
 0x9ed   : > { %4936 = dma.done.wait (!%p4615_p3), %s3723_s16, 128  }
 0x9ee   : > { %4938 = vsyncadd (!%p4615_p3), %s3723_s16, 4294967168  ;;  %s6467_s2 = sld [smem:[#allocation6_spill]]  ;;  %s6468_s29 = sld [smem:[#allocation7_spill]] }
 0x9ef   : > { %p25_p4 = scmp.ge.s32.totalorder %s5060_s15, 4   ;;  %s6469_s27 = smov %s4945_s28 }
 0x9f0   : > { %s6471_s30 = smov %s5060_s15 }
 0x9f1   :  { %27 = sbr.rel (!%p25_p4) target bundleno = 6 (0x6), region = 113 }
 0x9f4   : > { %s6470_s28 = smov %s6467_s2 }
 0x9f8   :  { %3728 = vsyncpa [#allocation4], 1 }
 0x9f9   :  { %3730 = vsyncpa [#allocation4 + $0x1], 1 }

</bundles_post_ra>
